<compile_context>
chip_gen: v5e
topology: v5e:2x2
jax: 0.10.0
libtpu: 0.0.40
codegen_flags: <defaults>
</compile_context>

<pallas_src>
import numpy as np
import jax
import jax.numpy as jnp
from jax.experimental import pallas as pl
from jax.experimental.pallas import tpu as pltpu


# ----------------------------------------------------------------------------
# Fused kernel builder
# ----------------------------------------------------------------------------
def _make_fused_kernel(H, W, KIN, C1, C2, C3, HID, NC):
    H2, W2 = H // 2, W // 2
    H4, W4 = H2 // 2, W2 // 2
    inv_gap = 1.0 / float(H4 * W4)

    def conv3x3(pad_ref, w_ref, b_ref, Hc, Wc, Cin):
        """3x3 stride-1 conv over a zero-padded VMEM scratch as 9 MXU matmuls
        of shape (Hc*Wc, Cin) x (Cin, Cout); returns ReLU'd (Hc*Wc, Cout)."""
        acc = None
        for dy in range(3):
            for dx in range(3):
                patch = pad_ref[dy:dy + Hc, dx:dx + Wc, :].reshape(Hc * Wc, Cin)
                t = jnp.dot(patch, w_ref[dy * 3 + dx],
                            preferred_element_type=jnp.float32)
                acc = t if acc is None else acc + t
        return jnp.maximum(acc + b_ref[...], 0.0)

    def kernel(x_ref, w1_ref, b1_ref, w2_ref, b2_ref, w3_ref, b3_ref,
               wl1_ref, bl1_ref, wl2_ref, bl2_ref, o_ref, p1_ref, p2_ref):
        # Zero the padded scratch buffers every step (their borders are the
        # conv zero-padding; per-core scratch on megacore forbids a one-shot
        # program_id==0 init). ~17K f32 stores — negligible.
        p1_ref[...] = jnp.zeros_like(p1_ref)
        p2_ref[...] = jnp.zeros_like(p2_ref)

        # ---- conv1 + ReLU: one im2col matmul (H*W, 9*Cin) x (9*Cin, C1) -----
        patches = x_ref[0].reshape(H * W, KIN)
        a1 = jnp.maximum(
            jnp.dot(patches, w1_ref[...], preferred_element_type=jnp.float32)
            + b1_ref[...], 0.0)                                    # (H*W, C1)
        p1_ref[1:H + 1, 1:W + 1, :] = a1.reshape(H, W, C1)

        # ---- conv2 + ReLU ----------------------------------------------------
        a2 = conv3x3(p1_ref, w2_ref, b2_ref, H, W, C1)             # (H*W, C2)

        # ---- maxpool 2x2 #1 -> padded p2 scratch (single interior store) -----
        r2 = a2.reshape(H2, 2 * W, C2)                 # free leading-dim split
        hm = jnp.maximum(r2[:, 0:W, :], r2[:, W:2 * W, :])         # (H2, W, C2)
        pooled = jnp.concatenate(
            [jnp.maximum(hm[:, 2 * j:2 * j + 1, :],
                         hm[:, 2 * j + 1:2 * j + 2, :])
             for j in range(W2)], axis=1)                          # (H2, W2, C2)
        p2_ref[1:H2 + 1, 1:W2 + 1, :] = pooled

        # ---- conv3 + ReLU ----------------------------------------------------
        a3 = conv3x3(p2_ref, w3_ref, b3_ref, H2, W2, C2)           # (H2*W2, C3)

        # ---- maxpool 2x2 #2 fused with AdaptiveAvgPool((1,1)) ----------------
        r3 = a3.reshape(H4, 2 * W2, C3)
        hm3 = jnp.maximum(r3[:, 0:W2, :], r3[:, W2:2 * W2, :])     # (H4, W2, C3)
        tot = None
        for j in range(W4):
            col = jnp.maximum(hm3[:, 2 * j:2 * j + 1, :],
                              hm3[:, 2 * j + 1:2 * j + 2, :])      # (H4, 1, C3)
            tot = col if tot is None else tot + col
        gap = jnp.sum(tot, axis=0) * inv_gap                       # (1, C3)

        # ---- classifier: Linear -> ReLU -> Dropout(identity) -> Linear -------
        h = jnp.maximum(
            jnp.dot(gap, wl1_ref[...], preferred_element_type=jnp.float32)
            + bl1_ref[...], 0.0)
        logits = jnp.dot(h, wl2_ref[...], preferred_element_type=jnp.float32) \
            + bl2_ref[...]
        o_ref[...] = logits.reshape(1, 1, NC).astype(o_ref.dtype)

    return kernel


# ----------------------------------------------------------------------------
# Forward wrapper (single pallas_call)
# ----------------------------------------------------------------------------
def forward(x_nchw, p):
    N, Cin, H, W = x_nchw.shape
    assert H % 4 == 0 and W % 16 == 0, "kernel assumes layout-friendly H, W"
    C1 = p["w1"].shape[-1]
    C2 = p["w2"].shape[-1]
    C3 = p["w3"].shape[-1]
    HID = p["wl1"].shape[-1]
    NC = p["wl2"].shape[-1]
    KIN = 9 * Cin
    H2, W2 = H // 2, W // 2

    # Tiny input-prep glue (input is only a few KiB): NCHW->NHWC, zero-pad,
    # im2col patches so conv1's MXU contraction dim is 36 rather than 4.
    xp = jnp.pad(jnp.transpose(x_nchw, (0, 2, 3, 1)),
                 ((0, 0), (1, 1), (1, 1), (0, 0)))
    patches = jnp.concatenate(
        [xp[:, dy:dy + H, dx:dx + W, :] for dy in range(3) for dx in range(3)],
        axis=-1)                                                   # (N,H,W,9Cin)

    w1f = p["w1"].reshape(KIN, C1)        # (dy,dx,cin) flatten matches patches
    w2f = p["w2"].reshape(9, C1, C2)
    w3f = p["w3"].reshape(9, C2, C3)
    b1r = p["b1"].reshape(1, C1)
    b2r = p["b2"].reshape(1, C2)
    b3r = p["b3"].reshape(1, C3)
    bl1r = p["bl1"].reshape(1, HID)
    bl2r = p["bl2"].reshape(1, NC)

    kernel = _make_fused_kernel(H, W, KIN, C1, C2, C3, HID, NC)

    out = pl.pallas_call(
        kernel,
        out_shape=jax.ShapeDtypeStruct((N, 1, NC), x_nchw.dtype),
        grid=(N,),
        in_specs=[
            pl.BlockSpec((1, H, W, KIN), lambda n: (n, 0, 0, 0)),  # patches
            pl.BlockSpec((KIN, C1), lambda n: (0, 0)),             # w1
            pl.BlockSpec((1, C1), lambda n: (0, 0)),               # b1
            pl.BlockSpec((9, C1, C2), lambda n: (0, 0, 0)),        # w2
            pl.BlockSpec((1, C2), lambda n: (0, 0)),               # b2
            pl.BlockSpec((9, C2, C3), lambda n: (0, 0, 0)),        # w3
            pl.BlockSpec((1, C3), lambda n: (0, 0)),               # b3
            pl.BlockSpec((C3, HID), lambda n: (0, 0)),             # wl1
            pl.BlockSpec((1, HID), lambda n: (0, 0)),              # bl1
            pl.BlockSpec((HID, NC), lambda n: (0, 0)),             # wl2
            pl.BlockSpec((1, NC), lambda n: (0, 0)),               # bl2
        ],
        out_specs=pl.BlockSpec((1, 1, NC), lambda n: (n, 0, 0)),
        scratch_shapes=[
            pltpu.VMEM((H + 2, W + 2, C1), jnp.float32),           # padded conv1
            pltpu.VMEM((H2 + 2, W2 + 2, C2), jnp.float32),         # padded pool1
        ],
        compiler_params=pltpu.CompilerParams(
            dimension_semantics=("parallel",)),
    )(patches, w1f, b1r, w2f, b2r, w3f, b3r, p["wl1"], bl1r, p["wl2"], bl2r)

    return out.reshape(N, NC)


# ----------------------------------------------------------------------------
# Pure-JAX reference for correctness checking
# ----------------------------------------------------------------------------
def ref_forward(x_nchw, p):
    x = jnp.transpose(x_nchw, (0, 2, 3, 1))

    def conv(x, w, b):
        y = jax.lax.conv_general_dilated(
            x, w, (1, 1), "SAME",
            dimension_numbers=("NHWC", "HWIO", "NHWC"),
            precision=jax.lax.Precision.HIGHEST)
        return jnp.maximum(y + b, 0.0)

    def mp(x):
        return jax.lax.reduce_window(x, -jnp.inf, jax.lax.max,
                                     (1, 2, 2, 1), (1, 2, 2, 1), "VALID")

    y = conv(x, p["w1"], p["b1"])
    y = conv(y, p["w2"], p["b2"])
    y = mp(y)
    y = conv(y, p["w3"], p["b3"])
    y = mp(y)
    y = jnp.mean(y, axis=(1, 2))
    h = jnp.maximum(y @ p["wl1"] + p["bl1"], 0.0)
    return h @ p["wl2"] + p["bl2"]


if __name__ == "__main__":
    in_channels, num_classes = 4, 10
    N, H, W = 2, 16, 16

    key = jax.random.PRNGKey(0)
    ks = jax.random.split(key, 11)
    f32 = jnp.float32
    p = {
        "w1": 0.1 * jax.random.normal(ks[0], (3, 3, in_channels, 32), f32),
        "b1": 0.05 * jax.random.normal(ks[1], (32,), f32),
        "w2": 0.1 * jax.random.normal(ks[2], (3, 3, 32, 64), f32),
        "b2": 0.05 * jax.random.normal(ks[3], (64,), f32),
        "w3": 0.1 * jax.random.normal(ks[4], (3, 3, 64, 128), f32),
        "b3": 0.05 * jax.random.normal(ks[5], (128,), f32),
        "wl1": 0.1 * jax.random.normal(ks[6], (128, 64), f32),
        "bl1": 0.05 * jax.random.normal(ks[7], (64,), f32),
        "wl2": 0.1 * jax.random.normal(ks[8], (64, num_classes), f32),
        "bl2": 0.05 * jax.random.normal(ks[9], (num_classes,), f32),
    }
    x = jax.random.normal(ks[10], (N, in_channels, H, W), f32)     # NCHW input

    out = jax.block_until_ready(jax.jit(forward)(x, p))
    ref = jax.block_until_ready(ref_forward(x, p))

    assert out.shape == (N, num_classes), out.shape
    np.testing.assert_allclose(np.asarray(out), np.asarray(ref),
                               rtol=5e-2, atol=5e-2)
    print("KERNEL_OK")
</pallas_src>

<mosaic_0001>
module attributes {stable_mosaic.version = 11 : i64} {
  func.func @kernel(%arg0: i32, %arg1: memref<1x16x16x36xf32, #tpu.memory_space<vmem>>, %arg2: memref<36x32xf32, #tpu.memory_space<vmem>>, %arg3: memref<1x32xf32, #tpu.memory_space<vmem>>, %arg4: memref<9x32x64xf32, #tpu.memory_space<vmem>>, %arg5: memref<1x64xf32, #tpu.memory_space<vmem>>, %arg6: memref<9x64x128xf32, #tpu.memory_space<vmem>>, %arg7: memref<1x128xf32, #tpu.memory_space<vmem>>, %arg8: memref<128x64xf32, #tpu.memory_space<vmem>>, %arg9: memref<1x64xf32, #tpu.memory_space<vmem>>, %arg10: memref<64x10xf32, #tpu.memory_space<vmem>>, %arg11: memref<1x10xf32, #tpu.memory_space<vmem>>, %arg12: memref<1x1x10xf32, #tpu.memory_space<vmem>>, %arg13: memref<18x18x32xf32, #tpu.memory_space<vmem>>, %arg14: memref<10x10x64xf32, #tpu.memory_space<vmem>>) attributes {dimension_semantics = [#tpu.dimension_semantics<parallel>], iteration_bounds = array<i64: 2>, scalar_prefetch = 0 : i64, scratch_operands = 2 : i64, tpu.core_type = #tpu.core_type<tc>, window_params = [{transform_indices = @transform_0, window_bounds = array<i64: 1, 16, 16, 36>}, {pipeline_mode = #tpu.pipeline_mode<synchronous>, transform_indices = @transform_1, window_bounds = array<i64: 36, 32>}, {pipeline_mode = #tpu.pipeline_mode<synchronous>, transform_indices = @transform_2, window_bounds = array<i64: 1, 32>}, {pipeline_mode = #tpu.pipeline_mode<synchronous>, transform_indices = @transform_3, window_bounds = array<i64: 9, 32, 64>}, {pipeline_mode = #tpu.pipeline_mode<synchronous>, transform_indices = @transform_4, window_bounds = array<i64: 1, 64>}, {pipeline_mode = #tpu.pipeline_mode<synchronous>, transform_indices = @transform_5, window_bounds = array<i64: 9, 64, 128>}, {pipeline_mode = #tpu.pipeline_mode<synchronous>, transform_indices = @transform_6, window_bounds = array<i64: 1, 128>}, {pipeline_mode = #tpu.pipeline_mode<synchronous>, transform_indices = @transform_7, window_bounds = array<i64: 128, 64>}, {pipeline_mode = #tpu.pipeline_mode<synchronous>, transform_indices = @transform_8, window_bounds = array<i64: 1, 64>}, {pipeline_mode = #tpu.pipeline_mode<synchronous>, transform_indices = @transform_9, window_bounds = array<i64: 64, 10>}, {pipeline_mode = #tpu.pipeline_mode<synchronous>, transform_indices = @transform_10, window_bounds = array<i64: 1, 10>}, {transform_indices = @transform_11, window_bounds = array<i64: 1, 1, 10>}]} {
    %cst = arith.constant 0.000000e+00 : f32
    %0 = vector.broadcast %cst : f32 to vector<18x18x32xf32>
    %c0 = arith.constant 0 : index
    %c0_0 = arith.constant 0 : index
    %c0_1 = arith.constant 0 : index
    %1 = vector.load %arg13[%c0, %c0_0, %c0_1] : memref<18x18x32xf32, #tpu.memory_space<vmem>>, vector<18x18x32xf32>
    tpu.vector_store %arg13[%c0, %c0_0, %c0_1], %0 {strides = array<i32>} : memref<18x18x32xf32, #tpu.memory_space<vmem>>, vector<18x18x32xf32>,
    %cst_2 = arith.constant 0.000000e+00 : f32
    %2 = vector.broadcast %cst_2 : f32 to vector<10x10x64xf32>
    %c0_3 = arith.constant 0 : index
    %c0_4 = arith.constant 0 : index
    %c0_5 = arith.constant 0 : index
    %3 = vector.load %arg14[%c0_3, %c0_4, %c0_5] : memref<10x10x64xf32, #tpu.memory_space<vmem>>, vector<10x10x64xf32>
    tpu.vector_store %arg14[%c0_3, %c0_4, %c0_5], %2 {strides = array<i32>} : memref<10x10x64xf32, #tpu.memory_space<vmem>>, vector<10x10x64xf32>,
    %c0_6 = arith.constant 0 : index
    %c0_7 = arith.constant 0 : index
    %c0_8 = arith.constant 0 : index
    %c0_9 = arith.constant 0 : index
    %4 = vector.load %arg1[%c0_6, %c0_7, %c0_8, %c0_9] : memref<1x16x16x36xf32, #tpu.memory_space<vmem>>, vector<1x16x16x36xf32>
    %5 = vector.shape_cast %4 : vector<1x16x16x36xf32> to vector<16x16x36xf32>
    %6 = vector.shape_cast %5 : vector<16x16x36xf32> to vector<256x36xf32>
    %c0_10 = arith.constant 0 : index
    %c0_11 = arith.constant 0 : index
    %7 = vector.load %arg2[%c0_10, %c0_11] : memref<36x32xf32, #tpu.memory_space<vmem>>, vector<36x32xf32>
    %cst_12 = arith.constant dense<0.000000e+00> : vector<256x32xf32>
    %8 = tpu.matmul %6, %7, %cst_12 {dimension_numbers = #tpu.dot_dimension_numbers<[1], [0], [0], [1], [0, 0, 1, 1], [], []>} : vector<256x36xf32>, vector<36x32xf32>, vector<256x32xf32> -> vector<256x32xf32>
    %c0_13 = arith.constant 0 : index
    %c0_14 = arith.constant 0 : index
    %9 = vector.load %arg3[%c0_13, %c0_14] : memref<1x32xf32, #tpu.memory_space<vmem>>, vector<1x32xf32>
    %10 = vector.broadcast %9 : vector<1x32xf32> to vector<256x32xf32>
    %11 = arith.addf %8, %10 : vector<256x32xf32>
    %cst_15 = arith.constant 0.000000e+00 : f32
    %12 = vector.broadcast %cst_15 : f32 to vector<256x32xf32>
    %13 = arith.maximumf %11, %12 : vector<256x32xf32>
    %14 = vector.shape_cast %13 : vector<256x32xf32> to vector<16x16x32xf32>
    %c1 = arith.constant 1 : index
    %c1_16 = arith.constant 1 : index
    %c0_17 = arith.constant 0 : index
    %15 = vector.load %arg13[%c1, %c1_16, %c0_17] : memref<18x18x32xf32, #tpu.memory_space<vmem>>, vector<16x16x32xf32>
    tpu.vector_store %arg13[%c1, %c1_16, %c0_17], %14 {strides = array<i32>} : memref<18x18x32xf32, #tpu.memory_space<vmem>>, vector<16x16x32xf32>,
    %c0_18 = arith.constant 0 : index
    %c0_19 = arith.constant 0 : index
    %c0_20 = arith.constant 0 : index
    %16 = vector.load %arg13[%c0_18, %c0_19, %c0_20] : memref<18x18x32xf32, #tpu.memory_space<vmem>>, vector<16x16x32xf32>
    %17 = vector.shape_cast %16 : vector<16x16x32xf32> to vector<256x32xf32>
    %c0_21 = arith.constant 0 : index
    %c0_22 = arith.constant 0 : index
    %c0_23 = arith.constant 0 : index
    %18 = vector.load %arg4[%c0_21, %c0_22, %c0_23] : memref<9x32x64xf32, #tpu.memory_space<vmem>>, vector<1x32x64xf32>
    %19 = vector.shape_cast %18 : vector<1x32x64xf32> to vector<32x64xf32>
    %cst_24 = arith.constant dense<0.000000e+00> : vector<256x64xf32>
    %20 = tpu.matmul %17, %19, %cst_24 {dimension_numbers = #tpu.dot_dimension_numbers<[1], [0], [0], [1], [0, 0, 1, 1], [], []>} : vector<256x32xf32>, vector<32x64xf32>, vector<256x64xf32> -> vector<256x64xf32>
    %c0_25 = arith.constant 0 : index
    %c1_26 = arith.constant 1 : index
    %c0_27 = arith.constant 0 : index
    %21 = vector.load %arg13[%c0_25, %c1_26, %c0_27] : memref<18x18x32xf32, #tpu.memory_space<vmem>>, vector<16x16x32xf32>
    %22 = vector.shape_cast %21 : vector<16x16x32xf32> to vector<256x32xf32>
    %c1_28 = arith.constant 1 : index
    %c0_29 = arith.constant 0 : index
    %c0_30 = arith.constant 0 : index
    %23 = vector.load %arg4[%c1_28, %c0_29, %c0_30] : memref<9x32x64xf32, #tpu.memory_space<vmem>>, vector<1x32x64xf32>
    %24 = vector.shape_cast %23 : vector<1x32x64xf32> to vector<32x64xf32>
    %cst_31 = arith.constant dense<0.000000e+00> : vector<256x64xf32>
    %25 = tpu.matmul %22, %24, %cst_31 {dimension_numbers = #tpu.dot_dimension_numbers<[1], [0], [0], [1], [0, 0, 1, 1], [], []>} : vector<256x32xf32>, vector<32x64xf32>, vector<256x64xf32> -> vector<256x64xf32>
    %26 = arith.addf %20, %25 : vector<256x64xf32>
    %c0_32 = arith.constant 0 : index
    %c2 = arith.constant 2 : index
    %c0_33 = arith.constant 0 : index
    %27 = vector.load %arg13[%c0_32, %c2, %c0_33] : memref<18x18x32xf32, #tpu.memory_space<vmem>>, vector<16x16x32xf32>
    %28 = vector.shape_cast %27 : vector<16x16x32xf32> to vector<256x32xf32>
    %c2_34 = arith.constant 2 : index
    %c0_35 = arith.constant 0 : index
    %c0_36 = arith.constant 0 : index
    %29 = vector.load %arg4[%c2_34, %c0_35, %c0_36] : memref<9x32x64xf32, #tpu.memory_space<vmem>>, vector<1x32x64xf32>
    %30 = vector.shape_cast %29 : vector<1x32x64xf32> to vector<32x64xf32>
    %cst_37 = arith.constant dense<0.000000e+00> : vector<256x64xf32>
    %31 = tpu.matmul %28, %30, %cst_37 {dimension_numbers = #tpu.dot_dimension_numbers<[1], [0], [0], [1], [0, 0, 1, 1], [], []>} : vector<256x32xf32>, vector<32x64xf32>, vector<256x64xf32> -> vector<256x64xf32>
    %32 = arith.addf %26, %31 : vector<256x64xf32>
    %c1_38 = arith.constant 1 : index
    %c0_39 = arith.constant 0 : index
    %c0_40 = arith.constant 0 : index
    %33 = vector.load %arg13[%c1_38, %c0_39, %c0_40] : memref<18x18x32xf32, #tpu.memory_space<vmem>>, vector<16x16x32xf32>
    %34 = vector.shape_cast %33 : vector<16x16x32xf32> to vector<256x32xf32>
    %c3 = arith.constant 3 : index
    %c0_41 = arith.constant 0 : index
    %c0_42 = arith.constant 0 : index
    %35 = vector.load %arg4[%c3, %c0_41, %c0_42] : memref<9x32x64xf32, #tpu.memory_space<vmem>>, vector<1x32x64xf32>
    %36 = vector.shape_cast %35 : vector<1x32x64xf32> to vector<32x64xf32>
    %cst_43 = arith.constant dense<0.000000e+00> : vector<256x64xf32>
    %37 = tpu.matmul %34, %36, %cst_43 {dimension_numbers = #tpu.dot_dimension_numbers<[1], [0], [0], [1], [0, 0, 1, 1], [], []>} : vector<256x32xf32>, vector<32x64xf32>, vector<256x64xf32> -> vector<256x64xf32>
    %38 = arith.addf %32, %37 : vector<256x64xf32>
    %c1_44 = arith.constant 1 : index
    %c1_45 = arith.constant 1 : index
    %c0_46 = arith.constant 0 : index
    %39 = vector.load %arg13[%c1_44, %c1_45, %c0_46] : memref<18x18x32xf32, #tpu.memory_space<vmem>>, vector<16x16x32xf32>
    %40 = vector.shape_cast %39 : vector<16x16x32xf32> to vector<256x32xf32>
    %c4 = arith.constant 4 : index
    %c0_47 = arith.constant 0 : index
    %c0_48 = arith.constant 0 : index
    %41 = vector.load %arg4[%c4, %c0_47, %c0_48] : memref<9x32x64xf32, #tpu.memory_space<vmem>>, vector<1x32x64xf32>
    %42 = vector.shape_cast %41 : vector<1x32x64xf32> to vector<32x64xf32>
    %cst_49 = arith.constant dense<0.000000e+00> : vector<256x64xf32>
    %43 = tpu.matmul %40, %42, %cst_49 {dimension_numbers = #tpu.dot_dimension_numbers<[1], [0], [0], [1], [0, 0, 1, 1], [], []>} : vector<256x32xf32>, vector<32x64xf32>, vector<256x64xf32> -> vector<256x64xf32>
    %44 = arith.addf %38, %43 : vector<256x64xf32>
    %c1_50 = arith.constant 1 : index
    %c2_51 = arith.constant 2 : index
    %c0_52 = arith.constant 0 : index
    %45 = vector.load %arg13[%c1_50, %c2_51, %c0_52] : memref<18x18x32xf32, #tpu.memory_space<vmem>>, vector<16x16x32xf32>
    %46 = vector.shape_cast %45 : vector<16x16x32xf32> to vector<256x32xf32>
    %c5 = arith.constant 5 : index
    %c0_53 = arith.constant 0 : index
    %c0_54 = arith.constant 0 : index
    %47 = vector.load %arg4[%c5, %c0_53, %c0_54] : memref<9x32x64xf32, #tpu.memory_space<vmem>>, vector<1x32x64xf32>
    %48 = vector.shape_cast %47 : vector<1x32x64xf32> to vector<32x64xf32>
    %cst_55 = arith.constant dense<0.000000e+00> : vector<256x64xf32>
    %49 = tpu.matmul %46, %48, %cst_55 {dimension_numbers = #tpu.dot_dimension_numbers<[1], [0], [0], [1], [0, 0, 1, 1], [], []>} : vector<256x32xf32>, vector<32x64xf32>, vector<256x64xf32> -> vector<256x64xf32>
    %50 = arith.addf %44, %49 : vector<256x64xf32>
    %c2_56 = arith.constant 2 : index
    %c0_57 = arith.constant 0 : index
    %c0_58 = arith.constant 0 : index
    %51 = vector.load %arg13[%c2_56, %c0_57, %c0_58] : memref<18x18x32xf32, #tpu.memory_space<vmem>>, vector<16x16x32xf32>
    %52 = vector.shape_cast %51 : vector<16x16x32xf32> to vector<256x32xf32>
    %c6 = arith.constant 6 : index
    %c0_59 = arith.constant 0 : index
    %c0_60 = arith.constant 0 : index
    %53 = vector.load %arg4[%c6, %c0_59, %c0_60] : memref<9x32x64xf32, #tpu.memory_space<vmem>>, vector<1x32x64xf32>
    %54 = vector.shape_cast %53 : vector<1x32x64xf32> to vector<32x64xf32>
    %cst_61 = arith.constant dense<0.000000e+00> : vector<256x64xf32>
    %55 = tpu.matmul %52, %54, %cst_61 {dimension_numbers = #tpu.dot_dimension_numbers<[1], [0], [0], [1], [0, 0, 1, 1], [], []>} : vector<256x32xf32>, vector<32x64xf32>, vector<256x64xf32> -> vector<256x64xf32>
    %56 = arith.addf %50, %55 : vector<256x64xf32>
    %c2_62 = arith.constant 2 : index
    %c1_63 = arith.constant 1 : index
    %c0_64 = arith.constant 0 : index
    %57 = vector.load %arg13[%c2_62, %c1_63, %c0_64] : memref<18x18x32xf32, #tpu.memory_space<vmem>>, vector<16x16x32xf32>
    %58 = vector.shape_cast %57 : vector<16x16x32xf32> to vector<256x32xf32>
    %c7 = arith.constant 7 : index
    %c0_65 = arith.constant 0 : index
    %c0_66 = arith.constant 0 : index
    %59 = vector.load %arg4[%c7, %c0_65, %c0_66] : memref<9x32x64xf32, #tpu.memory_space<vmem>>, vector<1x32x64xf32>
    %60 = vector.shape_cast %59 : vector<1x32x64xf32> to vector<32x64xf32>
    %cst_67 = arith.constant dense<0.000000e+00> : vector<256x64xf32>
    %61 = tpu.matmul %58, %60, %cst_67 {dimension_numbers = #tpu.dot_dimension_numbers<[1], [0], [0], [1], [0, 0, 1, 1], [], []>} : vector<256x32xf32>, vector<32x64xf32>, vector<256x64xf32> -> vector<256x64xf32>
    %62 = arith.addf %56, %61 : vector<256x64xf32>
    %c2_68 = arith.constant 2 : index
    %c2_69 = arith.constant 2 : index
    %c0_70 = arith.constant 0 : index
    %63 = vector.load %arg13[%c2_68, %c2_69, %c0_70] : memref<18x18x32xf32, #tpu.memory_space<vmem>>, vector<16x16x32xf32>
    %64 = vector.shape_cast %63 : vector<16x16x32xf32> to vector<256x32xf32>
    %c8 = arith.constant 8 : index
    %c0_71 = arith.constant 0 : index
    %c0_72 = arith.constant 0 : index
    %65 = vector.load %arg4[%c8, %c0_71, %c0_72] : memref<9x32x64xf32, #tpu.memory_space<vmem>>, vector<1x32x64xf32>
    %66 = vector.shape_cast %65 : vector<1x32x64xf32> to vector<32x64xf32>
    %cst_73 = arith.constant dense<0.000000e+00> : vector<256x64xf32>
    %67 = tpu.matmul %64, %66, %cst_73 {dimension_numbers = #tpu.dot_dimension_numbers<[1], [0], [0], [1], [0, 0, 1, 1], [], []>} : vector<256x32xf32>, vector<32x64xf32>, vector<256x64xf32> -> vector<256x64xf32>
    %68 = arith.addf %62, %67 : vector<256x64xf32>
    %c0_74 = arith.constant 0 : index
    %c0_75 = arith.constant 0 : index
    %69 = vector.load %arg5[%c0_74, %c0_75] : memref<1x64xf32, #tpu.memory_space<vmem>>, vector<1x64xf32>
    %70 = vector.broadcast %69 : vector<1x64xf32> to vector<256x64xf32>
    %71 = arith.addf %68, %70 : vector<256x64xf32>
    %cst_76 = arith.constant 0.000000e+00 : f32
    %72 = vector.broadcast %cst_76 : f32 to vector<256x64xf32>
    %73 = arith.maximumf %71, %72 : vector<256x64xf32>
    %74 = vector.shape_cast %73 : vector<256x64xf32> to vector<8x32x64xf32>
    %75 = vector.extract_strided_slice %74 {offsets = [0, 0, 0], sizes = [8, 16, 64], strides = [1, 1, 1]} : vector<8x32x64xf32> to vector<8x16x64xf32>
    %76 = vector.extract_strided_slice %74 {offsets = [0, 16, 0], sizes = [8, 16, 64], strides = [1, 1, 1]} : vector<8x32x64xf32> to vector<8x16x64xf32>
    %77 = arith.maximumf %75, %76 : vector<8x16x64xf32>
    %78 = vector.extract_strided_slice %77 {offsets = [0, 0, 0], sizes = [8, 1, 64], strides = [1, 1, 1]} : vector<8x16x64xf32> to vector<8x1x64xf32>
    %79 = vector.extract_strided_slice %77 {offsets = [0, 1, 0], sizes = [8, 1, 64], strides = [1, 1, 1]} : vector<8x16x64xf32> to vector<8x1x64xf32>
    %80 = arith.maximumf %78, %79 : vector<8x1x64xf32>
    %81 = vector.extract_strided_slice %77 {offsets = [0, 2, 0], sizes = [8, 1, 64], strides = [1, 1, 1]} : vector<8x16x64xf32> to vector<8x1x64xf32>
    %82 = vector.extract_strided_slice %77 {offsets = [0, 3, 0], sizes = [8, 1, 64], strides = [1, 1, 1]} : vector<8x16x64xf32> to vector<8x1x64xf32>
    %83 = arith.maximumf %81, %82 : vector<8x1x64xf32>
    %84 = vector.extract_strided_slice %77 {offsets = [0, 4, 0], sizes = [8, 1, 64], strides = [1, 1, 1]} : vector<8x16x64xf32> to vector<8x1x64xf32>
    %85 = vector.extract_strided_slice %77 {offsets = [0, 5, 0], sizes = [8, 1, 64], strides = [1, 1, 1]} : vector<8x16x64xf32> to vector<8x1x64xf32>
    %86 = arith.maximumf %84, %85 : vector<8x1x64xf32>
    %87 = vector.extract_strided_slice %77 {offsets = [0, 6, 0], sizes = [8, 1, 64], strides = [1, 1, 1]} : vector<8x16x64xf32> to vector<8x1x64xf32>
    %88 = vector.extract_strided_slice %77 {offsets = [0, 7, 0], sizes = [8, 1, 64], strides = [1, 1, 1]} : vector<8x16x64xf32> to vector<8x1x64xf32>
    %89 = arith.maximumf %87, %88 : vector<8x1x64xf32>
    %90 = vector.extract_strided_slice %77 {offsets = [0, 8, 0], sizes = [8, 1, 64], strides = [1, 1, 1]} : vector<8x16x64xf32> to vector<8x1x64xf32>
    %91 = vector.extract_strided_slice %77 {offsets = [0, 9, 0], sizes = [8, 1, 64], strides = [1, 1, 1]} : vector<8x16x64xf32> to vector<8x1x64xf32>
    %92 = arith.maximumf %90, %91 : vector<8x1x64xf32>
    %93 = vector.extract_strided_slice %77 {offsets = [0, 10, 0], sizes = [8, 1, 64], strides = [1, 1, 1]} : vector<8x16x64xf32> to vector<8x1x64xf32>
    %94 = vector.extract_strided_slice %77 {offsets = [0, 11, 0], sizes = [8, 1, 64], strides = [1, 1, 1]} : vector<8x16x64xf32> to vector<8x1x64xf32>
    %95 = arith.maximumf %93, %94 : vector<8x1x64xf32>
    %96 = vector.extract_strided_slice %77 {offsets = [0, 12, 0], sizes = [8, 1, 64], strides = [1, 1, 1]} : vector<8x16x64xf32> to vector<8x1x64xf32>
    %97 = vector.extract_strided_slice %77 {offsets = [0, 13, 0], sizes = [8, 1, 64], strides = [1, 1, 1]} : vector<8x16x64xf32> to vector<8x1x64xf32>
    %98 = arith.maximumf %96, %97 : vector<8x1x64xf32>
    %99 = vector.extract_strided_slice %77 {offsets = [0, 14, 0], sizes = [8, 1, 64], strides = [1, 1, 1]} : vector<8x16x64xf32> to vector<8x1x64xf32>
    %100 = vector.extract_strided_slice %77 {offsets = [0, 15, 0], sizes = [8, 1, 64], strides = [1, 1, 1]} : vector<8x16x64xf32> to vector<8x1x64xf32>
    %101 = arith.maximumf %99, %100 : vector<8x1x64xf32>
    %102 = tpu.concatenate %80, %83, %86, %89, %92, %95, %98, %101 in 1 : vector<8x1x64xf32>, vector<8x1x64xf32>, vector<8x1x64xf32>, vector<8x1x64xf32>, vector<8x1x64xf32>, vector<8x1x64xf32>, vector<8x1x64xf32>, vector<8x1x64xf32> -> vector<8x8x64xf32>
    %c1_77 = arith.constant 1 : index
    %c1_78 = arith.constant 1 : index
    %c0_79 = arith.constant 0 : index
    %103 = vector.load %arg14[%c1_77, %c1_78, %c0_79] : memref<10x10x64xf32, #tpu.memory_space<vmem>>, vector<8x8x64xf32>
    tpu.vector_store %arg14[%c1_77, %c1_78, %c0_79], %102 {strides = array<i32>} : memref<10x10x64xf32, #tpu.memory_space<vmem>>, vector<8x8x64xf32>,
    %c0_80 = arith.constant 0 : index
    %c0_81 = arith.constant 0 : index
    %c0_82 = arith.constant 0 : index
    %104 = vector.load %arg14[%c0_80, %c0_81, %c0_82] : memref<10x10x64xf32, #tpu.memory_space<vmem>>, vector<8x8x64xf32>
    %105 = vector.shape_cast %104 : vector<8x8x64xf32> to vector<64x64xf32>
    %c0_83 = arith.constant 0 : index
    %c0_84 = arith.constant 0 : index
    %c0_85 = arith.constant 0 : index
    %106 = vector.load %arg6[%c0_83, %c0_84, %c0_85] : memref<9x64x128xf32, #tpu.memory_space<vmem>>, vector<1x64x128xf32>
    %107 = vector.shape_cast %106 : vector<1x64x128xf32> to vector<64x128xf32>
    %cst_86 = arith.constant dense<0.000000e+00> : vector<64x128xf32>
    %108 = tpu.matmul %105, %107, %cst_86 {dimension_numbers = #tpu.dot_dimension_numbers<[1], [0], [0], [1], [0, 0, 1, 1], [], []>} : vector<64x64xf32>, vector<64x128xf32>, vector<64x128xf32> -> vector<64x128xf32>
    %c0_87 = arith.constant 0 : index
    %c1_88 = arith.constant 1 : index
    %c0_89 = arith.constant 0 : index
    %109 = vector.load %arg14[%c0_87, %c1_88, %c0_89] : memref<10x10x64xf32, #tpu.memory_space<vmem>>, vector<8x8x64xf32>
    %110 = vector.shape_cast %109 : vector<8x8x64xf32> to vector<64x64xf32>
    %c1_90 = arith.constant 1 : index
    %c0_91 = arith.constant 0 : index
    %c0_92 = arith.constant 0 : index
    %111 = vector.load %arg6[%c1_90, %c0_91, %c0_92] : memref<9x64x128xf32, #tpu.memory_space<vmem>>, vector<1x64x128xf32>
    %112 = vector.shape_cast %111 : vector<1x64x128xf32> to vector<64x128xf32>
    %cst_93 = arith.constant dense<0.000000e+00> : vector<64x128xf32>
    %113 = tpu.matmul %110, %112, %cst_93 {dimension_numbers = #tpu.dot_dimension_numbers<[1], [0], [0], [1], [0, 0, 1, 1], [], []>} : vector<64x64xf32>, vector<64x128xf32>, vector<64x128xf32> -> vector<64x128xf32>
    %114 = arith.addf %108, %113 : vector<64x128xf32>
    %c0_94 = arith.constant 0 : index
    %c2_95 = arith.constant 2 : index
    %c0_96 = arith.constant 0 : index
    %115 = vector.load %arg14[%c0_94, %c2_95, %c0_96] : memref<10x10x64xf32, #tpu.memory_space<vmem>>, vector<8x8x64xf32>
    %116 = vector.shape_cast %115 : vector<8x8x64xf32> to vector<64x64xf32>
    %c2_97 = arith.constant 2 : index
    %c0_98 = arith.constant 0 : index
    %c0_99 = arith.constant 0 : index
    %117 = vector.load %arg6[%c2_97, %c0_98, %c0_99] : memref<9x64x128xf32, #tpu.memory_space<vmem>>, vector<1x64x128xf32>
    %118 = vector.shape_cast %117 : vector<1x64x128xf32> to vector<64x128xf32>
    %cst_100 = arith.constant dense<0.000000e+00> : vector<64x128xf32>
    %119 = tpu.matmul %116, %118, %cst_100 {dimension_numbers = #tpu.dot_dimension_numbers<[1], [0], [0], [1], [0, 0, 1, 1], [], []>} : vector<64x64xf32>, vector<64x128xf32>, vector<64x128xf32> -> vector<64x128xf32>
    %120 = arith.addf %114, %119 : vector<64x128xf32>
    %c1_101 = arith.constant 1 : index
    %c0_102 = arith.constant 0 : index
    %c0_103 = arith.constant 0 : index
    %121 = vector.load %arg14[%c1_101, %c0_102, %c0_103] : memref<10x10x64xf32, #tpu.memory_space<vmem>>, vector<8x8x64xf32>
    %122 = vector.shape_cast %121 : vector<8x8x64xf32> to vector<64x64xf32>
    %c3_104 = arith.constant 3 : index
    %c0_105 = arith.constant 0 : index
    %c0_106 = arith.constant 0 : index
    %123 = vector.load %arg6[%c3_104, %c0_105, %c0_106] : memref<9x64x128xf32, #tpu.memory_space<vmem>>, vector<1x64x128xf32>
    %124 = vector.shape_cast %123 : vector<1x64x128xf32> to vector<64x128xf32>
    %cst_107 = arith.constant dense<0.000000e+00> : vector<64x128xf32>
    %125 = tpu.matmul %122, %124, %cst_107 {dimension_numbers = #tpu.dot_dimension_numbers<[1], [0], [0], [1], [0, 0, 1, 1], [], []>} : vector<64x64xf32>, vector<64x128xf32>, vector<64x128xf32> -> vector<64x128xf32>
    %126 = arith.addf %120, %125 : vector<64x128xf32>
    %c1_108 = arith.constant 1 : index
    %c1_109 = arith.constant 1 : index
    %c0_110 = arith.constant 0 : index
    %127 = vector.load %arg14[%c1_108, %c1_109, %c0_110] : memref<10x10x64xf32, #tpu.memory_space<vmem>>, vector<8x8x64xf32>
    %128 = vector.shape_cast %127 : vector<8x8x64xf32> to vector<64x64xf32>
    %c4_111 = arith.constant 4 : index
    %c0_112 = arith.constant 0 : index
    %c0_113 = arith.constant 0 : index
    %129 = vector.load %arg6[%c4_111, %c0_112, %c0_113] : memref<9x64x128xf32, #tpu.memory_space<vmem>>, vector<1x64x128xf32>
    %130 = vector.shape_cast %129 : vector<1x64x128xf32> to vector<64x128xf32>
    %cst_114 = arith.constant dense<0.000000e+00> : vector<64x128xf32>
    %131 = tpu.matmul %128, %130, %cst_114 {dimension_numbers = #tpu.dot_dimension_numbers<[1], [0], [0], [1], [0, 0, 1, 1], [], []>} : vector<64x64xf32>, vector<64x128xf32>, vector<64x128xf32> -> vector<64x128xf32>
    %132 = arith.addf %126, %131 : vector<64x128xf32>
    %c1_115 = arith.constant 1 : index
    %c2_116 = arith.constant 2 : index
    %c0_117 = arith.constant 0 : index
    %133 = vector.load %arg14[%c1_115, %c2_116, %c0_117] : memref<10x10x64xf32, #tpu.memory_space<vmem>>, vector<8x8x64xf32>
    %134 = vector.shape_cast %133 : vector<8x8x64xf32> to vector<64x64xf32>
    %c5_118 = arith.constant 5 : index
    %c0_119 = arith.constant 0 : index
    %c0_120 = arith.constant 0 : index
    %135 = vector.load %arg6[%c5_118, %c0_119, %c0_120] : memref<9x64x128xf32, #tpu.memory_space<vmem>>, vector<1x64x128xf32>
    %136 = vector.shape_cast %135 : vector<1x64x128xf32> to vector<64x128xf32>
    %cst_121 = arith.constant dense<0.000000e+00> : vector<64x128xf32>
    %137 = tpu.matmul %134, %136, %cst_121 {dimension_numbers = #tpu.dot_dimension_numbers<[1], [0], [0], [1], [0, 0, 1, 1], [], []>} : vector<64x64xf32>, vector<64x128xf32>, vector<64x128xf32> -> vector<64x128xf32>
    %138 = arith.addf %132, %137 : vector<64x128xf32>
    %c2_122 = arith.constant 2 : index
    %c0_123 = arith.constant 0 : index
    %c0_124 = arith.constant 0 : index
    %139 = vector.load %arg14[%c2_122, %c0_123, %c0_124] : memref<10x10x64xf32, #tpu.memory_space<vmem>>, vector<8x8x64xf32>
    %140 = vector.shape_cast %139 : vector<8x8x64xf32> to vector<64x64xf32>
    %c6_125 = arith.constant 6 : index
    %c0_126 = arith.constant 0 : index
    %c0_127 = arith.constant 0 : index
    %141 = vector.load %arg6[%c6_125, %c0_126, %c0_127] : memref<9x64x128xf32, #tpu.memory_space<vmem>>, vector<1x64x128xf32>
    %142 = vector.shape_cast %141 : vector<1x64x128xf32> to vector<64x128xf32>
    %cst_128 = arith.constant dense<0.000000e+00> : vector<64x128xf32>
    %143 = tpu.matmul %140, %142, %cst_128 {dimension_numbers = #tpu.dot_dimension_numbers<[1], [0], [0], [1], [0, 0, 1, 1], [], []>} : vector<64x64xf32>, vector<64x128xf32>, vector<64x128xf32> -> vector<64x128xf32>
    %144 = arith.addf %138, %143 : vector<64x128xf32>
    %c2_129 = arith.constant 2 : index
    %c1_130 = arith.constant 1 : index
    %c0_131 = arith.constant 0 : index
    %145 = vector.load %arg14[%c2_129, %c1_130, %c0_131] : memref<10x10x64xf32, #tpu.memory_space<vmem>>, vector<8x8x64xf32>
    %146 = vector.shape_cast %145 : vector<8x8x64xf32> to vector<64x64xf32>
    %c7_132 = arith.constant 7 : index
    %c0_133 = arith.constant 0 : index
    %c0_134 = arith.constant 0 : index
    %147 = vector.load %arg6[%c7_132, %c0_133, %c0_134] : memref<9x64x128xf32, #tpu.memory_space<vmem>>, vector<1x64x128xf32>
    %148 = vector.shape_cast %147 : vector<1x64x128xf32> to vector<64x128xf32>
    %cst_135 = arith.constant dense<0.000000e+00> : vector<64x128xf32>
    %149 = tpu.matmul %146, %148, %cst_135 {dimension_numbers = #tpu.dot_dimension_numbers<[1], [0], [0], [1], [0, 0, 1, 1], [], []>} : vector<64x64xf32>, vector<64x128xf32>, vector<64x128xf32> -> vector<64x128xf32>
    %150 = arith.addf %144, %149 : vector<64x128xf32>
    %c2_136 = arith.constant 2 : index
    %c2_137 = arith.constant 2 : index
    %c0_138 = arith.constant 0 : index
    %151 = vector.load %arg14[%c2_136, %c2_137, %c0_138] : memref<10x10x64xf32, #tpu.memory_space<vmem>>, vector<8x8x64xf32>
    %152 = vector.shape_cast %151 : vector<8x8x64xf32> to vector<64x64xf32>
    %c8_139 = arith.constant 8 : index
    %c0_140 = arith.constant 0 : index
    %c0_141 = arith.constant 0 : index
    %153 = vector.load %arg6[%c8_139, %c0_140, %c0_141] : memref<9x64x128xf32, #tpu.memory_space<vmem>>, vector<1x64x128xf32>
    %154 = vector.shape_cast %153 : vector<1x64x128xf32> to vector<64x128xf32>
    %cst_142 = arith.constant dense<0.000000e+00> : vector<64x128xf32>
    %155 = tpu.matmul %152, %154, %cst_142 {dimension_numbers = #tpu.dot_dimension_numbers<[1], [0], [0], [1], [0, 0, 1, 1], [], []>} : vector<64x64xf32>, vector<64x128xf32>, vector<64x128xf32> -> vector<64x128xf32>
    %156 = arith.addf %150, %155 : vector<64x128xf32>
    %c0_143 = arith.constant 0 : index
    %c0_144 = arith.constant 0 : index
    %157 = vector.load %arg7[%c0_143, %c0_144] : memref<1x128xf32, #tpu.memory_space<vmem>>, vector<1x128xf32>
    %158 = vector.broadcast %157 : vector<1x128xf32> to vector<64x128xf32>
    %159 = arith.addf %156, %158 : vector<64x128xf32>
    %cst_145 = arith.constant 0.000000e+00 : f32
    %160 = vector.broadcast %cst_145 : f32 to vector<64x128xf32>
    %161 = arith.maximumf %159, %160 : vector<64x128xf32>
    %162 = vector.shape_cast %161 : vector<64x128xf32> to vector<4x16x128xf32>
    %163 = vector.extract_strided_slice %162 {offsets = [0, 0, 0], sizes = [4, 8, 128], strides = [1, 1, 1]} : vector<4x16x128xf32> to vector<4x8x128xf32>
    %164 = vector.extract_strided_slice %162 {offsets = [0, 8, 0], sizes = [4, 8, 128], strides = [1, 1, 1]} : vector<4x16x128xf32> to vector<4x8x128xf32>
    %165 = arith.maximumf %163, %164 : vector<4x8x128xf32>
    %166 = vector.extract_strided_slice %165 {offsets = [0, 0, 0], sizes = [4, 1, 128], strides = [1, 1, 1]} : vector<4x8x128xf32> to vector<4x1x128xf32>
    %167 = vector.extract_strided_slice %165 {offsets = [0, 1, 0], sizes = [4, 1, 128], strides = [1, 1, 1]} : vector<4x8x128xf32> to vector<4x1x128xf32>
    %168 = arith.maximumf %166, %167 : vector<4x1x128xf32>
    %169 = vector.extract_strided_slice %165 {offsets = [0, 2, 0], sizes = [4, 1, 128], strides = [1, 1, 1]} : vector<4x8x128xf32> to vector<4x1x128xf32>
    %170 = vector.extract_strided_slice %165 {offsets = [0, 3, 0], sizes = [4, 1, 128], strides = [1, 1, 1]} : vector<4x8x128xf32> to vector<4x1x128xf32>
    %171 = arith.maximumf %169, %170 : vector<4x1x128xf32>
    %172 = arith.addf %168, %171 : vector<4x1x128xf32>
    %173 = vector.extract_strided_slice %165 {offsets = [0, 4, 0], sizes = [4, 1, 128], strides = [1, 1, 1]} : vector<4x8x128xf32> to vector<4x1x128xf32>
    %174 = vector.extract_strided_slice %165 {offsets = [0, 5, 0], sizes = [4, 1, 128], strides = [1, 1, 1]} : vector<4x8x128xf32> to vector<4x1x128xf32>
    %175 = arith.maximumf %173, %174 : vector<4x1x128xf32>
    %176 = arith.addf %172, %175 : vector<4x1x128xf32>
    %177 = vector.extract_strided_slice %165 {offsets = [0, 6, 0], sizes = [4, 1, 128], strides = [1, 1, 1]} : vector<4x8x128xf32> to vector<4x1x128xf32>
    %178 = vector.extract_strided_slice %165 {offsets = [0, 7, 0], sizes = [4, 1, 128], strides = [1, 1, 1]} : vector<4x8x128xf32> to vector<4x1x128xf32>
    %179 = arith.maximumf %177, %178 : vector<4x1x128xf32>
    %180 = arith.addf %176, %179 : vector<4x1x128xf32>
    %cst_146 = arith.constant dense<0.000000e+00> : vector<1x128xf32>
    %181 = vector.multi_reduction <add>, %180, %cst_146 [0] : vector<4x1x128xf32> to vector<1x128xf32>
    %cst_147 = arith.constant 6.250000e-02 : f32
    %182 = vector.broadcast %cst_147 : f32 to vector<1x128xf32>
    %183 = arith.mulf %181, %182 : vector<1x128xf32>
    %c0_148 = arith.constant 0 : index
    %c0_149 = arith.constant 0 : index
    %184 = vector.load %arg8[%c0_148, %c0_149] : memref<128x64xf32, #tpu.memory_space<vmem>>, vector<128x64xf32>
    %cst_150 = arith.constant dense<0.000000e+00> : vector<1x64xf32>
    %185 = tpu.matmul %183, %184, %cst_150 {dimension_numbers = #tpu.dot_dimension_numbers<[1], [0], [0], [1], [0, 0, 1, 1], [], []>} : vector<1x128xf32>, vector<128x64xf32>, vector<1x64xf32> -> vector<1x64xf32>
    %c0_151 = arith.constant 0 : index
    %c0_152 = arith.constant 0 : index
    %186 = vector.load %arg9[%c0_151, %c0_152] : memref<1x64xf32, #tpu.memory_space<vmem>>, vector<1x64xf32>
    %187 = arith.addf %185, %186 : vector<1x64xf32>
    %cst_153 = arith.constant 0.000000e+00 : f32
    %188 = vector.broadcast %cst_153 : f32 to vector<1x64xf32>
    %189 = arith.maximumf %187, %188 : vector<1x64xf32>
    %c0_154 = arith.constant 0 : index
    %c0_155 = arith.constant 0 : index
    %190 = vector.load %arg10[%c0_154, %c0_155] : memref<64x10xf32, #tpu.memory_space<vmem>>, vector<64x10xf32>
    %cst_156 = arith.constant dense<0.000000e+00> : vector<1x10xf32>
    %191 = tpu.matmul %189, %190, %cst_156 {dimension_numbers = #tpu.dot_dimension_numbers<[1], [0], [0], [1], [0, 0, 1, 1], [], []>} : vector<1x64xf32>, vector<64x10xf32>, vector<1x10xf32> -> vector<1x10xf32>
    %c0_157 = arith.constant 0 : index
    %c0_158 = arith.constant 0 : index
    %192 = vector.load %arg11[%c0_157, %c0_158] : memref<1x10xf32, #tpu.memory_space<vmem>>, vector<1x10xf32>
    %193 = arith.addf %191, %192 : vector<1x10xf32>
    %194 = vector.shape_cast %193 : vector<1x10xf32> to vector<1x1x10xf32>
    %c0_159 = arith.constant 0 : index
    %c0_160 = arith.constant 0 : index
    %c0_161 = arith.constant 0 : index
    %195 = vector.load %arg12[%c0_159, %c0_160, %c0_161] : memref<1x1x10xf32, #tpu.memory_space<vmem>>, vector<1x1x10xf32>
    tpu.vector_store %arg12[%c0_159, %c0_160, %c0_161], %194 {strides = array<i32>} : memref<1x1x10xf32, #tpu.memory_space<vmem>>, vector<1x1x10xf32>,
    return
  }
  func.func @transform_0(%arg0: i32) -> (i32, i32, i32, i32) {
    %c0_i32 = arith.constant 0 : i32
    %c0_i32_0 = arith.constant 0 : i32
    %c0_i32_1 = arith.constant 0 : i32
    %c0_i32_2 = arith.constant 0 : i32
    return %arg0, %c0_i32, %c0_i32_0, %c0_i32_1 : i32, i32, i32, i32
  }
  func.func @transform_1(%arg0: i32) -> (i32, i32) {
    %c0_i32 = arith.constant 0 : i32
    %c0_i32_0 = arith.constant 0 : i32
    %c0_i32_1 = arith.constant 0 : i32
    return %c0_i32, %c0_i32_0 : i32, i32
  }
  func.func @transform_2(%arg0: i32) -> (i32, i32) {
    %c0_i32 = arith.constant 0 : i32
    %c0_i32_0 = arith.constant 0 : i32
    %c0_i32_1 = arith.constant 0 : i32
    return %c0_i32, %c0_i32_0 : i32, i32
  }
  func.func @transform_3(%arg0: i32) -> (i32, i32, i32) {
    %c0_i32 = arith.constant 0 : i32
    %c0_i32_0 = arith.constant 0 : i32
    %c0_i32_1 = arith.constant 0 : i32
    %c0_i32_2 = arith.constant 0 : i32
    return %c0_i32, %c0_i32_0, %c0_i32_1 : i32, i32, i32
  }
  func.func @transform_4(%arg0: i32) -> (i32, i32) {
    %c0_i32 = arith.constant 0 : i32
    %c0_i32_0 = arith.constant 0 : i32
    %c0_i32_1 = arith.constant 0 : i32
    return %c0_i32, %c0_i32_0 : i32, i32
  }
  func.func @transform_5(%arg0: i32) -> (i32, i32, i32) {
    %c0_i32 = arith.constant 0 : i32
    %c0_i32_0 = arith.constant 0 : i32
    %c0_i32_1 = arith.constant 0 : i32
    %c0_i32_2 = arith.constant 0 : i32
    return %c0_i32, %c0_i32_0, %c0_i32_1 : i32, i32, i32
  }
  func.func @transform_6(%arg0: i32) -> (i32, i32) {
    %c0_i32 = arith.constant 0 : i32
    %c0_i32_0 = arith.constant 0 : i32
    %c0_i32_1 = arith.constant 0 : i32
    return %c0_i32, %c0_i32_0 : i32, i32
  }
  func.func @transform_7(%arg0: i32) -> (i32, i32) {
    %c0_i32 = arith.constant 0 : i32
    %c0_i32_0 = arith.constant 0 : i32
    %c0_i32_1 = arith.constant 0 : i32
    return %c0_i32, %c0_i32_0 : i32, i32
  }
  func.func @transform_8(%arg0: i32) -> (i32, i32) {
    %c0_i32 = arith.constant 0 : i32
    %c0_i32_0 = arith.constant 0 : i32
    %c0_i32_1 = arith.constant 0 : i32
    return %c0_i32, %c0_i32_0 : i32, i32
  }
  func.func @transform_9(%arg0: i32) -> (i32, i32) {
    %c0_i32 = arith.constant 0 : i32
    %c0_i32_0 = arith.constant 0 : i32
    %c0_i32_1 = arith.constant 0 : i32
    return %c0_i32, %c0_i32_0 : i32, i32
  }
  func.func @transform_10(%arg0: i32) -> (i32, i32) {
    %c0_i32 = arith.constant 0 : i32
    %c0_i32_0 = arith.constant 0 : i32
    %c0_i32_1 = arith.constant 0 : i32
    return %c0_i32, %c0_i32_0 : i32, i32
  }
  func.func @transform_11(%arg0: i32) -> (i32, i32, i32) {
    %c0_i32 = arith.constant 0 : i32
    %c0_i32_0 = arith.constant 0 : i32
    %c0_i32_1 = arith.constant 0 : i32
    return %arg0, %c0_i32, %c0_i32_0 : i32, i32, i32
  }
}

</mosaic_0001>

<bundles_post_ra>
// kernel: forward.1
= control target key start
LH: loop header
LB: loop body
LE: loop exit
PB: predicated region body
PF: predicated region fallthrough
CT: control target
= control target key end

     0   :  { %s7425_s0 = inlined_call_operand.vmem [shape: f32[2,16,16,36], index: 0, kind: input, shape index: {}]   ;;  %s7426_s1 = inlined_call_operand.vmem [shape: f32[36,32], index: 1, kind: input, shape index: {}]   ;;  %s7427_s2 = inlined_call_operand.vmem [shape: f32[1,32], index: 2, kind: input, shape index: {}]   ;;  %s7428_s3 = inlined_call_operand.vmem [shape: f32[9,32,64], index: 3, kind: input, shape index: {}]   ;;  %s7429_s4 = inlined_call_operand.vmem [shape: f32[1,64], index: 4, kind: input, shape index: {}]   ;;  %s7430_s5 = inlined_call_operand.vmem [shape: f32[9,64,128], index: 5, kind: input, shape index: {}]   ;;  %s7431_s6 = inlined_call_operand.vmem [shape: f32[1,128], index: 6, kind: input, shape index: {}]   ;;  %s7432_s7 = inlined_call_operand.vmem [shape: f32[128,64], index: 7, kind: input, shape index: {}]   ;;  %s7433_s8 = inlined_call_operand.vmem [shape: f32[1,64], index: 8, kind: input, shape index: {}]   ;;  %s7434_s9 = inlined_call_operand.vmem [shape: f32[64,10], index: 9, kind: input, shape index: {}]   ;;  %s7435_s10 = inlined_call_operand.vmem [shape: f32[1,10], index: 10, kind: input, shape index: {}]   ;;  %s7436_s11 = inlined_call_operand.hbm [shape: f32[2,1,10], index: 11, kind: output, shape index: {}]  }
   0x1   :  { %7475 = sst [smem:[#allocation61_spill]] %s7425_s0 }
   0x2   :  { %7476 = sst [smem:[#allocation62_spill]] %s7426_s1 }
   0x3   :  { %16 = vsyncpa [#allocation5], 0 }
   0x4   :  { %18 = vsyncpa [#allocation5 + $0x1], 0  ;;  %s5266_s17 = smov 0   ;;  %s5268_s18 = smov 0  }
   0x5   :  { %s5270_s19 = smov 0   ;;  %s5272_s20 = smov 0  }
   0x6 LB: > { %s5287_s21 = sadd.s32 4294967295, %s5203_s20   ;;  %s4589_s22 = sadd.s32 4294967294, %s5203_s20   ;;  %s5203_s20 = sphi %s5272_s20, %s7593_s20   ;;  %s5199_s19 = sphi %s5270_s19, %s7592_s19   ;;  %s5195_s18 = sphi %s5268_s18, %s7591_s18   ;;  %s5191_s17 = sphi %s5266_s17, %s7590_s17  }
   0x7   : > { %s5291_s23 = sadd.s32 1, %s5203_s20   ;;  %s267_s24 = sadd.s32 1, %s5199_s19 }
   0x8   : > { %s264_s25 = ssub.s32 %s5203_s20, %s5291_s23  ;;  %p277_p0 = scmp.ne.s32.totalorder %s5199_s19, %s5195_s18 }
   0x9   : > { %p265_p1 = scmp.eq.s32.totalorder %s264_s25, 0  ;;  %p278_p2 = scmp.eq.s32.totalorder %s5287_s21, 1 }
   0xa   : > { %p283_p3 = scmp.ne.s32.totalorder %s5195_s18, %s5191_s17  ;;  %p284_p4 = scmp.eq.s32.totalorder %s4589_s22, 1 }
   0xb   : > { %s5302_s26 = scalar_select %p265_p1, %s5199_s19, %s267_s24  }
   0xc   : > { %p5304_p5 = por %p278_p2, %p277_p0  ;;  %p5308_p6 = por %p284_p4, %p283_p3 }
   0xd   : > { %p4592_p7 = scmp.ge.s32.totalorder %s5203_s20, 1  ;;  %p340_p8 = scmp.lt.s32.totalorder %s5203_s20, 3 }
   0xf   : > { %p341_p9 = pnand %p4592_p7, %p340_p8 }
  0x11   : > { %344 = sbr.rel (%p341_p9) target bundleno = 1676 (0x68c), region = 64 }
  0x16   : > { %s7479_s1 = sld [smem:[#allocation62_spill]]  ;;  %vm600_vm0 = vcmask 1043456   ;;  %p379_p10 = scmp.lt.s32.totalorder %s5287_s21, 1  ;;  %vm503_vm1 = vcmask 293888   ;;  %v817_v17 = vld [vmem:[%s7428_s3 + $0x18] sm:$0xff]  ;;  %v816_v18 = vld [vmem:[%s7428_s3 + $0x10] sm:$0xff] }
  0x17   : > { %s7480_s0 = sld [smem:[#allocation61_spill]]  ;;  %v815_v20 = vld [vmem:[%s7428_s3 + $0x8] sm:$0xff]  ;;  %v814_v21 = vld [vmem:[%s7428_s3] sm:$0xff]  ;;  %vm384_vm2 = vcmask 261120   ;;  %v7437_v22 = vmov 0.0   ;;  %v4771_v24 = vld [vmem:[%s7428_s3 + $0x98] sm:$0xff]  ;;  %s4530_s15 = scalar_lea.hbm %s7436_s11, %s5287_s21 }
  0x18   : > { %s380_s16 = scalar_select %p379_p10, %s5287_s21, 1  ;;  %385 = vst.msk [vmem:[#allocation2] sm:$0xff] %vm384_vm2, %v7437_v22  ;;  %v4699_v25 = vld [vmem:[%s7428_s3 + $0x58] sm:$0xff]  ;;  %v4698_v27 = vld [vmem:[%s7428_s3 + $0x50] sm:$0xff]  ;;  %v4697_v29 = vld [vmem:[%s7428_s3 + $0x48] sm:$0xff]  ;;  %vm387_vm3 = vcmask 254976  }
  0x19   : > { %386 = vst.msk [vmem:[#allocation2 + $0x8] sm:$0xff] %vm384_vm2, %v7437_v22  ;;  %1418 = vmatpush.msra.mxu3 %v4699_v25  ;;  %v4696_v30 = vld [vmem:[%s7428_s3 + $0x40] sm:$0xff]  ;;  %v4631_v37 = vld [vmem:[%s7428_s3 + $0x38] sm:$0xff]  ;;  %v4630_v38 = vld [vmem:[%s7428_s3 + $0x30] sm:$0xff]  ;;  %vm440_vm4 = vcmask 523264   ;;  %vm442_vm5 = vcmask 517120  }
  0x1a   : > { %s5087_s25 = sshll.u32 %s380_s16, 8  ;;  %389 = vst.msk [vmem:[#allocation2 + $0x18] sm:$0xff] %vm384_vm2, %v7437_v22  ;;  %v5487_v36 = vld [vmem:[%s7427_s2] ss:$0 sm:$0xff]  ;;  %5093 = vmatpush.msra.mxu1 %v4631_v37  ;;  %v4629_v43 = vld [vmem:[%s7428_s3 + $0x28] sm:$0xff]  ;;  %v4735_v51 = vld [vmem:[%s7428_s3 + $0x78] sm:$0xff] }
  0x1b   : > { %390 = vst.msk [vmem:[#allocation2 + $0x20] sm:$0xff] %vm384_vm2, %v7437_v22  ;;  %1419 = vmatpush.msra.mxu3 %v4698_v27  ;;  %v4628_v45 = vld [vmem:[%s7428_s3 + $0x20] sm:$0xff]  ;;  %vm3496_vm6 = vcmask 1040384   ;;  %vm3505_vm7 = vcmask 1041408   ;;  %vm3514_vm8 = vcmask 1042432   ;;  %vm3531_vm9 = vcmask 1044480  }
  0x1c   : > { %v498_v0 = vld [vmem:[%s7479_s1 + $0x20] sm:$0xf]  ;;  %v497_v1 = vld [vmem:[%s7479_s1 + $0x18] sm:$0xff]  ;;  %v496_v2 = vld [vmem:[%s7479_s1 + $0x10] sm:$0xff]  ;;  %392 = vst.msk [vmem:[#allocation2 + $0x30] sm:$0xff] %vm384_vm2, %v7437_v22  ;;  %5094 = vmatpush.msra.mxu1 %v4630_v38  ;;  %vm3540_vm10 = vcmask 1045504  }
  0x1d   : > { %4595 = vmatpush.msk.msra.mxu0 %vm600_vm0, %v498_v0  ;;  %5088 = vmatpush.msk.msra.mxu2 %vm600_vm0, %v498_v0  ;;  %v495_v3 = vld [vmem:[%s7479_s1 + $0x8] sm:$0xff]  ;;  %s5333_s12 = scalar_lea.vmem %s7480_s0, %s5087_s25  ;;  %v494_v4 = vld [vmem:[%s7479_s1] sm:$0xff]  ;;  %393 = vst.msk [vmem:[#allocation2 + $0x38] sm:$0xff] %vm384_vm2, %v7437_v22  ;;  %v4770_v0 = vld [vmem:[%s7428_s3 + $0x90] sm:$0xff]  ;;  %vm3549_vm11 = vcmask 1046528   ;;  %s377_s13 = sand.u32 1, %s5195_s18  }
  0x1e   : > { %v462_v5 = vld [vmem:[%s5333_s12] sm:$0xff]  ;;  %v463_v6 = vld [vmem:[%s5333_s12 + $0x8] sm:$0xff]  ;;  %v464_v7 = vld [vmem:[%s5333_s12 + $0x10] sm:$0xff]  ;;  %395 = vst.msk [vmem:[#allocation2 + $0x48] sm:$0xff] %vm384_vm2, %v7437_v22  ;;  %1420 = vmatpush.msra.mxu3 %v4697_v29  ;;  %5095 = vmatpush.msra.mxu1 %v4629_v43  ;;  %s378_s24 = scalar_lea.vmem [#allocation4], %s377_s13  ;;  %s4534_s0 = sshll.u32 %s4530_s15, 4  ;;  %s4535_s0 = int_to_ptr.hbm [resolvable:$true] %s4534_s0 }
  0x1f   : > { %616 = vmatpush.msra.mxu0 %v497_v1  ;;  %5089 = vmatpush.msra.mxu2 %v497_v1  ;;  %v465_v8 = vld [vmem:[%s5333_s12 + $0x18] sm:$0xff]  ;;  %v466_v9 = vld [vmem:[%s5333_s12 + $0x20] sm:$0xff]  ;;  %v467_v10 = vld [vmem:[%s5333_s12 + $0x28] sm:$0xff]  ;;  %396 = vst.msk [vmem:[#allocation2 + $0x50] sm:$0xff] %vm384_vm2, %v7437_v22  ;;  %s4532_s25 = sshll.u32 %s378_s24, 4  ;;  %vm4519_vm12 = vcmask 73728   ;;  %s4533_s25 = int_to_ptr.vmem [resolvable:$true] %s4532_s25 }
  0x20   : > { %v468_v11 = vld [vmem:[%s5333_s12 + $0x30] sm:$0xff]  ;;  %v469_v12 = vld [vmem:[%s5333_s12 + $0x38] sm:$0xff]  ;;  %v470_v13 = vld [vmem:[%s5333_s12 + $0x40] sm:$0xff]  ;;  %398 = vst.msk [vmem:[#allocation2 + $0x60] sm:$0xff] %vm384_vm2, %v7437_v22  ;;  %1421 = vmatpush.msra.mxu3 %v4696_v30  ;;  %5096 = vmatpush.msra.mxu1 %v4628_v45  ;;  %s4522_s29 = scalar_lea.sflag [#allocation5], %s377_s13  ;;  %s5155_s30 = sshra.s32 %s4535_s0, 4  ;;  %s5156_s30 = int_to_ptr.hbm [resolvable:$true] %s5155_s30 }
  0x21   : > { %617 = vmatpush.msra.mxu0 %v496_v2  ;;  %5090 = vmatpush.msra.mxu2 %v496_v2  ;;  %v492_v14 = vld [vmem:[%s5333_s12 + $0xf0] sm:$0xff]  ;;  %v471_v15 = vld [vmem:[%s5333_s12 + $0x48] sm:$0xff]  ;;  %v493_v16 = vld [vmem:[%s5333_s12 + $0xf8] sm:$0xff]  ;;  %399 = vst.msk [vmem:[#allocation2 + $0x68] sm:$0xff] %vm384_vm2, %v7437_v22  ;;  %s5157_s1 = scalar_lea.hbm %s5156_s30, 1  ;;  %p5162_p0 = scmp.lt.s32.totalorder %s5156_s30, %s7436_s11 }
  0x22   : > { %v472_v19 = vld [vmem:[%s5333_s12 + $0x50] sm:$0xff]  ;;  %v473_v23 = vld [vmem:[%s5333_s12 + $0x58] sm:$0xff]  ;;  %v782_v26 = vld [vmem:[#allocation2] sm:$0xff]  ;;  %401 = vst.msk [vmem:[#allocation2 + $0x78] sm:$0xff] %vm384_vm2, %v7437_v22  ;;  %1696 = vmatpush.msrb.mxu1 %v4735_v51  ;;  %p5158_p11 = scmp.ne.s32.totalorder %s5156_s30, %s5157_s1 }
  0x23   : > { %618 = vmatpush.msra.mxu0 %v495_v3  ;;  %5091 = vmatpush.msra.mxu2 %v495_v3  ;;  %v474_v28 = vld [vmem:[%s5333_s12 + $0x60] sm:$0xff]  ;;  %402 = vst.msk [vmem:[#allocation2 + $0x80] sm:$0xff] %vm384_vm2, %v7437_v22  ;;  %v783_v31 = vld [vmem:[#allocation2 + $0x8] sm:$0xff]  ;;  %v476_v34 = vld [vmem:[%s5333_s12 + $0x70] sm:$0xff] }
  0x24   : > { %404 = vst.msk [vmem:[#allocation2 + $0x90] sm:$0xff] %vm384_vm2, %v7437_v22  ;;  %v1273_v32 = vld [vmem:[#allocation2 + $0x2] sm:$0xff]  ;;  %v477_v35 = vld [vmem:[%s5333_s12 + $0x78] sm:$0xff]  ;;  %v480_v53 = vld [vmem:[%s5333_s12 + $0x90] sm:$0xff]  ;;  %p5159_p12 = pnand %p5158_p11, %p5304_p5 }
  0x25   : > { %619 = vmatpush.msra.mxu0 %v494_v4  ;;  %5092 = vmatpush.msra.mxu2 %v494_v4  ;;  %405 = vst.msk [vmem:[#allocation2 + $0x98] sm:$0xff] %vm384_vm2, %v7437_v22  ;;  %v475_v33 = vld [vmem:[%s5333_s12 + $0x68] sm:$0xff]  ;;  %v478_v40 = vld [vmem:[%s5333_s12 + $0x80] sm:$0xff]  ;;  %v481_v59 = vld [vmem:[%s5333_s12 + $0x98] sm:$0xff] }
  0x26   : > { %4596 = vmatmul.msk.f32.vlgmr.msra.gmra.mxu0 %vm503_vm1, %v462_v5  ;;  %4626 = vmatmul.msk.f32.vlgmr.msra.gmra.mxu2 %vm503_vm1, %v492_v14  ;;  %407 = vst.msk [vmem:[#allocation2 + $0xa8] sm:$0xff] %vm384_vm2, %v7437_v22  ;;  %v479_v47 = vld [vmem:[%s5333_s12 + $0x88] sm:$0xff]  ;;  %v482_v2 = vld [vmem:[%s5333_s12 + $0xa0] sm:$0xff]  ;;  %v4734_v30 = vld [vmem:[%s7428_s3 + $0x70] sm:$0xff]  ;;  %p5160_p13 = pneg %p5159_p12 }
  0x27   : > { %1172 = vmatpush.msrb.mxu2 %v817_v17  ;;  %408 = vst.msk [vmem:[#allocation2 + $0xb0] sm:$0xff] %vm384_vm2, %v7437_v22  ;;  %4700 = vmatmul.msk.f32.vlgmr.msra.gmra.mxu3 %vm384_vm2, %v1273_v32  ;;  %v486_v32 = vld [vmem:[%s5333_s12 + $0xc0] sm:$0xff]  ;;  %v488_v51 = vld [vmem:[%s5333_s12 + $0xd0] sm:$0xff] }
  0x28   : > { %410 = vst.msk [vmem:[#allocation2 + $0xc0] sm:$0xff] %vm384_vm2, %v7437_v22  ;;  %963 = vmatpush.msrb.mxu0 %v4631_v37  ;;  %1697 = vmatpush.msrb.mxu1 %v4734_v30 }
  0x29   : > { %1173 = vmatpush.msrb.mxu2 %v816_v18  ;;  %411 = vst.msk [vmem:[#allocation2 + $0xc8] sm:$0xff] %vm384_vm2, %v7437_v22 }
  0x2a   : > { %413 = vst.msk [vmem:[#allocation2 + $0xd8] sm:$0xff] %vm384_vm2, %v7437_v22  ;;  %964 = vmatpush.msrb.mxu0 %v4630_v38 }
  0x2b   : > { %1174 = vmatpush.msrb.mxu2 %v815_v20  ;;  %414 = vst.msk [vmem:[#allocation2 + $0xe0] sm:$0xff] %vm384_vm2, %v7437_v22 }
  0x2c   : > { %416 = vst.msk [vmem:[#allocation2 + $0xf0] sm:$0xff] %vm384_vm2, %v7437_v22  ;;  %965 = vmatpush.msrb.mxu0 %v4629_v43 }
  0x2d   : > { %1175 = vmatpush.msrb.mxu2 %v814_v21  ;;  %417 = vst.msk [vmem:[#allocation2 + $0xf8] sm:$0xff] %vm384_vm2, %v7437_v22 }
  0x2e   : > { %4597 = vmatmul.msk.f32.gmra.mxu0 %vm503_vm1, %v463_v6  ;;  %4627 = vmatmul.msk.f32.gmra.mxu2 %vm503_vm1, %v493_v16  ;;  %419 = vst.msk [vmem:[#allocation2 + $0x108] sm:$0xff] %vm384_vm2, %v7437_v22  ;;  %v484_v16 = vld [vmem:[%s5333_s12 + $0xb0] sm:$0xff] }
  0x2f   : > { %1974 = vmatpush.msra.mxu2 %v4771_v24  ;;  %420 = vst.msk [vmem:[#allocation2 + $0x110] sm:$0xff] %vm384_vm2, %v7437_v22  ;;  %966 = vmatpush.msrb.mxu0 %v4628_v45  ;;  %v485_v24 = vld [vmem:[%s5333_s12 + $0xb8] sm:$0xff] }
  0x30   : > { %422 = vst.msk [vmem:[#allocation2 + $0x120] sm:$0xff] %vm384_vm2, %v7437_v22 }
  0x31   : > { %423 = vst.msk [vmem:[#allocation2 + $0x128] sm:$0xff] %vm384_vm2, %v7437_v22  ;;  %1975 = vmatpush.msra.mxu2 %v4770_v0 }
  0x32   : > { %425 = vst.msk [vmem:[#allocation2 + $0x138] sm:$0xff] %vm384_vm2, %v7437_v22 }
  0x33   : > { %426 = vst.msk [vmem:[#allocation2 + $0x140] sm:$0xff] %vm384_vm2, %v7437_v22 }
  0x34   : > { %428 = vst.msk [vmem:[#allocation2 + $0x150] sm:$0xff] %vm384_vm2, %v7437_v22 }
  0x35   : > { %429 = vst.msk [vmem:[#allocation2 + $0x158] sm:$0xff] %vm384_vm2, %v7437_v22 }
  0x36   : > { %4598 = vmatmul.msk.f32.gmra.mxu0 %vm503_vm1, %v464_v7  ;;  %4664 = vmatmul.msk.f32.vlgmr.msrb.gmra.mxu2 %vm384_vm2, %v782_v26  ;;  %431 = vst.msk [vmem:[#allocation2 + $0x168] sm:$0xff] %vm384_vm2, %v7437_v22 }
  0x37   : > { %432 = vst.msk [vmem:[#allocation2 + $0x170] sm:$0xff] %vm384_vm2, %v7437_v22 }
  0x38   : > { %434 = vst.msk [vmem:[#allocation2 + $0x180] sm:$0xff] %vm384_vm2, %v7437_v22 }
  0x39   : > { %435 = vst.msk [vmem:[#allocation2 + $0x188] sm:$0xff] %vm384_vm2, %v7437_v22 }
  0x3a   : > { %437 = vst.msk [vmem:[#allocation2 + $0x198] sm:$0xff] %vm384_vm2, %v7437_v22 }
  0x3b   : > { %438 = vst.msk [vmem:[#allocation2 + $0x1a0] sm:$0xff] %vm384_vm2, %v7437_v22 }
  0x3c   : > { %391 = vst.msk [vmem:[#allocation2 + $0x28] sm:$0x3] %vm387_vm3, %v7437_v22 }
  0x3d   : > { %388 = vst.msk [vmem:[#allocation2 + $0x10] sm:$0x3] %vm387_vm3, %v7437_v22 }
  0x3e   : > { %4599 = vmatmul.msk.f32.gmra.mxu0 %vm503_vm1, %v465_v8  ;;  %4665 = vmatmul.msk.f32.gmra.mxu2 %vm384_vm2, %v783_v31  ;;  %394 = vst.msk [vmem:[#allocation2 + $0x40] sm:$0x3] %vm387_vm3, %v7437_v22 }
  0x3f   : > { %397 = vst.msk [vmem:[#allocation2 + $0x58] sm:$0x3] %vm387_vm3, %v7437_v22 }
  0x40   : > { %400 = vst.msk [vmem:[#allocation2 + $0x70] sm:$0x3] %vm387_vm3, %v7437_v22 }
  0x41   : > { %403 = vst.msk [vmem:[#allocation2 + $0x88] sm:$0x3] %vm387_vm3, %v7437_v22 }
  0x42   : > { %406 = vst.msk [vmem:[#allocation2 + $0xa0] sm:$0x3] %vm387_vm3, %v7437_v22 }
  0x43   : > { %409 = vst.msk [vmem:[#allocation2 + $0xb8] sm:$0x3] %vm387_vm3, %v7437_v22 }
  0x44   : > { %412 = vst.msk [vmem:[#allocation2 + $0xd0] sm:$0x3] %vm387_vm3, %v7437_v22  ;;  %v1274_v42 = vld [vmem:[#allocation2 + $0xa] sm:$0xff] }
  0x45   : > { %415 = vst.msk [vmem:[#allocation2 + $0xe8] sm:$0x3] %vm387_vm3, %v7437_v22  ;;  %4701 = vmatmul.msk.f32.gmra.mxu3 %vm384_vm2, %v1274_v42 }
  0x46   : > { %4600 = vmatmul.msk.f32.gmra.mxu0 %vm503_vm1, %v466_v9  ;;  %418 = vst.msk [vmem:[#allocation2 + $0x100] sm:$0x3] %vm387_vm3, %v7437_v22  ;;  %v483_v9 = vld [vmem:[%s5333_s12 + $0xa8] sm:$0xff] }
  0x47   : > { %421 = vst.msk [vmem:[#allocation2 + $0x118] sm:$0x3] %vm387_vm3, %v7437_v22 }
  0x48   : > { %424 = vst.msk [vmem:[#allocation2 + $0x130] sm:$0x3] %vm387_vm3, %v7437_v22 }
  0x49   : > { %427 = vst.msk [vmem:[#allocation2 + $0x148] sm:$0x3] %vm387_vm3, %v7437_v22 }
  0x4a   : > { %430 = vst.msk [vmem:[#allocation2 + $0x160] sm:$0x3] %vm387_vm3, %v7437_v22 }
  0x4b   : > { %433 = vst.msk [vmem:[#allocation2 + $0x178] sm:$0x3] %vm387_vm3, %v7437_v22 }
  0x4c   : > { %436 = vst.msk [vmem:[#allocation2 + $0x190] sm:$0x3] %vm387_vm3, %v7437_v22 }
  0x4d   : > { %439 = vst.msk [vmem:[#allocation2 + $0x1a8] sm:$0x3] %vm387_vm3, %v7437_v22 }
  0x4e   : > { %4601 = vmatmul.msk.f32.gmra.mxu0 %vm503_vm1, %v467_v10 }
  0x56   : > { %4602 = vmatmul.msk.f32.gmra.mxu0 %vm503_vm1, %v468_v11 }
  0x5e   : > { %4603 = vmatmul.msk.f32.gmra.mxu0 %vm503_vm1, %v469_v12 }
  0x66   : > { %4604 = vmatmul.msk.f32.gmra.mxu0 %vm503_vm1, %v470_v13 }
  0x6e   : > { %4605 = vmatmul.msk.f32.gmra.mxu0 %vm503_vm1, %v471_v15 }
  0x76   : > { %4606 = vmatmul.msk.f32.gmra.mxu0 %vm503_vm1, %v472_v19 }
  0x7e   : > { %4607 = vmatmul.msk.f32.gmra.mxu0 %vm503_vm1, %v473_v23 }
  0x86   : > { %4608 = vmatmul.msk.f32.gmra.mxu0 %vm503_vm1, %v474_v28 }
  0x8e   : > { %4609 = vmatmul.msk.f32.gmra.mxu0 %vm503_vm1, %v475_v33 }
  0x96   : > { %4610 = vmatmul.msk.f32.gmra.mxu0 %vm503_vm1, %v476_v34 }
  0x9e   : > { %4611 = vmatmul.msk.f32.gmra.mxu0 %vm503_vm1, %v477_v35 }
  0xa3   : > { %v621_v39 = vpop.f32.mrf.mxu0 }
  0xa4   : > { %v622_v41 = vadd.f32 %v5487_v36, %v621_v39 }
  0xa6   : > { %v717_v44 = vmax.f32 %v622_v41, 0.0  ;;  %4612 = vmatmul.msk.f32.gmra.mxu0 %vm503_vm1, %v478_v40  ;;  %v487_v40 = vld [vmem:[%s5333_s12 + $0xc8] sm:$0xff] }
  0xa8   : > { %750 = vst.msk [vmem:[#allocation2 + $0x19] sm:$0xff] %vm384_vm2, %v717_v44 }
  0xa9   : > { %v711_v42 = vpop.f32.mrf.mxu2 }
  0xab   : > { %v624_v46 = vpop.f32.mrf.mxu0 }
  0xac   : > { %v625_v48 = vadd.f32 %v5487_v36, %v624_v46 }
  0xae   : > { %v718_v49 = vmax.f32 %v625_v48, 0.0  ;;  %4613 = vmatmul.msk.f32.gmra.mxu0 %vm503_vm1, %v479_v47  ;;  %v712_v47 = vadd.f32 %v5487_v36, %v711_v42 }
  0xaf   : > { %v5537_v50 = vld [vmem:[#allocation2 + $0x18] sm:$0xff] }
  0xb0   : > { %751 = vst.msk [vmem:[#allocation2 + $0x21] sm:$0xff] %vm384_vm2, %v718_v49  ;;  %4666 = vmatmul.msk.f32.gmra.mxu2 %vm384_vm2, %v5537_v50  ;;  %v747_v48 = vmax.f32 %v712_v47, 0.0 }
  0xb2   : > { %780 = vst.msk [vmem:[#allocation2 + $0x181] sm:$0xff] %vm384_vm2, %v747_v48 }
  0xb3   : > { %v627_v52 = vpop.f32.mrf.mxu0 }
  0xb4   : > { %v628_v54 = vadd.f32 %v5487_v36, %v627_v52 }
  0xb6   : > { %v719_v55 = vmax.f32 %v628_v54, 0.0  ;;  %4614 = vmatmul.msk.f32.gmra.mxu0 %vm503_vm1, %v480_v53  ;;  %v714_v53 = vpop.f32.mrf.mxu2 }
  0xb7   : > { %v5548_v56 = vld [vmem:[#allocation2 + $0x20] sm:$0xff]  ;;  %v715_v54 = vadd.f32 %v5487_v36, %v714_v53 }
  0xb8   : > { %v5550_v57 = vld [vmem:[#allocation2 + $0x1a] sm:$0xff]  ;;  %752 = vst.msk [vmem:[#allocation2 + $0x31] sm:$0xff] %vm384_vm2, %v719_v55  ;;  %4667 = vmatmul.msk.f32.gmra.mxu2 %vm384_vm2, %v5548_v56  ;;  %v5562_v63 = vld [vmem:[#allocation2 + $0x22] sm:$0xff] }
  0xb9   : > { %4702 = vmatmul.msk.f32.gmra.mxu3 %vm384_vm2, %v5550_v57 }
  0xbb   : > { %v630_v58 = vpop.f32.mrf.mxu0 }
  0xbc   : > { %v631_v60 = vadd.f32 %v5487_v36, %v630_v58 }
  0xbe   : > { %v720_v61 = vmax.f32 %v631_v60, 0.0  ;;  %4615 = vmatmul.msk.f32.gmra.mxu0 %vm503_vm1, %v481_v59 }
  0xbf   : > { %v5560_v62 = vld [vmem:[#allocation2 + $0x30] sm:$0xff] }
  0xc0   : > { %753 = vst.msk [vmem:[#allocation2 + $0x39] sm:$0xff] %vm384_vm2, %v720_v61  ;;  %4668 = vmatmul.msk.f32.gmra.mxu2 %vm384_vm2, %v5560_v62  ;;  %v748_v61 = vmax.f32 %v715_v54, 0.0  ;;  %v819_v54 = vld [vmem:[#allocation2 + $0x9] sm:$0xff] }
  0xc1   : > { %4703 = vmatmul.msk.f32.gmra.mxu3 %vm384_vm2, %v5562_v63 }
  0xc2   : > { %781 = vst.msk [vmem:[#allocation2 + $0x189] sm:$0xff] %vm384_vm2, %v748_v61 }
  0xc3   : > { %v633_v1 = vpop.f32.mrf.mxu0 }
  0xc4   : > { %v634_v3 = vadd.f32 %v5487_v36, %v633_v1  ;;  %v489_v1 = vld [vmem:[%s5333_s12 + $0xd8] sm:$0xff] }
  0xc6   : > { %v721_v4 = vmax.f32 %v634_v3, 0.0  ;;  %4616 = vmatmul.msk.f32.gmra.mxu0 %vm503_vm1, %v482_v2 }
  0xc7   : > { %v5575_v5 = vld [vmem:[#allocation2 + $0x39] sm:$0xff] }
  0xc8   : > { %v5577_v6 = vld [vmem:[#allocation2 + $0x38] sm:$0xff]  ;;  %754 = vst.msk [vmem:[#allocation2 + $0x49] sm:$0xff] %vm384_vm2, %v721_v4  ;;  %4637 = vmatmul.msk.f32.vlgmr.msra.gmra.mxu1 %vm384_vm2, %v5575_v5 }
  0xc9   : > { %v5579_v7 = vld [vmem:[#allocation2 + $0x32] sm:$0xff]  ;;  %4669 = vmatmul.msk.f32.gmra.mxu2 %vm384_vm2, %v5577_v6  ;;  %v5600_v14 = vld [vmem:[#allocation2 + $0x3a] sm:$0xff] }
  0xca   : > { %4704 = vmatmul.msk.f32.gmra.mxu3 %vm384_vm2, %v5579_v7 }
  0xcb   : > { %v636_v8 = vpop.f32.mrf.mxu0 }
  0xcc   : > { %v637_v10 = vadd.f32 %v5487_v36, %v636_v8 }
  0xce   : > { %v722_v11 = vmax.f32 %v637_v10, 0.0  ;;  %4617 = vmatmul.msk.f32.gmra.mxu0 %vm503_vm1, %v483_v9  ;;  %v4769_v10 = vld [vmem:[%s7428_s3 + $0x88] sm:$0xff] }
  0xcf   : > { %v5591_v12 = vld [vmem:[#allocation2 + $0x49] sm:$0xff]  ;;  %1976 = vmatpush.msra.mxu2 %v4769_v10  ;;  %v5778_v10 = vpop.f32.mrf.mxu2 }
  0xd0   : > { %v5593_v13 = vld [vmem:[#allocation2 + $0x48] sm:$0xff]  ;;  %755 = vst.msk [vmem:[#allocation2 + $0x51] sm:$0xff] %vm384_vm2, %v722_v11  ;;  %4638 = vmatmul.msk.f32.gmra.mxu1 %vm384_vm2, %v5591_v12 }
  0xd1   : > { %4670 = vmatmul.msk.f32.gmra.mxu2 %vm384_vm2, %v5593_v13  ;;  %7486 = vst [vmem:[#allocation12_spill] sm:$0xff] %v5778_v10 }
  0xd2   : > { %4705 = vmatmul.msk.f32.gmra.mxu3 %vm384_vm2, %v5600_v14 }
  0xd3   : > { %v639_v15 = vpop.f32.mrf.mxu0 }
  0xd4   : > { %v640_v17 = vadd.f32 %v5487_v36, %v639_v15  ;;  %v490_v15 = vld [vmem:[%s5333_s12 + $0xe0] sm:$0xff] }
  0xd6   : > { %v723_v18 = vmax.f32 %v640_v17, 0.0  ;;  %4618 = vmatmul.msk.f32.gmra.mxu0 %vm503_vm1, %v484_v16 }
  0xd7   : > { %v5607_v19 = vld [vmem:[#allocation2 + $0x51] sm:$0xff] }
  0xd8   : > { %v5609_v20 = vld [vmem:[#allocation2 + $0x50] sm:$0xff]  ;;  %756 = vst.msk [vmem:[#allocation2 + $0x61] sm:$0xff] %vm384_vm2, %v723_v18  ;;  %4639 = vmatmul.msk.f32.gmra.mxu1 %vm384_vm2, %v5607_v19 }
  0xd9   : > { %v5611_v21 = vld [vmem:[#allocation2 + $0x4a] sm:$0xff]  ;;  %4671 = vmatmul.msk.f32.gmra.mxu2 %vm384_vm2, %v5609_v20  ;;  %v5632_v29 = vld [vmem:[#allocation2 + $0x52] sm:$0xff] }
  0xda   : > { %4706 = vmatmul.msk.f32.gmra.mxu3 %vm384_vm2, %v5611_v21 }
  0xdb   : > { %v642_v23 = vpop.f32.mrf.mxu0 }
  0xdc   : > { %v643_v25 = vadd.f32 %v5487_v36, %v642_v23 }
  0xde   : > { %v724_v26 = vmax.f32 %v643_v25, 0.0  ;;  %4619 = vmatmul.msk.f32.gmra.mxu0 %vm503_vm1, %v485_v24 }
  0xdf   : > { %v5623_v27 = vld [vmem:[#allocation2 + $0x61] sm:$0xff] }
  0xe0   : > { %v5625_v28 = vld [vmem:[#allocation2 + $0x60] sm:$0xff]  ;;  %757 = vst.msk [vmem:[#allocation2 + $0x69] sm:$0xff] %vm384_vm2, %v724_v26  ;;  %4640 = vmatmul.msk.f32.gmra.mxu1 %vm384_vm2, %v5623_v27  ;;  %v491_v26 = vld [vmem:[%s5333_s12 + $0xe8] sm:$0xff]  ;;  %s5161_s12 = scalar_lea.hbm %s7436_s11, 2 }
  0xe1   : > { %4672 = vmatmul.msk.f32.gmra.mxu2 %vm384_vm2, %v5625_v28  ;;  %p5163_p1 = scmp.lt.s32.totalorder %s5161_s12, %s5157_s1 }
  0xe2   : > { %4707 = vmatmul.msk.f32.gmra.mxu3 %vm384_vm2, %v5632_v29 }
  0xe3   : > { %v645_v31 = vpop.f32.mrf.mxu0  ;;  %p5164_p2 = por %p5163_p1, %p5162_p0 }
  0xe4   : > { %v646_v33 = vadd.f32 %v5487_v36, %v645_v31 }
  0xe5   : > { %p5165_p3 = pnand %p5164_p2, %p5160_p13 }
  0xe6   : > { %v725_v34 = vmax.f32 %v646_v33, 0.0  ;;  %4620 = vmatmul.msk.f32.gmra.mxu0 %vm503_vm1, %v486_v32 }
  0xe7   : > { %v5642_v35 = vld [vmem:[#allocation2 + $0x69] sm:$0xff] }
  0xe8   : > { %v5644_v37 = vld [vmem:[#allocation2 + $0x68] sm:$0xff]  ;;  %758 = vst.msk [vmem:[#allocation2 + $0x79] sm:$0xff] %vm384_vm2, %v725_v34  ;;  %4641 = vmatmul.msk.f32.gmra.mxu1 %vm384_vm2, %v5642_v35 }
  0xe9   : > { %v5646_v38 = vld [vmem:[#allocation2 + $0x62] sm:$0xff]  ;;  %4673 = vmatmul.msk.f32.gmra.mxu2 %vm384_vm2, %v5644_v37  ;;  %v5667_v46 = vld [vmem:[#allocation2 + $0x6a] sm:$0xff] }
  0xea   : > { %4708 = vmatmul.msk.f32.gmra.mxu3 %vm384_vm2, %v5646_v38 }
  0xeb   : > { %v648_v39 = vpop.f32.mrf.mxu0 }
  0xec   : > { %v649_v41 = vadd.f32 %v5487_v36, %v648_v39 }
  0xee   : > { %v726_v43 = vmax.f32 %v649_v41, 0.0  ;;  %4621 = vmatmul.msk.f32.gmra.mxu0 %vm503_vm1, %v487_v40  ;;  %v818_v40 = vld [vmem:[#allocation2 + $0x1] sm:$0xff] }
  0xef   : > { %v5658_v44 = vld [vmem:[#allocation2 + $0x79] sm:$0xff] }
  0xf0   : > { %v5660_v45 = vld [vmem:[#allocation2 + $0x78] sm:$0xff]  ;;  %759 = vst.msk [vmem:[#allocation2 + $0x81] sm:$0xff] %vm384_vm2, %v726_v43  ;;  %4642 = vmatmul.msk.f32.gmra.mxu1 %vm384_vm2, %v5658_v44 }
  0xf1   : > { %4674 = vmatmul.msk.f32.gmra.mxu2 %vm384_vm2, %v5660_v45 }
  0xf2   : > { %4709 = vmatmul.msk.f32.gmra.mxu3 %vm384_vm2, %v5667_v46 }
  0xf3   : > { %v651_v49 = vpop.f32.mrf.mxu0 }
  0xf4   : > { %v652_v52 = vadd.f32 %v5487_v36, %v651_v49  ;;  %v4843_v49 = vld [vmem:[%s7428_s3 + $0xd8] sm:$0xff] }
  0xf5   : > { %2531 = vmatpush.msra.mxu0 %v4843_v49  ;;  %v5812_v49 = vld [vmem:[#allocation2 + $0x21] sm:$0xff] }
  0xf6   : > { %v727_v55 = vmax.f32 %v652_v52, 0.0  ;;  %4622 = vmatmul.msk.f32.gmra.mxu0 %vm503_vm1, %v488_v51  ;;  %v4733_v51 = vld [vmem:[%s7428_s3 + $0x68] sm:$0xff]  ;;  %v4842_v52 = vld [vmem:[%s7428_s3 + $0xd0] sm:$0xff] }
  0xf7   : > { %v5677_v58 = vld [vmem:[#allocation2 + $0x81] sm:$0xff]  ;;  %1698 = vmatpush.msrb.mxu1 %v4733_v51  ;;  %2532 = vmatpush.msra.mxu0 %v4842_v52 }
  0xf8   : > { %v5679_v59 = vld [vmem:[#allocation2 + $0x80] sm:$0xff]  ;;  %760 = vst.msk [vmem:[#allocation2 + $0x91] sm:$0xff] %vm384_vm2, %v727_v55  ;;  %4643 = vmatmul.msk.f32.gmra.mxu1 %vm384_vm2, %v5677_v58  ;;  %v4841_v55 = vld [vmem:[%s7428_s3 + $0xc8] sm:$0xff] }
  0xf9   : > { %v5681_v60 = vld [vmem:[#allocation2 + $0x7a] sm:$0xff]  ;;  %4675 = vmatmul.msk.f32.gmra.mxu2 %vm384_vm2, %v5679_v59  ;;  %v5703_v9 = vld [vmem:[#allocation2 + $0x82] sm:$0xff]  ;;  %2533 = vmatpush.msra.mxu0 %v4841_v55 }
  0xfa   : > { %4710 = vmatmul.msk.f32.gmra.mxu3 %vm384_vm2, %v5681_v60 }
  0xfb   : > { %v654_v0 = vpop.f32.mrf.mxu0 }
  0xfc   : > { %v655_v2 = vadd.f32 %v5487_v36, %v654_v0  ;;  %v4840_v0 = vld [vmem:[%s7428_s3 + $0xc0] sm:$0xff] }
  0xfd   : > { %2534 = vmatpush.msra.mxu0 %v4840_v0 }
  0xfe   : > { %v728_v3 = vmax.f32 %v655_v2, 0.0  ;;  %4623 = vmatmul.msk.f32.gmra.mxu0 %vm503_vm1, %v489_v1 }
  0xff   : > { %v5694_v4 = vld [vmem:[#allocation2 + $0x91] sm:$0xff] }
 0x100   : > { %v5696_v8 = vld [vmem:[#allocation2 + $0x90] sm:$0xff]  ;;  %761 = vst.msk [vmem:[#allocation2 + $0x99] sm:$0xff] %vm384_vm2, %v728_v3  ;;  %4644 = vmatmul.msk.f32.gmra.mxu1 %vm384_vm2, %v5694_v4 }
 0x101   : > { %4676 = vmatmul.msk.f32.gmra.mxu2 %vm384_vm2, %v5696_v8 }
 0x102   : > { %4711 = vmatmul.msk.f32.gmra.mxu3 %vm384_vm2, %v5703_v9 }
 0x103   : > { %v657_v11 = vpop.f32.mrf.mxu0 }
 0x104   : > { %v658_v16 = vadd.f32 %v5487_v36, %v657_v11 }
 0x106   : > { %v729_v17 = vmax.f32 %v658_v16, 0.0  ;;  %4624 = vmatmul.msk.f32.gmra.mxu0 %vm503_vm1, %v490_v15 }
 0x107   : > { %v5713_v18 = vld [vmem:[#allocation2 + $0x99] sm:$0xff] }
 0x108   : > { %v5715_v23 = vld [vmem:[#allocation2 + $0x98] sm:$0xff]  ;;  %762 = vst.msk [vmem:[#allocation2 + $0xa9] sm:$0xff] %vm384_vm2, %v729_v17  ;;  %4645 = vmatmul.msk.f32.gmra.mxu1 %vm384_vm2, %v5713_v18 }
 0x109   : > { %v5717_v24 = vld [vmem:[#allocation2 + $0x92] sm:$0xff]  ;;  %4677 = vmatmul.msk.f32.gmra.mxu2 %vm384_vm2, %v5715_v23  ;;  %v5738_v34 = vld [vmem:[#allocation2 + $0x9a] sm:$0xff] }
 0x10a   : > { %4712 = vmatmul.msk.f32.gmra.mxu3 %vm384_vm2, %v5717_v24  ;;  %7482 = vst [vmem:[#allocation8_spill] sm:$0xff] %v5738_v34  ;;  %v5790_v17 = vld [vmem:[#allocation2 + $0x19] sm:$0xff] }
 0x10b   : > { %v660_v25 = vpop.f32.mrf.mxu0 }
 0x10c   : > { %v661_v30 = vadd.f32 %v5487_v36, %v660_v25 }
 0x10e   : > { %v730_v31 = vmax.f32 %v661_v30, 0.0  ;;  %4625 = vmatmul.msk.f32.gmra.mxu0 %vm503_vm1, %v491_v26 }
 0x10f   : > { %v5729_v32 = vld [vmem:[#allocation2 + $0xa9] sm:$0xff] }
 0x110   : > { %7481 = vst [vmem:[#allocation7_spill] sm:$0xff] %v5729_v32  ;;  %v5731_v33 = vld [vmem:[#allocation2 + $0xa8] sm:$0xff]  ;;  %4646 = vmatmul.msk.f32.gmra.mxu1 %vm384_vm2, %v5729_v32 }
 0x111   : > { %763 = vst.msk [vmem:[#allocation2 + $0xb1] sm:$0xff] %vm384_vm2, %v730_v31  ;;  %4678 = vmatmul.msk.f32.gmra.mxu2 %vm384_vm2, %v5731_v33 }
 0x112   : > { %4713 = vmatmul.msk.f32.gmra.mxu3 %vm384_vm2, %v5738_v34 }
 0x113   : > { %v663_v39 = vpop.f32.mrf.mxu0 }
 0x114   : > { %v664_v41 = vadd.f32 %v5487_v36, %v663_v39  ;;  %v5805_v39 = vpop.f32.mrf.mxu3 }
 0x115   : > { %7490 = vst [vmem:[#allocation16_spill] sm:$0xff] %v5805_v39 }
 0x116   : > { %v731_v42 = vmax.f32 %v664_v41, 0.0  ;;  %4632 = vmatmul.msk.f32.vlgmr.msrb.gmra.mxu0 %vm384_vm2, %v818_v40  ;;  %v5809_v40 = vpop.f32.mrf.mxu2 }
 0x117   : > { %7491 = vst [vmem:[#allocation17_spill] sm:$0xff] %v5809_v40 }
 0x118   : > { %v5744_v43 = vld [vmem:[#allocation2 + $0xb1] sm:$0xff]  ;;  %764 = vst.msk [vmem:[#allocation2 + $0xc1] sm:$0xff] %vm384_vm2, %v731_v42 }
 0x119   : > { %7483 = vst [vmem:[#allocation9_spill] sm:$0xff] %v5744_v43  ;;  %v5746_v47 = vld [vmem:[#allocation2 + $0xb0] sm:$0xff]  ;;  %4647 = vmatmul.msk.f32.gmra.mxu1 %vm384_vm2, %v5744_v43 }
 0x11a   : > { %v5748_v48 = vld [vmem:[#allocation2 + $0xaa] sm:$0xff]  ;;  %4679 = vmatmul.msk.f32.gmra.mxu2 %vm384_vm2, %v5746_v47  ;;  %v5785_v11 = vld [vmem:[#allocation2 + $0xb2] sm:$0xff] }
 0x11b   : > { %7484 = vst [vmem:[#allocation10_spill] sm:$0xff] %v5748_v48  ;;  %4714 = vmatmul.msk.f32.gmra.mxu3 %vm384_vm2, %v5748_v48  ;;  %v666_v53 = vpop.f32.mrf.mxu0 }
 0x11c   : > { %v667_v61 = vadd.f32 %v5487_v36, %v666_v53  ;;  %7487 = vst [vmem:[#allocation13_spill] sm:$0xff] %v5785_v11  ;;  %v5829_v55 = vpop.f32.mrf.mxu3 }
 0x11d   : > { %7494 = vst [vmem:[#allocation20_spill] sm:$0xff] %v5829_v55 }
 0x11e   : > { %v732_v1 = vmax.f32 %v667_v61, 0.0  ;;  %4633 = vmatmul.msk.f32.gmra.mxu0 %vm384_vm2, %v819_v54 }
 0x11f   : > { %v5774_v2 = vld [vmem:[#allocation2 + $0xc1] sm:$0xff] }
 0x120   : > { %7485 = vst [vmem:[#allocation11_spill] sm:$0xff] %v5774_v2  ;;  %v5776_v3 = vld [vmem:[#allocation2 + $0xc0] sm:$0xff] }
 0x121   : > { %765 = vst.msk [vmem:[#allocation2 + $0xc9] sm:$0xff] %vm384_vm2, %v732_v1  ;;  %4648 = vmatmul.msk.f32.gmra.mxu1 %vm384_vm2, %v5774_v2 }
 0x122   : > { %4680 = vmatmul.msk.f32.gmra.mxu2 %vm384_vm2, %v5776_v3 }
 0x123   : > { %4715 = vmatmul.msk.f32.gmra.mxu3 %vm384_vm2, %v5785_v11  ;;  %v669_v15 = vpop.f32.mrf.mxu0 }
 0x124   : > { %v670_v16 = vadd.f32 %v5487_v36, %v669_v15  ;;  %v5834_v15 = vld [vmem:[#allocation2 + $0x31] sm:$0xff] }
 0x126   : > { %v733_v25 = vmax.f32 %v670_v16, 0.0  ;;  %4634 = vmatmul.msk.f32.gmra.mxu0 %vm384_vm2, %v5790_v17 }
 0x128   : > { %v5794_v26 = vld [vmem:[#allocation2 + $0xc9] sm:$0xff]  ;;  %766 = vst.msk [vmem:[#allocation2 + $0xd9] sm:$0xff] %vm384_vm2, %v733_v25 }
 0x129   : > { %7488 = vst [vmem:[#allocation14_spill] sm:$0xff] %v5794_v26  ;;  %v5796_v30 = vld [vmem:[#allocation2 + $0xc8] sm:$0xff]  ;;  %4649 = vmatmul.msk.f32.gmra.mxu1 %vm384_vm2, %v5794_v26 }
 0x12a   : > { %v5798_v31 = vld [vmem:[#allocation2 + $0xc2] sm:$0xff]  ;;  %4681 = vmatmul.msk.f32.gmra.mxu2 %vm384_vm2, %v5796_v30  ;;  %v5825_v54 = vld [vmem:[#allocation2 + $0xca] sm:$0xff] }
 0x12b   : > { %7489 = vst [vmem:[#allocation15_spill] sm:$0xff] %v5798_v31  ;;  %4716 = vmatmul.msk.f32.gmra.mxu3 %vm384_vm2, %v5798_v31  ;;  %v672_v41 = vpop.f32.mrf.mxu0 }
 0x12c   : > { %v673_v42 = vadd.f32 %v5487_v36, %v672_v41  ;;  %7493 = vst [vmem:[#allocation19_spill] sm:$0xff] %v5825_v54 }
 0x12e   : > { %v734_v51 = vmax.f32 %v673_v42, 0.0  ;;  %4635 = vmatmul.msk.f32.gmra.mxu0 %vm384_vm2, %v5812_v49 }
 0x12f   : > { %v5816_v52 = vld [vmem:[#allocation2 + $0xd9] sm:$0xff] }
 0x130   : > { %7492 = vst [vmem:[#allocation18_spill] sm:$0xff] %v5816_v52  ;;  %v5818_v53 = vld [vmem:[#allocation2 + $0xd8] sm:$0xff] }
 0x131   : > { %767 = vst.msk [vmem:[#allocation2 + $0xe1] sm:$0xff] %vm384_vm2, %v734_v51  ;;  %4650 = vmatmul.msk.f32.gmra.mxu1 %vm384_vm2, %v5816_v52 }
 0x132   : > { %4682 = vmatmul.msk.f32.gmra.mxu2 %vm384_vm2, %v5818_v53 }
 0x133   : > { %4717 = vmatmul.msk.f32.gmra.mxu3 %vm384_vm2, %v5825_v54  ;;  %v675_v61 = vpop.f32.mrf.mxu0  ;;  %v5831_v0 = vpop.f32.mrf.mxu2 }
 0x134   : > { %7495 = vst [vmem:[#allocation21_spill] sm:$0xff] %v5831_v0  ;;  %v676_v1 = vadd.f32 %v5487_v36, %v675_v61 }
 0x136   : > { %v735_v16 = vmax.f32 %v676_v1, 0.0  ;;  %4636 = vmatmul.msk.f32.gmra.mxu0 %vm384_vm2, %v5834_v15 }
 0x138   : > { %v5838_v25 = vld [vmem:[#allocation2 + $0xe1] sm:$0xff]  ;;  %768 = vst.msk [vmem:[#allocation2 + $0xf1] sm:$0xff] %vm384_vm2, %v735_v16 }
 0x139   : > { %7496 = vst [vmem:[#allocation22_spill] sm:$0xff] %v5838_v25  ;;  %v5840_v41 = vld [vmem:[#allocation2 + $0xe0] sm:$0xff]  ;;  %4651 = vmatmul.msk.f32.gmra.mxu1 %vm384_vm2, %v5838_v25 }
 0x13a   : > { %v5842_v42 = vld [vmem:[#allocation2 + $0xda] sm:$0xff]  ;;  %4683 = vmatmul.msk.f32.gmra.mxu2 %vm384_vm2, %v5840_v41 }
 0x13b   : > { %7497 = vst [vmem:[#allocation23_spill] sm:$0xff] %v5842_v42  ;;  %4718 = vmatmul.msk.f32.gmra.mxu3 %vm384_vm2, %v5842_v42  ;;  %v678_v51 = vpop.f32.mrf.mxu0  ;;  %v5851_v61 = vpop.f32.mrf.mxu2 }
 0x13c   : > { %7498 = vst [vmem:[#allocation24_spill] sm:$0xff] %v5851_v61  ;;  %v679_v1 = vadd.f32 %v5487_v36, %v678_v51  ;;  %v5854_v22 = vpop.f32.mrf.mxu3  ;;  %v5867_v61 = vld [vmem:[#allocation2 + $0xe2] sm:$0xff] }
 0x13d   : > { %7499 = vst [vmem:[#allocation25_spill] sm:$0xff] %v5854_v22  ;;  %v4768_v51 = vld [vmem:[%s7428_s3 + $0x80] sm:$0xff] }
 0x13e   : > { %v736_v0 = vmax.f32 %v679_v1, 0.0  ;;  %4844 = vmatmul.msk.f32.vlgmr.msra.gmra.mxu0 %vm384_vm2, %v5560_v62  ;;  %7501 = vst [vmem:[#allocation27_spill] sm:$0xff] %v5867_v61  ;;  %1977 = vmatpush.msra.mxu2 %v4768_v51 }
 0x13f   : > { %v5858_v16 = vld [vmem:[#allocation2 + $0xf1] sm:$0xff] }
 0x140   : > { %7500 = vst [vmem:[#allocation26_spill] sm:$0xff] %v5858_v16  ;;  %v5860_v55 = vld [vmem:[#allocation2 + $0xf0] sm:$0xff] }
 0x141   : > { %769 = vst.msk [vmem:[#allocation2 + $0xf9] sm:$0xff] %vm384_vm2, %v736_v0  ;;  %4652 = vmatmul.msk.f32.gmra.mxu1 %vm384_vm2, %v5858_v16 }
 0x142   : > { %4684 = vmatmul.msk.f32.gmra.mxu2 %vm384_vm2, %v5860_v55 }
 0x143   : > { %4719 = vmatmul.msk.f32.gmra.mxu3 %vm384_vm2, %v5867_v61  ;;  %v681_v1 = vpop.f32.mrf.mxu0  ;;  %v5874_v22 = vpop.f32.mrf.mxu2 }
 0x144   : > { %7502 = vst [vmem:[#allocation28_spill] sm:$0xff] %v5874_v22  ;;  %v682_v0 = vadd.f32 %v5487_v36, %v681_v1  ;;  %v5877_v40 = vpop.f32.mrf.mxu3 }
 0x145   : > { %7503 = vst [vmem:[#allocation29_spill] sm:$0xff] %v5877_v40  ;;  %v983_v16 = vpop.f32.mrf.mxu1 }
 0x146   : > { %v737_v42 = vmax.f32 %v682_v0, 0.0  ;;  %4845 = vmatmul.msk.f32.gmra.mxu0 %vm384_vm2, %v5577_v6 }
 0x148   : > { %v5881_v25 = vld [vmem:[#allocation2 + $0xf9] sm:$0xff]  ;;  %770 = vst.msk [vmem:[#allocation2 + $0x109] sm:$0xff] %vm384_vm2, %v737_v42 }
 0x149   : > { %7504 = vst [vmem:[#allocation30_spill] sm:$0xff] %v5881_v25  ;;  %v5883_v61 = vld [vmem:[#allocation2 + $0xf8] sm:$0xff]  ;;  %4653 = vmatmul.msk.f32.gmra.mxu1 %vm384_vm2, %v5881_v25 }
 0x14a   : > { %v5885_v39 = vld [vmem:[#allocation2 + $0xf2] sm:$0xff]  ;;  %4685 = vmatmul.msk.f32.gmra.mxu2 %vm384_vm2, %v5883_v61 }
 0x14b   : > { %7505 = vst [vmem:[#allocation31_spill] sm:$0xff] %v5885_v39  ;;  %4720 = vmatmul.msk.f32.gmra.mxu3 %vm384_vm2, %v5885_v39  ;;  %v684_v51 = vpop.f32.mrf.mxu0 }
 0x14c   : > { %v1192_v1 = vpop.f32.mrf.mxu2  ;;  %v685_v0 = vadd.f32 %v5487_v36, %v684_v51  ;;  %v4732_v51 = vld [vmem:[%s7428_s3 + $0x60] sm:$0xff] }
 0x14d   : > { %v1193_v22 = vadd.f32 %v1192_v1, %v983_v16  ;;  %v5895_v40 = vpop.f32.mrf.mxu3  ;;  %v986_v10 = vpop.f32.mrf.mxu1  ;;  %v5908_v16 = vld [vmem:[#allocation2 + $0xfa] sm:$0xff]  ;;  %1699 = vmatpush.msrb.mxu1 %v4732_v51 }
 0x14e   : > { %7506 = vst [vmem:[#allocation32_spill] sm:$0xff] %v5895_v40  ;;  %v738_v54 = vmax.f32 %v685_v0, 0.0  ;;  %4846 = vmatmul.msk.f32.gmra.mxu0 %vm384_vm2, %v5593_v13 }
 0x14f   : > { %v5899_v42 = vld [vmem:[#allocation2 + $0x109] sm:$0xff]  ;;  %7508 = vst [vmem:[#allocation34_spill] sm:$0xff] %v5908_v16 }
 0x150   : > { %7507 = vst [vmem:[#allocation33_spill] sm:$0xff] %v5899_v42  ;;  %v5901_v25 = vld [vmem:[#allocation2 + $0x108] sm:$0xff] }
 0x151   : > { %771 = vst.msk [vmem:[#allocation2 + $0x111] sm:$0xff] %vm384_vm2, %v738_v54  ;;  %4654 = vmatmul.msk.f32.gmra.mxu1 %vm384_vm2, %v5899_v42 }
 0x152   : > { %4686 = vmatmul.msk.f32.gmra.mxu2 %vm384_vm2, %v5901_v25 }
 0x153   : > { %4721 = vmatmul.msk.f32.gmra.mxu3 %vm384_vm2, %v5908_v16  ;;  %v687_v1 = vpop.f32.mrf.mxu0 }
 0x154   : > { %v1195_v0 = vpop.f32.mrf.mxu2  ;;  %v688_v54 = vadd.f32 %v5487_v36, %v687_v1 }
 0x155   : > { %v1196_v40 = vadd.f32 %v1195_v0, %v986_v10  ;;  %v1438_v39 = vpop.f32.mrf.mxu3  ;;  %v989_v52 = vpop.f32.mrf.mxu1 }
 0x156   : > { %v5916_v42 = vadd.f32 %v1438_v39, %v1193_v22  ;;  %v739_v31 = vmax.f32 %v688_v54, 0.0  ;;  %4847 = vmatmul.msk.f32.gmra.mxu0 %vm384_vm2, %v5609_v20 }
 0x158   : > { %7509 = vst [vmem:[#allocation35_spill] sm:$0xff] %v5916_v42  ;;  %v5920_v26 = vld [vmem:[#allocation2 + $0x111] sm:$0xff] }
 0x159   : > { %7510 = vst [vmem:[#allocation36_spill] sm:$0xff] %v5920_v26  ;;  %v5922_v11 = vld [vmem:[#allocation2 + $0x110] sm:$0xff]  ;;  %4655 = vmatmul.msk.f32.gmra.mxu1 %vm384_vm2, %v5920_v26 }
 0x15a   : > { %v5924_v2 = vld [vmem:[#allocation2 + $0x10a] sm:$0xff]  ;;  %772 = vst.msk [vmem:[#allocation2 + $0x121] sm:$0xff] %vm384_vm2, %v739_v31  ;;  %4687 = vmatmul.msk.f32.gmra.mxu2 %vm384_vm2, %v5922_v11 }
 0x15b   : > { %7511 = vst [vmem:[#allocation37_spill] sm:$0xff] %v5924_v2  ;;  %4722 = vmatmul.msk.f32.gmra.mxu3 %vm384_vm2, %v5924_v2  ;;  %v690_v22 = vpop.f32.mrf.mxu0 }
 0x15c   : > { %v1198_v10 = vpop.f32.mrf.mxu2  ;;  %v691_v39 = vadd.f32 %v5487_v36, %v690_v22 }
 0x15d   : > { %v1199_v51 = vadd.f32 %v1198_v10, %v989_v52  ;;  %v1441_v1 = vpop.f32.mrf.mxu3  ;;  %v992_v54 = vpop.f32.mrf.mxu1  ;;  %v5947_v52 = vld [vmem:[#allocation2 + $0x112] sm:$0xff] }
 0x15e   : > { %v5934_v0 = vadd.f32 %v1441_v1, %v1196_v40  ;;  %v740_v42 = vmax.f32 %v691_v39, 0.0  ;;  %4848 = vmatmul.msk.f32.gmra.mxu0 %vm384_vm2, %v5625_v28  ;;  %7514 = vst [vmem:[#allocation40_spill] sm:$0xff] %v5947_v52 }
 0x160   : > { %7512 = vst [vmem:[#allocation38_spill] sm:$0xff] %v5934_v0 }
 0x161   : > { %v5938_v31 = vld [vmem:[#allocation2 + $0x121] sm:$0xff]  ;;  %773 = vst.msk [vmem:[#allocation2 + $0x129] sm:$0xff] %vm384_vm2, %v740_v42 }
 0x162   : > { %7513 = vst [vmem:[#allocation39_spill] sm:$0xff] %v5938_v31  ;;  %v5940_v26 = vld [vmem:[#allocation2 + $0x120] sm:$0xff]  ;;  %4656 = vmatmul.msk.f32.gmra.mxu1 %vm384_vm2, %v5938_v31 }
 0x163   : > { %4688 = vmatmul.msk.f32.gmra.mxu2 %vm384_vm2, %v5940_v26  ;;  %4723 = vmatmul.msk.f32.gmra.mxu3 %vm384_vm2, %v5947_v52  ;;  %v693_v40 = vpop.f32.mrf.mxu0 }
 0x164   : > { %v1201_v22 = vpop.f32.mrf.mxu2  ;;  %v694_v10 = vadd.f32 %v5487_v36, %v693_v40 }
 0x165   : > { %v1202_v39 = vadd.f32 %v1201_v22, %v992_v54  ;;  %v1444_v1 = vpop.f32.mrf.mxu3  ;;  %v995_v42 = vpop.f32.mrf.mxu1 }
 0x166   : > { %v5952_v0 = vadd.f32 %v1444_v1, %v1199_v51  ;;  %v741_v2 = vmax.f32 %v694_v10, 0.0  ;;  %4849 = vmatmul.msk.f32.gmra.mxu0 %vm384_vm2, %v5644_v37 }
 0x168   : > { %7515 = vst [vmem:[#allocation41_spill] sm:$0xff] %v5952_v0  ;;  %v5956_v31 = vld [vmem:[#allocation2 + $0x129] sm:$0xff] }
 0x169   : > { %7516 = vst [vmem:[#allocation42_spill] sm:$0xff] %v5956_v31  ;;  %v5958_v16 = vld [vmem:[#allocation2 + $0x128] sm:$0xff] }
 0x16a   : > { %v5960_v48 = vld [vmem:[#allocation2 + $0x122] sm:$0xff]  ;;  %774 = vst.msk [vmem:[#allocation2 + $0x139] sm:$0xff] %vm384_vm2, %v741_v2  ;;  %4657 = vmatmul.msk.f32.gmra.mxu1 %vm384_vm2, %v5956_v31 }
 0x16b   : > { %7517 = vst [vmem:[#allocation43_spill] sm:$0xff] %v5960_v48  ;;  %4689 = vmatmul.msk.f32.gmra.mxu2 %vm384_vm2, %v5958_v16  ;;  %4724 = vmatmul.msk.f32.gmra.mxu3 %vm384_vm2, %v5960_v48  ;;  %v696_v51 = vpop.f32.mrf.mxu0 }
 0x16c   : > { %v1204_v54 = vpop.f32.mrf.mxu2  ;;  %v697_v40 = vadd.f32 %v5487_v36, %v696_v51 }
 0x16d   : > { %v1205_v22 = vadd.f32 %v1204_v54, %v995_v42  ;;  %v1447_v10 = vpop.f32.mrf.mxu3  ;;  %v998_v0 = vpop.f32.mrf.mxu1  ;;  %v5983_v42 = vld [vmem:[#allocation2 + $0x12a] sm:$0xff] }
 0x16e   : > { %v5970_v1 = vadd.f32 %v1447_v10, %v1202_v39  ;;  %v742_v52 = vmax.f32 %v697_v40, 0.0  ;;  %4850 = vmatmul.msk.f32.gmra.mxu0 %vm384_vm2, %v5660_v45  ;;  %7520 = vst [vmem:[#allocation46_spill] sm:$0xff] %v5983_v42 }
 0x170   : > { %7518 = vst [vmem:[#allocation44_spill] sm:$0xff] %v5970_v1 }
 0x171   : > { %v5974_v2 = vld [vmem:[#allocation2 + $0x139] sm:$0xff]  ;;  %775 = vst.msk [vmem:[#allocation2 + $0x141] sm:$0xff] %vm384_vm2, %v742_v52 }
 0x172   : > { %7519 = vst [vmem:[#allocation45_spill] sm:$0xff] %v5974_v2  ;;  %v5976_v31 = vld [vmem:[#allocation2 + $0x138] sm:$0xff]  ;;  %4658 = vmatmul.msk.f32.gmra.mxu1 %vm384_vm2, %v5974_v2 }
 0x173   : > { %4690 = vmatmul.msk.f32.gmra.mxu2 %vm384_vm2, %v5976_v31  ;;  %4725 = vmatmul.msk.f32.gmra.mxu3 %vm384_vm2, %v5983_v42  ;;  %v699_v39 = vpop.f32.mrf.mxu0 }
 0x174   : > { %v1207_v51 = vpop.f32.mrf.mxu2  ;;  %v700_v54 = vadd.f32 %v5487_v36, %v699_v39 }
 0x175   : > { %v1208_v40 = vadd.f32 %v1207_v51, %v998_v0  ;;  %v1450_v10 = vpop.f32.mrf.mxu3  ;;  %v1001_v52 = vpop.f32.mrf.mxu1  ;;  %v4807_v0 = vld [vmem:[%s7428_s3 + $0xb8] sm:$0xff] }
 0x176   : > { %v5988_v1 = vadd.f32 %v1450_v10, %v1205_v22  ;;  %v743_v48 = vmax.f32 %v700_v54, 0.0  ;;  %4851 = vmatmul.msk.f32.gmra.mxu0 %vm384_vm2, %v5679_v59  ;;  %2252 = vmatpush.msrb.mxu3 %v4807_v0 }
 0x178   : > { %7521 = vst [vmem:[#allocation47_spill] sm:$0xff] %v5988_v1  ;;  %v5992_v2 = vld [vmem:[#allocation2 + $0x141] sm:$0xff] }
 0x179   : > { %7522 = vst [vmem:[#allocation48_spill] sm:$0xff] %v5992_v2  ;;  %v5994_v43 = vld [vmem:[#allocation2 + $0x140] sm:$0xff] }
 0x17a   : > { %v5996_v34 = vld [vmem:[#allocation2 + $0x13a] sm:$0xff]  ;;  %776 = vst.msk [vmem:[#allocation2 + $0x151] sm:$0xff] %vm384_vm2, %v743_v48  ;;  %4659 = vmatmul.msk.f32.gmra.mxu1 %vm384_vm2, %v5992_v2 }
 0x17b   : > { %7523 = vst [vmem:[#allocation49_spill] sm:$0xff] %v5996_v34  ;;  %4691 = vmatmul.msk.f32.gmra.mxu2 %vm384_vm2, %v5994_v43  ;;  %4726 = vmatmul.msk.f32.gmra.mxu3 %vm384_vm2, %v5996_v34  ;;  %v702_v22 = vpop.f32.mrf.mxu0 }
 0x17c   : > { %v1210_v39 = vpop.f32.mrf.mxu2  ;;  %v703_v51 = vadd.f32 %v5487_v36, %v702_v22 }
 0x17d   : > { %v1211_v54 = vadd.f32 %v1210_v39, %v1001_v52  ;;  %v1453_v48 = vpop.f32.mrf.mxu3  ;;  %v1004_v1 = vpop.f32.mrf.mxu1  ;;  %v6022_v52 = vld [vmem:[#allocation2 + $0x142] sm:$0xff] }
 0x17e   : > { %v6009_v10 = vadd.f32 %v1453_v48, %v1208_v40  ;;  %v744_v2 = vmax.f32 %v703_v51, 0.0  ;;  %4852 = vmatmul.msk.f32.gmra.mxu0 %vm384_vm2, %v5696_v8  ;;  %7527 = vst [vmem:[#allocation53_spill] sm:$0xff] %v6022_v52  ;;  %v4915_v40 = vld [vmem:[%s7428_s3 + $0x118] sm:$0xff] }
 0x17f   : > { %3087 = vmatpush.msrb.mxu2 %v4915_v40  ;;  %v4805_v40 = vld [vmem:[%s7428_s3 + $0xa8] sm:$0xff] }
 0x180   : > { %7524 = vst [vmem:[#allocation50_spill] sm:$0xff] %v6009_v10 }
 0x181   : > { %v6013_v42 = vld [vmem:[#allocation2 + $0x151] sm:$0xff]  ;;  %777 = vst.msk [vmem:[#allocation2 + $0x159] sm:$0xff] %vm384_vm2, %v744_v2 }
 0x182   : > { %7525 = vst [vmem:[#allocation51_spill] sm:$0xff] %v6013_v42  ;;  %v6015_v34 = vld [vmem:[#allocation2 + $0x150] sm:$0xff]  ;;  %4660 = vmatmul.msk.f32.gmra.mxu1 %vm384_vm2, %v6013_v42 }
 0x183   : > { %7526 = vst [vmem:[#allocation52_spill] sm:$0xff] %v6015_v34  ;;  %4692 = vmatmul.msk.f32.gmra.mxu2 %vm384_vm2, %v6015_v34  ;;  %4727 = vmatmul.msk.f32.gmra.mxu3 %vm384_vm2, %v6022_v52  ;;  %v705_v0 = vpop.f32.mrf.mxu0  ;;  %v4806_v2 = vld [vmem:[%s7428_s3 + $0xb0] sm:$0xff]  ;;  %v4879_v52 = vld [vmem:[%s7428_s3 + $0xf8] sm:$0xff] }
 0x184   : > { %v1213_v22 = vpop.f32.mrf.mxu2  ;;  %v706_v39 = vadd.f32 %v5487_v36, %v705_v0  ;;  %2253 = vmatpush.msrb.mxu3 %v4806_v2  ;;  %2809 = vmatpush.msra.mxu1 %v4879_v52 }
 0x185   : > { %v1214_v51 = vadd.f32 %v1213_v22, %v1004_v1  ;;  %v1456_v48 = vpop.f32.mrf.mxu3  ;;  %v1007_v42 = vpop.f32.mrf.mxu1  ;;  %v4804_v1 = vld [vmem:[%s7428_s3 + $0xa0] sm:$0xff] }
 0x186   : > { %v6033_v10 = vadd.f32 %v1456_v48, %v1211_v54  ;;  %v745_v32 = vmax.f32 %v706_v39, 0.0  ;;  %4853 = vmatmul.msk.f32.gmra.mxu0 %vm384_vm2, %v5715_v23  ;;  %2254 = vmatpush.msrb.mxu3 %v4805_v40 }
 0x188   : > { %7528 = vst [vmem:[#allocation54_spill] sm:$0xff] %v6033_v10  ;;  %v6046_v54 = vld [vmem:[#allocation2 + $0x159] sm:$0xff]  ;;  %2255 = vmatpush.msrb.mxu3 %v4804_v1 }
 0x189   : > { %7529 = vst [vmem:[#allocation55_spill] sm:$0xff] %v6046_v54  ;;  %v6048_v0 = vld [vmem:[#allocation2 + $0x158] sm:$0xff] }
 0x18a   : > { %7530 = vst [vmem:[#allocation56_spill] sm:$0xff] %v6048_v0  ;;  %v6050_v22 = vld [vmem:[#allocation2 + $0x152] sm:$0xff]  ;;  %4661 = vmatmul.msk.f32.gmra.mxu1 %vm384_vm2, %v6046_v54 }
 0x18b   : > { %778 = vst.msk [vmem:[#allocation2 + $0x169] sm:$0xff] %vm384_vm2, %v745_v32  ;;  %4693 = vmatmul.msk.f32.gmra.mxu2 %vm384_vm2, %v6048_v0  ;;  %4728 = vmatmul.msk.f32.gmra.mxu3 %vm384_vm2, %v6050_v22  ;;  %v708_v52 = vpop.f32.mrf.mxu0 }
 0x18c   : > { %v1216_v2 = vpop.f32.mrf.mxu2  ;;  %v709_v39 = vadd.f32 %v5487_v36, %v708_v52  ;;  %v6073_v36 = vld [vmem:[#allocation2 + $0x15a] sm:$0xff] }
 0x18d   : > { %v1217_v48 = vadd.f32 %v1216_v2, %v1007_v42  ;;  %v1459_v10 = vpop.f32.mrf.mxu3  ;;  %v1010_v40 = vpop.f32.mrf.mxu1 }
 0x18e   : > { %v6060_v34 = vadd.f32 %v1459_v10, %v1214_v51  ;;  %v746_v32 = vmax.f32 %v709_v39, 0.0  ;;  %4854 = vmatmul.msk.f32.gmra.mxu0 %vm384_vm2, %v5731_v33 }
 0x190   : > { %7531 = vst [vmem:[#allocation57_spill] sm:$0xff] %v6060_v34 }
 0x191   : > { %779 = vst.msk [vmem:[#allocation2 + $0x171] sm:$0xff] %vm384_vm2, %v746_v32 }
 0x192   : > { %v6064_v54 = vld [vmem:[#allocation2 + $0x169] sm:$0xff] }
 0x193   : > { %v6066_v0 = vld [vmem:[#allocation2 + $0x168] sm:$0xff]  ;;  %4662 = vmatmul.msk.f32.gmra.mxu1 %vm384_vm2, %v6064_v54  ;;  %4729 = vmatmul.msk.f32.gmra.mxu3 %vm384_vm2, %v6073_v36 }
 0x194   : > { %4694 = vmatmul.msk.f32.gmra.mxu2 %vm384_vm2, %v6066_v0  ;;  %v1219_v42 = vpop.f32.mrf.mxu2 }
 0x195   : > { %v1220_v10 = vadd.f32 %v1219_v42, %v1010_v40  ;;  %v1462_v51 = vpop.f32.mrf.mxu3 }
 0x196   : > { %v6077_v1 = vadd.f32 %v1462_v51, %v1217_v48  ;;  %v1013_v52 = vpop.f32.mrf.mxu1  ;;  %4855 = vmatmul.msk.f32.gmra.mxu0 %vm384_vm2, %v5746_v47 }
 0x198   : > { %7532 = vst [vmem:[#allocation58_spill] sm:$0xff] %v6077_v1  ;;  %v6081_v2 = vld [vmem:[#allocation2 + $0x171] sm:$0xff] }
 0x199   : > { %v6083_v39 = vld [vmem:[#allocation2 + $0x170] sm:$0xff] }
 0x19a   : > { %v6085_v32 = vld [vmem:[#allocation2 + $0x16a] sm:$0xff]  ;;  %v6097_v34 = vld [vmem:[#allocation2 + $0x172] sm:$0xff] }
 0x19b   : > { %7533 = vst [vmem:[#allocation59_spill] sm:$0xff] %v6085_v32  ;;  %4663 = vmatmul.msk.f32.gmra.mxu1 %vm384_vm2, %v6081_v2  ;;  %4730 = vmatmul.msk.f32.gmra.mxu3 %vm384_vm2, %v6085_v32 }
 0x19c   : > { %4695 = vmatmul.msk.f32.gmra.mxu2 %vm384_vm2, %v6083_v39 }
 0x19d   : > { %v1222_v48 = vpop.f32.mrf.mxu2 }
 0x19e   : > { %v1223_v40 = vadd.f32 %v1222_v48, %v1013_v52  ;;  %v1465_v42 = vpop.f32.mrf.mxu3  ;;  %v1016_v1 = vpop.f32.mrf.mxu1  ;;  %4856 = vmatmul.msk.f32.gmra.mxu0 %vm384_vm2, %v5776_v3 }
 0x19f   : > { %v6093_v51 = vadd.f32 %v1465_v42, %v1220_v10 }
 0x1a1   : > { %7534 = vst [vmem:[#allocation60_spill] sm:$0xff] %v6093_v51 }
 0x1a3   : > { %4736 = vmatmul.msk.f32.vlgmr.msrb.gmra.mxu1 %vm384_vm2, %v5537_v50  ;;  %4731 = vmatmul.msk.f32.gmra.mxu3 %vm384_vm2, %v6097_v34 }
 0x1a4   : > { %4772 = vmatmul.msk.f32.vlgmr.msra.gmra.mxu2 %vm384_vm2, %v5790_v17 }
 0x1a5   : > { %v1225_v32 = vpop.f32.mrf.mxu2 }
 0x1a6   : > { %v1226_v52 = vadd.f32 %v1225_v32, %v1016_v1  ;;  %v1468_v48 = vpop.f32.mrf.mxu3  ;;  %v1019_v42 = vpop.f32.mrf.mxu1  ;;  %4857 = vmatmul.msk.f32.gmra.mxu0 %vm384_vm2, %v5796_v30 }
 0x1a7   : > { %v6105_v10 = vadd.f32 %v1468_v48, %v1223_v40 }
 0x1ab   : > { %4737 = vmatmul.msk.f32.gmra.mxu1 %vm384_vm2, %v5548_v56  ;;  %4808 = vmatmul.msk.f32.vlgmr.msrb.gmra.mxu3 %vm384_vm2, %v5550_v57 }
 0x1ac   : > { %4773 = vmatmul.msk.f32.gmra.mxu2 %vm384_vm2, %v5812_v49 }
 0x1ad   : > { %v1228_v50 = vpop.f32.mrf.mxu2 }
 0x1ae   : > { %v1229_v17 = vadd.f32 %v1228_v50, %v1019_v42  ;;  %v1471_v51 = vpop.f32.mrf.mxu3  ;;  %v1022_v32 = vpop.f32.mrf.mxu1  ;;  %4858 = vmatmul.msk.f32.gmra.mxu0 %vm384_vm2, %v5818_v53 }
 0x1af   : > { %v6115_v1 = vadd.f32 %v1471_v51, %v1226_v52 }
 0x1b3   : > { %4738 = vmatmul.msk.f32.gmra.mxu1 %vm384_vm2, %v5560_v62  ;;  %4809 = vmatmul.msk.f32.gmra.mxu3 %vm384_vm2, %v5562_v63 }
 0x1b4   : > { %4774 = vmatmul.msk.f32.gmra.mxu2 %vm384_vm2, %v5834_v15 }
 0x1b5   : > { %v1231_v56 = vpop.f32.mrf.mxu2 }
 0x1b6   : > { %v1232_v57 = vadd.f32 %v1231_v56, %v1022_v32  ;;  %v1474_v49 = vpop.f32.mrf.mxu3  ;;  %v1025_v51 = vpop.f32.mrf.mxu1  ;;  %4859 = vmatmul.msk.f32.gmra.mxu0 %vm384_vm2, %v5840_v41 }
 0x1b7   : > { %v6125_v40 = vadd.f32 %v1474_v49, %v1229_v17 }
 0x1bb   : > { %4739 = vmatmul.msk.f32.gmra.mxu1 %vm384_vm2, %v5577_v6  ;;  %4810 = vmatmul.msk.f32.gmra.mxu3 %vm384_vm2, %v5579_v7  ;;  %v6148_v6 = vpop.f32.mrf.mxu0 }
 0x1bc   : > { %4775 = vmatmul.msk.f32.gmra.mxu2 %vm384_vm2, %v5575_v5  ;;  %v4914_v5 = vld [vmem:[%s7428_s3 + $0x110] sm:$0xff] }
 0x1bd   : > { %v1234_v62 = vpop.f32.mrf.mxu2  ;;  %3088 = vmatpush.msrb.mxu2 %v4914_v5 }
 0x1be   : > { %v1235_v63 = vadd.f32 %v1234_v62, %v1025_v51  ;;  %v1477_v15 = vpop.f32.mrf.mxu3  ;;  %v1028_v48 = vpop.f32.mrf.mxu1  ;;  %4860 = vmatmul.msk.f32.gmra.mxu0 %vm384_vm2, %v5860_v55 }
 0x1bf   : > { %v6135_v52 = vadd.f32 %v1477_v15, %v1232_v57 }
 0x1c3   : > { %4740 = vmatmul.msk.f32.gmra.mxu1 %vm384_vm2, %v5593_v13  ;;  %4811 = vmatmul.msk.f32.gmra.mxu3 %vm384_vm2, %v5600_v14  ;;  %v6163_v14 = vpop.f32.mrf.mxu0 }
 0x1c4   : > { %4776 = vmatmul.msk.f32.gmra.mxu2 %vm384_vm2, %v5591_v12  ;;  %v4878_v12 = vld [vmem:[%s7428_s3 + $0xf0] sm:$0xff] }
 0x1c5   : > { %v1237_v7 = vpop.f32.mrf.mxu2  ;;  %2810 = vmatpush.msra.mxu1 %v4878_v12 }
 0x1c6   : > { %v1238_v42 = vadd.f32 %v1237_v7, %v1028_v48  ;;  %v1480_v50 = vpop.f32.mrf.mxu3  ;;  %v1031_v32 = vpop.f32.mrf.mxu1  ;;  %4861 = vmatmul.msk.f32.gmra.mxu0 %vm384_vm2, %v5883_v61 }
 0x1c7   : > { %v6150_v17 = vadd.f32 %v1480_v50, %v1235_v63 }
 0x1cb   : > { %4741 = vmatmul.msk.f32.gmra.mxu1 %vm384_vm2, %v5609_v20  ;;  %4812 = vmatmul.msk.f32.gmra.mxu3 %vm384_vm2, %v5611_v21  ;;  %v6177_v15 = vpop.f32.mrf.mxu0 }
 0x1cc   : > { %4777 = vmatmul.msk.f32.gmra.mxu2 %vm384_vm2, %v5607_v19 }
 0x1cd   : > { %v1240_v13 = vpop.f32.mrf.mxu2 }
 0x1ce   : > { %v1241_v56 = vadd.f32 %v1240_v13, %v1031_v32  ;;  %v1483_v57 = vpop.f32.mrf.mxu3  ;;  %v1034_v51 = vpop.f32.mrf.mxu1  ;;  %4862 = vmatmul.msk.f32.gmra.mxu0 %vm384_vm2, %v5901_v25 }
 0x1cf   : > { %v6165_v49 = vadd.f32 %v1483_v57, %v1238_v42 }
 0x1d3   : > { %4742 = vmatmul.msk.f32.gmra.mxu1 %vm384_vm2, %v5625_v28  ;;  %4813 = vmatmul.msk.f32.gmra.mxu3 %vm384_vm2, %v5632_v29  ;;  %v6191_v7 = vpop.f32.mrf.mxu0 }
 0x1d4   : > { %4778 = vmatmul.msk.f32.gmra.mxu2 %vm384_vm2, %v5623_v27 }
 0x1d5   : > { %v1243_v19 = vpop.f32.mrf.mxu2 }
 0x1d6   : > { %v1244_v20 = vadd.f32 %v1243_v19, %v1034_v51  ;;  %v1486_v21 = vpop.f32.mrf.mxu3  ;;  %v1037_v63 = vpop.f32.mrf.mxu1  ;;  %4863 = vmatmul.msk.f32.gmra.mxu0 %vm384_vm2, %v5922_v11 }
 0x1d7   : > { %v6175_v62 = vadd.f32 %v1486_v21, %v1241_v56 }
 0x1db   : > { %4743 = vmatmul.msk.f32.gmra.mxu1 %vm384_vm2, %v5644_v37  ;;  %4814 = vmatmul.msk.f32.gmra.mxu3 %vm384_vm2, %v5646_v38 }
 0x1dc   : > { %4779 = vmatmul.msk.f32.gmra.mxu2 %vm384_vm2, %v5642_v35 }
 0x1dd   : > { %v1246_v27 = vpop.f32.mrf.mxu2 }
 0x1de   : > { %v1247_v28 = vadd.f32 %v1246_v27, %v1037_v63  ;;  %v1489_v29 = vpop.f32.mrf.mxu3  ;;  %4864 = vmatmul.msk.f32.gmra.mxu0 %vm384_vm2, %v5940_v26  ;;  %v7535_v63 = vld [vmem:[#allocation52_spill] sm:$0xff] }
 0x1df   : > { %v6187_v48 = vadd.f32 %v1489_v29, %v1244_v20  ;;  %v1040_v5 = vpop.f32.mrf.mxu1 }
 0x1e3   : > { %4744 = vmatmul.msk.f32.gmra.mxu1 %vm384_vm2, %v5660_v45  ;;  %4815 = vmatmul.msk.f32.gmra.mxu3 %vm384_vm2, %v5667_v46 }
 0x1e4   : > { %4780 = vmatmul.msk.f32.gmra.mxu2 %vm384_vm2, %v5658_v44  ;;  %v6209_v44 = vpop.f32.mrf.mxu0 }
 0x1e6   : > { %v1249_v35 = vpop.f32.mrf.mxu2  ;;  %v1492_v38 = vpop.f32.mrf.mxu3  ;;  %4865 = vmatmul.msk.f32.gmra.mxu0 %vm384_vm2, %v5958_v16 }
 0x1e7   : > { %v1250_v37 = vadd.f32 %v1249_v35, %v1040_v5  ;;  %v6199_v42 = vadd.f32 %v1492_v38, %v1247_v28  ;;  %v1043_v50 = vpop.f32.mrf.mxu1 }
 0x1eb   : > { %4745 = vmatmul.msk.f32.gmra.mxu1 %vm384_vm2, %v5679_v59  ;;  %4816 = vmatmul.msk.f32.gmra.mxu3 %vm384_vm2, %v5681_v60 }
 0x1ec   : > { %4781 = vmatmul.msk.f32.gmra.mxu2 %vm384_vm2, %v5677_v58  ;;  %v6221_v59 = vpop.f32.mrf.mxu0 }
 0x1ee   : > { %v1252_v45 = vpop.f32.mrf.mxu2  ;;  %v1495_v32 = vpop.f32.mrf.mxu3  ;;  %4866 = vmatmul.msk.f32.gmra.mxu0 %vm384_vm2, %v5976_v31 }
 0x1ef   : > { %v1253_v46 = vadd.f32 %v1252_v45, %v1043_v50  ;;  %v6211_v12 = vadd.f32 %v1495_v32, %v1250_v37  ;;  %v1046_v13 = vpop.f32.mrf.mxu1  ;;  %v7538_v37 = vld [vmem:[#allocation56_spill] sm:$0xff]  ;;  %v7539_v50 = vld [vmem:[#allocation9_spill] sm:$0xff]  ;;  %v7540_v45 = vld [vmem:[#allocation10_spill] sm:$0xff] }
 0x1f3   : > { %4746 = vmatmul.msk.f32.gmra.mxu1 %vm384_vm2, %v5696_v8  ;;  %4817 = vmatmul.msk.f32.gmra.mxu3 %vm384_vm2, %v5703_v9 }
 0x1f4   : > { %4782 = vmatmul.msk.f32.gmra.mxu2 %vm384_vm2, %v5694_v4  ;;  %v6235_v21 = vpop.f32.mrf.mxu0 }
 0x1f6   : > { %v1255_v58 = vpop.f32.mrf.mxu2  ;;  %v1498_v56 = vpop.f32.mrf.mxu3  ;;  %4867 = vmatmul.msk.f32.gmra.mxu0 %vm384_vm2, %v5994_v43 }
 0x1f7   : > { %v1256_v60 = vadd.f32 %v1255_v58, %v1046_v13  ;;  %v6223_v57 = vadd.f32 %v1498_v56, %v1253_v46  ;;  %v1049_v51 = vpop.f32.mrf.mxu1  ;;  %v7541_v56 = vld [vmem:[#allocation11_spill] sm:$0xff] }
 0x1fb   : > { %4747 = vmatmul.msk.f32.gmra.mxu1 %vm384_vm2, %v5715_v23  ;;  %4818 = vmatmul.msk.f32.gmra.mxu3 %vm384_vm2, %v5717_v24  ;;  %v7536_v23 = vld [vmem:[#allocation7_spill] sm:$0xff]  ;;  %v4913_v24 = vld [vmem:[%s7428_s3 + $0x108] sm:$0xff] }
 0x1fc   : > { %4783 = vmatmul.msk.f32.gmra.mxu2 %vm384_vm2, %v5713_v18  ;;  %v7537_v18 = vld [vmem:[#allocation8_spill] sm:$0xff]  ;;  %v6255_v38 = vpop.f32.mrf.mxu0 }
 0x1fd   : > { %3089 = vmatpush.msrb.mxu2 %v4913_v24 }
 0x1fe   : > { %v1258_v4 = vpop.f32.mrf.mxu2  ;;  %v1501_v9 = vpop.f32.mrf.mxu3  ;;  %4868 = vmatmul.msk.f32.gmra.mxu0 %vm384_vm2, %v7535_v63 }
 0x1ff   : > { %v1259_v8 = vadd.f32 %v1258_v4, %v1049_v51  ;;  %v6233_v19 = vadd.f32 %v1501_v9, %v1256_v60  ;;  %v1052_v20 = vpop.f32.mrf.mxu1 }
 0x203   : > { %4748 = vmatmul.msk.f32.gmra.mxu1 %vm384_vm2, %v5731_v33  ;;  %4819 = vmatmul.msk.f32.gmra.mxu3 %vm384_vm2, %v7537_v18  ;;  %v4877_v33 = vld [vmem:[%s7428_s3 + $0xe8] sm:$0xff]  ;;  %v7544_v18 = vld [vmem:[#allocation15_spill] sm:$0xff] }
 0x204   : > { %4784 = vmatmul.msk.f32.gmra.mxu2 %vm384_vm2, %v7536_v23  ;;  %2811 = vmatpush.msra.mxu1 %v4877_v33  ;;  %v6273_v51 = vpop.f32.mrf.mxu0 }
 0x206   : > { %v1261_v27 = vpop.f32.mrf.mxu2  ;;  %v1504_v29 = vpop.f32.mrf.mxu3  ;;  %4869 = vmatmul.msk.f32.gmra.mxu0 %vm384_vm2, %v7538_v37 }
 0x207   : > { %v1262_v28 = vadd.f32 %v1261_v27, %v1052_v20  ;;  %v6248_v5 = vadd.f32 %v1504_v29, %v1259_v8  ;;  %v1055_v35 = vpop.f32.mrf.mxu1 }
 0x20b   : > { %4749 = vmatmul.msk.f32.gmra.mxu1 %vm384_vm2, %v5746_v47  ;;  %4820 = vmatmul.msk.f32.gmra.mxu3 %vm384_vm2, %v7540_v45  ;;  %v7542_v47 = vld [vmem:[#allocation13_spill] sm:$0xff]  ;;  %v7546_v45 = vld [vmem:[#allocation19_spill] sm:$0xff] }
 0x20c   : > { %4785 = vmatmul.msk.f32.gmra.mxu2 %vm384_vm2, %v7539_v50  ;;  %v6285_v27 = vpop.f32.mrf.mxu0  ;;  %v6289_v50 = vld [vmem:[#allocation2 + $0x180] sm:$0xff] }
 0x20e   : > { %v1264_v46 = vpop.f32.mrf.mxu2  ;;  %v1507_v13 = vpop.f32.mrf.mxu3  ;;  %4870 = vmatmul.msk.f32.gmra.mxu0 %vm384_vm2, %v6066_v0 }
 0x20f   : > { %v1265_v32 = vadd.f32 %v1264_v46, %v1055_v35  ;;  %v6263_v58 = vadd.f32 %v1507_v13, %v1262_v28  ;;  %v7547_v46 = vld [vmem:[#allocation12_spill] sm:$0xff] }
 0x210   : > { %v1058_v60 = vpop.f32.mrf.mxu1 }
 0x213   : > { %4750 = vmatmul.msk.f32.gmra.mxu1 %vm384_vm2, %v5776_v3  ;;  %4821 = vmatmul.msk.f32.gmra.mxu3 %vm384_vm2, %v7542_v47  ;;  %v7543_v3 = vld [vmem:[#allocation14_spill] sm:$0xff] }
 0x214   : > { %4786 = vmatmul.msk.f32.gmra.mxu2 %vm384_vm2, %v7541_v56 }
 0x216   : > { %v1510_v9 = vpop.f32.mrf.mxu3  ;;  %4871 = vmatmul.msk.f32.gmra.mxu0 %vm384_vm2, %v6083_v39 }
 0x217   : > { %v1267_v4 = vpop.f32.mrf.mxu2  ;;  %v6275_v20 = vadd.f32 %v1510_v9, %v1265_v32  ;;  %v1178_v32 = vadd.f32 %v7547_v46, %v6148_v6 }
 0x218   : > { %v1268_v8 = vadd.f32 %v1267_v4, %v1058_v60  ;;  %v1061_v23 = vpop.f32.mrf.mxu1  ;;  %v6303_v4 = vld [vmem:[#allocation2 + $0x188] sm:$0xff] }
 0x21b   : > { %4751 = vmatmul.msk.f32.gmra.mxu1 %vm384_vm2, %v5796_v30  ;;  %4822 = vmatmul.msk.f32.gmra.mxu3 %vm384_vm2, %v7544_v18  ;;  %v7545_v30 = vld [vmem:[#allocation18_spill] sm:$0xff]  ;;  %v7551_v18 = vld [vmem:[#allocation17_spill] sm:$0xff] }
 0x21c   : > { %4787 = vmatmul.msk.f32.gmra.mxu2 %vm384_vm2, %v7543_v3  ;;  %v7550_v3 = vld [vmem:[#allocation23_spill] sm:$0xff] }
 0x21e   : > { %v1513_v29 = vpop.f32.mrf.mxu3  ;;  %4872 = vmatmul.msk.f32.gmra.mxu0 %vm384_vm2, %v6289_v50 }
 0x21f   : > { %v1270_v24 = vpop.f32.mrf.mxu2  ;;  %v6287_v35 = vadd.f32 %v1513_v29, %v1268_v8  ;;  %v6305_v8 = vpop.f32.mrf.mxu0 }
 0x220   : > { %v1271_v28 = vadd.f32 %v1270_v24, %v1061_v23  ;;  %v1701_v33 = vpop.f32.mrf.mxu1  ;;  %v7549_v23 = vld [vmem:[#allocation22_spill] sm:$0xff]  ;;  %v1181_v24 = vadd.f32 %v7551_v18, %v6163_v14  ;;  %v7555_v14 = vld [vmem:[#allocation21_spill] sm:$0xff] }
 0x223   : > { %4752 = vmatmul.msk.f32.gmra.mxu1 %vm384_vm2, %v5818_v53  ;;  %4823 = vmatmul.msk.f32.gmra.mxu3 %vm384_vm2, %v7546_v45  ;;  %v7548_v53 = vld [vmem:[#allocation16_spill] sm:$0xff] }
 0x224   : > { %4788 = vmatmul.msk.f32.gmra.mxu2 %vm384_vm2, %v7545_v30  ;;  %v1519_v9 = vadd.f32 %v7548_v53, %v1178_v32  ;;  %v7552_v32 = vld [vmem:[#allocation20_spill] sm:$0xff]  ;;  %v7554_v53 = vld [vmem:[#allocation27_spill] sm:$0xff] }
 0x226   : > { %v1516_v60 = vpop.f32.mrf.mxu3  ;;  %4873 = vmatmul.msk.f32.gmra.mxu0 %vm384_vm2, %v6303_v4  ;;  %v1797_v6 = vadd.f32 %v1701_v33, %v1519_v9 }
 0x227   : > { %v1979_v13 = vpop.f32.mrf.mxu2  ;;  %v6301_v56 = vadd.f32 %v1516_v60, %v1271_v28  ;;  %v1520_v60 = vadd.f32 %v7552_v32, %v1181_v24  ;;  %v7556_v24 = vld [vmem:[#allocation25_spill] sm:$0xff] }
 0x228   : > { %v1704_v47 = vpop.f32.mrf.mxu1  ;;  %v2075_v28 = vadd.f32 %v1979_v13, %v1797_v6  ;;  %v1184_v13 = vadd.f32 %v7555_v14, %v6177_v15  ;;  %v7559_v15 = vld [vmem:[#allocation24_spill] sm:$0xff]  ;;  %v7560_v14 = vld [vmem:[#allocation29_spill] sm:$0xff] }
 0x229   : > { %v1798_v33 = vadd.f32 %v1704_v47, %v1520_v60 }
 0x22b   : > { %4753 = vmatmul.msk.f32.gmra.mxu1 %vm384_vm2, %v5840_v41  ;;  %4824 = vmatmul.msk.f32.gmra.mxu3 %vm384_vm2, %v7550_v3  ;;  %v7553_v41 = vld [vmem:[#allocation26_spill] sm:$0xff] }
 0x22c   : > { %4789 = vmatmul.msk.f32.gmra.mxu2 %vm384_vm2, %v7549_v23 }
 0x22e   : > { %v2257_v30 = vpop.f32.mrf.mxu3 }
 0x22f   : > { %v1982_v29 = vpop.f32.mrf.mxu2  ;;  %v6318_v45 = vadd.f32 %v2257_v30, %v2075_v28  ;;  %v1521_v28 = vadd.f32 %v7556_v24, %v1184_v13  ;;  %v7558_v30 = vld [vmem:[#allocation31_spill] sm:$0xff] }
 0x230   : > { %v1707_v46 = vpop.f32.mrf.mxu1  ;;  %v2076_v9 = vadd.f32 %v1982_v29, %v1798_v33  ;;  %v1187_v29 = vadd.f32 %v7559_v15, %v6191_v7  ;;  %v4912_v7 = vld [vmem:[%s7428_s3 + $0x100] sm:$0xff] }
 0x231   : > { %v1799_v47 = vadd.f32 %v1707_v46, %v1521_v28  ;;  %3090 = vmatpush.msrb.mxu2 %v4912_v7 }
 0x232   : > { %v1522_v13 = vadd.f32 %v7560_v14, %v1187_v29  ;;  %v7565_v29 = vld [vmem:[#allocation36_spill] sm:$0xff] }
 0x233   : > { %4754 = vmatmul.msk.f32.gmra.mxu1 %vm384_vm2, %v5860_v55  ;;  %4825 = vmatmul.msk.f32.gmra.mxu3 %vm384_vm2, %v7554_v53  ;;  %v7557_v55 = vld [vmem:[#allocation30_spill] sm:$0xff] }
 0x234   : > { %4790 = vmatmul.msk.f32.gmra.mxu2 %vm384_vm2, %v7553_v41 }
 0x236   : > { %v2260_v6 = vpop.f32.mrf.mxu3 }
 0x237   : > { %v1985_v23 = vpop.f32.mrf.mxu2  ;;  %v6329_v3 = vadd.f32 %v2260_v6, %v2076_v9  ;;  %v7562_v9 = vld [vmem:[#allocation34_spill] sm:$0xff] }
 0x238   : > { %v1710_v18 = vpop.f32.mrf.mxu1  ;;  %v2077_v32 = vadd.f32 %v1985_v23, %v1799_v47  ;;  %v7563_v23 = vld [vmem:[#allocation28_spill] sm:$0xff] }
 0x239   : > { %v1800_v46 = vadd.f32 %v1710_v18, %v1522_v13  ;;  %v1190_v6 = vadd.f32 %v7563_v23, %v6209_v44  ;;  %v4876_v18 = vld [vmem:[%s7428_s3 + $0xe0] sm:$0xff] }
 0x23a   : > { %2812 = vmatpush.msra.mxu1 %v4876_v18  ;;  %v7569_v23 = vld [vmem:[#allocation40_spill] sm:$0xff] }
 0x23b   : > { %4755 = vmatmul.msk.f32.gmra.mxu1 %vm384_vm2, %v5883_v61  ;;  %4826 = vmatmul.msk.f32.gmra.mxu3 %vm384_vm2, %v7558_v30  ;;  %v7561_v61 = vld [vmem:[#allocation33_spill] sm:$0xff]  ;;  %v7564_v30 = vld [vmem:[#allocation32_spill] sm:$0xff] }
 0x23c   : > { %4791 = vmatmul.msk.f32.gmra.mxu2 %vm384_vm2, %v7557_v55  ;;  %v1523_v15 = vadd.f32 %v7564_v30, %v1190_v6  ;;  %v7571_v30 = vld [vmem:[#allocation42_spill] sm:$0xff] }
 0x23e   : > { %v2263_v41 = vpop.f32.mrf.mxu3 }
 0x23f   : > { %v1988_v60 = vpop.f32.mrf.mxu2  ;;  %v6340_v33 = vadd.f32 %v2263_v41, %v2077_v32  ;;  %v7566_v32 = vld [vmem:[#allocation37_spill] sm:$0xff] }
 0x240   : > { %v1713_v53 = vpop.f32.mrf.mxu1  ;;  %v2078_v24 = vadd.f32 %v1988_v60, %v1800_v46  ;;  %v7567_v60 = vld [vmem:[#allocation35_spill] sm:$0xff] }
 0x241   : > { %v1801_v44 = vadd.f32 %v1713_v53, %v1523_v15  ;;  %v7570_v53 = vld [vmem:[#allocation38_spill] sm:$0xff]  ;;  %v7573_v15 = vld [vmem:[#allocation41_spill] sm:$0xff] }
 0x243   : > { %4756 = vmatmul.msk.f32.gmra.mxu1 %vm384_vm2, %v5901_v25  ;;  %4827 = vmatmul.msk.f32.gmra.mxu3 %vm384_vm2, %v7562_v9 }
 0x244   : > { %4792 = vmatmul.msk.f32.gmra.mxu2 %vm384_vm2, %v7561_v61 }
 0x246   : > { %v2266_v55 = vpop.f32.mrf.mxu3 }
 0x247   : > { %v1991_v28 = vpop.f32.mrf.mxu2  ;;  %v6354_v47 = vadd.f32 %v2266_v55, %v2078_v24 }
 0x248   : > { %v1716_v25 = vpop.f32.mrf.mxu1  ;;  %v2079_v14 = vadd.f32 %v1991_v28, %v1801_v44 }
 0x249   : > { %v1802_v41 = vadd.f32 %v1716_v25, %v7567_v60 }
 0x24b   : > { %4757 = vmatmul.msk.f32.gmra.mxu1 %vm384_vm2, %v5922_v11  ;;  %4828 = vmatmul.msk.f32.gmra.mxu3 %vm384_vm2, %v7566_v32  ;;  %v7568_v11 = vld [vmem:[#allocation39_spill] sm:$0xff] }
 0x24c   : > { %4793 = vmatmul.msk.f32.gmra.mxu2 %vm384_vm2, %v7565_v29 }
 0x24e   : > { %v2269_v46 = vpop.f32.mrf.mxu3 }
 0x24f   : > { %v1994_v13 = vpop.f32.mrf.mxu2  ;;  %v6367_v9 = vadd.f32 %v2269_v46, %v2079_v14 }
 0x250   : > { %v2080_v61 = vadd.f32 %v1994_v13, %v1802_v41  ;;  %v1719_v7 = vpop.f32.mrf.mxu1  ;;  %v7574_v13 = vld [vmem:[#allocation45_spill] sm:$0xff] }
 0x251   : > { %v1803_v6 = vadd.f32 %v1719_v7, %v7570_v53 }
 0x253   : > { %4758 = vmatmul.msk.f32.gmra.mxu1 %vm384_vm2, %v5940_v26  ;;  %4829 = vmatmul.msk.f32.gmra.mxu3 %vm384_vm2, %v7569_v23  ;;  %v7572_v26 = vld [vmem:[#allocation43_spill] sm:$0xff] }
 0x254   : > { %4794 = vmatmul.msk.f32.gmra.mxu2 %vm384_vm2, %v7568_v11 }
 0x256   : > { %v2272_v28 = vpop.f32.mrf.mxu3 }
 0x257   : > { %v1997_v24 = vpop.f32.mrf.mxu2  ;;  %v6376_v25 = vadd.f32 %v2272_v28, %v2080_v61  ;;  %v7576_v61 = vld [vmem:[#allocation44_spill] sm:$0xff] }
 0x258   : > { %v2081_v55 = vadd.f32 %v1997_v24, %v1803_v6  ;;  %v1722_v18 = vpop.f32.mrf.mxu1  ;;  %v7577_v24 = vld [vmem:[#allocation48_spill] sm:$0xff] }
 0x259   : > { %v1804_v29 = vadd.f32 %v1722_v18, %v7573_v15  ;;  %v7580_v15 = vld [vmem:[#allocation51_spill] sm:$0xff] }
 0x25b   : > { %4759 = vmatmul.msk.f32.gmra.mxu1 %vm384_vm2, %v5958_v16  ;;  %4830 = vmatmul.msk.f32.gmra.mxu3 %vm384_vm2, %v7572_v26  ;;  %v7575_v16 = vld [vmem:[#allocation46_spill] sm:$0xff] }
 0x25c   : > { %4795 = vmatmul.msk.f32.gmra.mxu2 %vm384_vm2, %v7571_v30 }
 0x25e   : > { %v2275_v60 = vpop.f32.mrf.mxu3 }
 0x25f   : > { %v2000_v44 = vpop.f32.mrf.mxu2  ;;  %v6385_v41 = vadd.f32 %v2275_v60, %v2081_v55  ;;  %v7579_v55 = vld [vmem:[#allocation47_spill] sm:$0xff] }
 0x260   : > { %v2082_v32 = vadd.f32 %v2000_v44, %v1804_v29  ;;  %v1725_v14 = vpop.f32.mrf.mxu1  ;;  %v7581_v29 = vld [vmem:[#allocation53_spill] sm:$0xff] }
 0x261   : > { %v1805_v46 = vadd.f32 %v1725_v14, %v7576_v61 }
 0x263   : > { %4760 = vmatmul.msk.f32.gmra.mxu1 %vm384_vm2, %v5976_v31  ;;  %4831 = vmatmul.msk.f32.gmra.mxu3 %vm384_vm2, %v7575_v16  ;;  %v7578_v31 = vld [vmem:[#allocation49_spill] sm:$0xff] }
 0x264   : > { %4796 = vmatmul.msk.f32.gmra.mxu2 %vm384_vm2, %v7574_v13  ;;  %v7583_v13 = vld [vmem:[#allocation55_spill] sm:$0xff] }
 0x266   : > { %v2278_v23 = vpop.f32.mrf.mxu3 }
 0x267   : > { %v2003_v7 = vpop.f32.mrf.mxu2  ;;  %v6396_v53 = vadd.f32 %v2278_v23, %v2082_v32  ;;  %v6425_v23 = vpop.f32.mrf.mxu0 }
 0x268   : > { %v6394_v11 = vadd.f32 %v2003_v7, %v1805_v46  ;;  %v1728_v6 = vpop.f32.mrf.mxu1 }
 0x269   : > { %v1806_v28 = vadd.f32 %v1728_v6, %v7579_v55 }
 0x26b   : > { %4761 = vmatmul.msk.f32.gmra.mxu1 %vm384_vm2, %v5994_v43  ;;  %4832 = vmatmul.msk.f32.gmra.mxu3 %vm384_vm2, %v7578_v31  ;;  %v7582_v43 = vld [vmem:[#allocation50_spill] sm:$0xff] }
 0x26c   : > { %4797 = vmatmul.msk.f32.gmra.mxu2 %vm384_vm2, %v7577_v24 }
 0x26f   : > { %v2006_v18 = vpop.f32.mrf.mxu2 }
 0x270   : > { %v6405_v30 = vadd.f32 %v2006_v18, %v1806_v28  ;;  %v1731_v26 = vpop.f32.mrf.mxu1  ;;  %v2417_v28 = vld [vmem:[#allocation2 + $0x1a0] sm:$0xff] }
 0x271   : > { %v1807_v44 = vadd.f32 %v1731_v26, %v7582_v43  ;;  %v6449_v43 = vld [vmem:[#allocation2 + $0x181] sm:$0xff] }
 0x273   : > { %4762 = vmatmul.msk.f32.gmra.mxu1 %vm384_vm2, %v7535_v63  ;;  %4833 = vmatmul.msk.f32.gmra.mxu3 %vm384_vm2, %v7581_v29  ;;  %v7584_v63 = vld [vmem:[#allocation54_spill] sm:$0xff] }
 0x274   : > { %4798 = vmatmul.msk.f32.gmra.mxu2 %vm384_vm2, %v7580_v15 }
 0x277   : > { %v2009_v32 = vpop.f32.mrf.mxu2 }
 0x278   : > { %v6414_v60 = vadd.f32 %v2009_v32, %v1807_v44  ;;  %v1734_v14 = vpop.f32.mrf.mxu1 }
 0x279   : > { %v1808_v16 = vadd.f32 %v1734_v14, %v7584_v63 }
 0x27b   : > { %4763 = vmatmul.msk.f32.gmra.mxu1 %vm384_vm2, %v7538_v37  ;;  %4834 = vmatmul.msk.f32.gmra.mxu3 %vm384_vm2, %v6050_v22  ;;  %v2416_v37 = vld [vmem:[#allocation2 + $0x198] sm:$0xff]  ;;  %v7585_v22 = vld [vmem:[#allocation57_spill] sm:$0xff] }
 0x27c   : > { %4799 = vmatmul.msk.f32.gmra.mxu2 %vm384_vm2, %v7583_v13  ;;  %4874 = vmatmul.msk.f32.gmra.mxu0 %vm384_vm2, %v2416_v37  ;;  %v6460_v13 = vld [vmem:[#allocation2 + $0x189] sm:$0xff]  ;;  %v2942_v37 = vld [vmem:[#allocation2 + $0x32] sm:$0xff] }
 0x27f   : > { %v2012_v61 = vpop.f32.mrf.mxu2 }
 0x280   : > { %v6423_v46 = vadd.f32 %v2012_v61, %v1808_v16  ;;  %v1737_v7 = vpop.f32.mrf.mxu1 }
 0x281   : > { %v1809_v6 = vadd.f32 %v1737_v7, %v7585_v22  ;;  %v2664_v7 = vld [vmem:[#allocation2 + $0x31] sm:$0xff] }
 0x282   : > { %v6473_v22 = vld [vmem:[#allocation2 + $0x18a] sm:$0xff] }
 0x283   : > { %4764 = vmatmul.msk.f32.gmra.mxu1 %vm384_vm2, %v6066_v0  ;;  %4835 = vmatmul.msk.f32.gmra.mxu3 %vm384_vm2, %v6073_v36  ;;  %v7586_v0 = vld [vmem:[#allocation59_spill] sm:$0xff]  ;;  %v7587_v36 = vld [vmem:[#allocation58_spill] sm:$0xff] }
 0x284   : > { %4800 = vmatmul.msk.f32.gmra.mxu2 %vm384_vm2, %v6064_v54  ;;  %v6441_v54 = vpop.f32.mrf.mxu0  ;;  %4875 = vmatmul.msk.f32.gmra.mxu0 %vm384_vm2, %v2417_v28  ;;  %v2943_v28 = vld [vmem:[#allocation2 + $0x3a] sm:$0xff] }
 0x287   : > { %v2015_v24 = vpop.f32.mrf.mxu2 }
 0x288   : > { %v6435_v31 = vadd.f32 %v2015_v24, %v1809_v6  ;;  %v1740_v55 = vpop.f32.mrf.mxu1 }
 0x289   : > { %v1810_v18 = vadd.f32 %v1740_v55, %v7587_v36  ;;  %v2665_v55 = vld [vmem:[#allocation2 + $0x39] sm:$0xff] }
 0x28b   : > { %4765 = vmatmul.msk.f32.gmra.mxu1 %vm384_vm2, %v6083_v39  ;;  %4836 = vmatmul.msk.f32.gmra.mxu3 %vm384_vm2, %v7586_v0 }
 0x28c   : > { %4801 = vmatmul.msk.f32.gmra.mxu2 %vm384_vm2, %v6081_v2  ;;  %v7588_v2 = vld [vmem:[#allocation60_spill] sm:$0xff] }
 0x28f   : > { %v2018_v26 = vpop.f32.mrf.mxu2 }
 0x290   : > { %v6447_v15 = vadd.f32 %v2018_v26, %v1810_v18  ;;  %v1743_v29 = vpop.f32.mrf.mxu1 }
 0x291   : > { %v1811_v39 = vadd.f32 %v1743_v29, %v7588_v2  ;;  %v2666_v29 = vld [vmem:[#allocation2 + $0x49] sm:$0xff] }
 0x292   : > { %v2944_v2 = vld [vmem:[#allocation2 + $0x4a] sm:$0xff] }
 0x293   : > { %4766 = vmatmul.msk.f32.gmra.mxu1 %vm384_vm2, %v6289_v50  ;;  %4837 = vmatmul.msk.f32.gmra.mxu3 %vm384_vm2, %v6097_v34  ;;  %v6466_v50 = vld [vmem:[#allocation2 + $0x182] sm:$0xff] }
 0x294   : > { %4802 = vmatmul.msk.f32.gmra.mxu2 %vm384_vm2, %v6449_v43 }
 0x297   : > { %v2021_v44 = vpop.f32.mrf.mxu2 }
 0x298   : > { %v6458_v32 = vadd.f32 %v2021_v44, %v1811_v39  ;;  %v1746_v14 = vpop.f32.mrf.mxu1 }
 0x299   : > { %v1812_v34 = vadd.f32 %v1746_v14, %v6105_v10 }
 0x29b   : > { %4767 = vmatmul.msk.f32.gmra.mxu1 %vm384_vm2, %v6303_v4  ;;  %4838 = vmatmul.msk.f32.gmra.mxu3 %vm384_vm2, %v6466_v50 }
 0x29c   : > { %4803 = vmatmul.msk.f32.gmra.mxu2 %vm384_vm2, %v6460_v13 }
 0x29f   : > { %v2024_v63 = vpop.f32.mrf.mxu2 }
 0x2a0   : > { %v6471_v16 = vadd.f32 %v2024_v63, %v1812_v34  ;;  %v1749_v61 = vpop.f32.mrf.mxu1  ;;  %v2667_v34 = vld [vmem:[#allocation2 + $0x51] sm:$0xff] }
 0x2a1   : > { %v1813_v4 = vadd.f32 %v1749_v61, %v6115_v1  ;;  %v2945_v63 = vld [vmem:[#allocation2 + $0x52] sm:$0xff] }
 0x2a3   : > { %4880 = vmatmul.msk.f32.vlgmr.msra.gmra.mxu1 %vm384_vm2, %v2664_v7  ;;  %4839 = vmatmul.msk.f32.gmra.mxu3 %vm384_vm2, %v6473_v22 }
 0x2a4   : > { %4916 = vmatmul.msk.f32.vlgmr.msrb.gmra.mxu2 %vm384_vm2, %v2942_v37 }
 0x2a7   : > { %v2027_v6 = vpop.f32.mrf.mxu2 }
 0x2a8   : > { %v6480_v24 = vadd.f32 %v2027_v6, %v1813_v4  ;;  %v1752_v10 = vpop.f32.mrf.mxu1  ;;  %v2668_v4 = vld [vmem:[#allocation2 + $0x61] sm:$0xff] }
 0x2a9   : > { %v1814_v0 = vadd.f32 %v1752_v10, %v6125_v40  ;;  %v2946_v6 = vld [vmem:[#allocation2 + $0x62] sm:$0xff] }
 0x2ab   : > { %4881 = vmatmul.msk.f32.gmra.mxu1 %vm384_vm2, %v2665_v55 }
 0x2ac   : > { %4917 = vmatmul.msk.f32.gmra.mxu2 %vm384_vm2, %v2943_v28 }
 0x2af   : > { %v2030_v36 = vpop.f32.mrf.mxu2 }
 0x2b0   : > { %v6485_v18 = vadd.f32 %v2030_v36, %v1814_v0  ;;  %v1755_v26 = vpop.f32.mrf.mxu1  ;;  %v3582_v0 = vld [vmem:[%s7430_s5 + $0x38] sm:$0xff]  ;;  %v2669_v36 = vld [vmem:[#allocation2 + $0x69] sm:$0xff] }
 0x2b1   : > { %v1815_v1 = vadd.f32 %v1755_v26, %v6135_v52  ;;  %v4955_v52 = vld [vmem:[%s7430_s5 + $0x78] sm:$0xff]  ;;  %v2947_v26 = vld [vmem:[#allocation2 + $0x6a] sm:$0xff]  ;;  %3697 = vmatpush.msrb.mxu0 %v3582_v0 }
 0x2b2   : > { %3632 = vmatpush.msra.mxu3 %v4955_v52  ;;  %v2949_v52 = vld [vmem:[#allocation2 + $0x82] sm:$0xff] }
 0x2b3   : > { %4882 = vmatmul.msk.f32.gmra.mxu1 %vm384_vm2, %v2666_v29 }
 0x2b4   : > { %4918 = vmatmul.msk.f32.gmra.mxu2 %vm384_vm2, %v2944_v2 }
 0x2b7   : > { %v2033_v39 = vpop.f32.mrf.mxu2 }
 0x2b8   : > { %v6490_v44 = vadd.f32 %v2033_v39, %v1815_v1  ;;  %v1758_v14 = vpop.f32.mrf.mxu1  ;;  %v2670_v39 = vld [vmem:[#allocation2 + $0x79] sm:$0xff] }
 0x2b9   : > { %v1816_v40 = vadd.f32 %v1758_v14, %v6150_v17  ;;  %v2948_v14 = vld [vmem:[#allocation2 + $0x7a] sm:$0xff] }
 0x2bb   : > { %4883 = vmatmul.msk.f32.gmra.mxu1 %vm384_vm2, %v2667_v34 }
 0x2bc   : > { %4919 = vmatmul.msk.f32.gmra.mxu2 %vm384_vm2, %v2945_v63 }
 0x2bf   : > { %v2036_v61 = vpop.f32.mrf.mxu2 }
 0x2c0   : > { %v6495_v7 = vadd.f32 %v2036_v61, %v1816_v40  ;;  %v1761_v37 = vpop.f32.mrf.mxu1 }
 0x2c1   : > { %v1817_v10 = vadd.f32 %v1761_v37, %v6165_v49  ;;  %v2671_v37 = vld [vmem:[#allocation2 + $0x81] sm:$0xff] }
 0x2c3   : > { %4884 = vmatmul.msk.f32.gmra.mxu1 %vm384_vm2, %v2668_v4 }
 0x2c4   : > { %4920 = vmatmul.msk.f32.gmra.mxu2 %vm384_vm2, %v2946_v6 }
 0x2c7   : > { %v2039_v55 = vpop.f32.mrf.mxu2 }
 0x2c8   : > { %v6503_v28 = vadd.f32 %v2039_v55, %v1817_v10  ;;  %v1764_v17 = vpop.f32.mrf.mxu1  ;;  %v2672_v55 = vld [vmem:[#allocation2 + $0x91] sm:$0xff] }
 0x2c9   : > { %v1818_v29 = vadd.f32 %v1764_v17, %v6175_v62  ;;  %v2950_v17 = vld [vmem:[#allocation2 + $0x92] sm:$0xff] }
 0x2cb   : > { %4885 = vmatmul.msk.f32.gmra.mxu1 %vm384_vm2, %v2669_v36 }
 0x2cc   : > { %4921 = vmatmul.msk.f32.gmra.mxu2 %vm384_vm2, %v2947_v26 }
 0x2cf   : > { %v2042_v2 = vpop.f32.mrf.mxu2 }
 0x2d0   : > { %v6511_v1 = vadd.f32 %v2042_v2, %v1818_v29  ;;  %v1767_v49 = vpop.f32.mrf.mxu1  ;;  %v3581_v29 = vld [vmem:[%s7430_s5 + $0x30] sm:$0xff]  ;;  %v2673_v2 = vld [vmem:[#allocation2 + $0x99] sm:$0xff] }
 0x2d1   : > { %v1819_v34 = vadd.f32 %v1767_v49, %v6187_v48  ;;  %v4954_v48 = vld [vmem:[%s7430_s5 + $0x70] sm:$0xff]  ;;  %v2951_v49 = vld [vmem:[#allocation2 + $0x9a] sm:$0xff]  ;;  %3698 = vmatpush.msrb.mxu0 %v3581_v29 }
 0x2d2   : > { %3633 = vmatpush.msra.mxu3 %v4954_v48  ;;  %v2953_v48 = vld [vmem:[#allocation2 + $0xb2] sm:$0xff] }
 0x2d3   : > { %4886 = vmatmul.msk.f32.gmra.mxu1 %vm384_vm2, %v2670_v39 }
 0x2d4   : > { %4922 = vmatmul.msk.f32.gmra.mxu2 %vm384_vm2, %v2948_v14 }
 0x2d7   : > { %v2045_v63 = vpop.f32.mrf.mxu2 }
 0x2d8   : > { %v6516_v40 = vadd.f32 %v2045_v63, %v1819_v34  ;;  %v1770_v61 = vpop.f32.mrf.mxu1  ;;  %v2674_v63 = vld [vmem:[#allocation2 + $0xa9] sm:$0xff] }
 0x2d9   : > { %v1820_v62 = vadd.f32 %v1770_v61, %v6199_v42  ;;  %v2952_v61 = vld [vmem:[#allocation2 + $0xaa] sm:$0xff] }
 0x2db   : > { %4887 = vmatmul.msk.f32.gmra.mxu1 %vm384_vm2, %v2671_v37 }
 0x2dc   : > { %4923 = vmatmul.msk.f32.gmra.mxu2 %vm384_vm2, %v2949_v52 }
 0x2df   : > { %v2048_v4 = vpop.f32.mrf.mxu2 }
 0x2e0   : > { %v6521_v6 = vadd.f32 %v2048_v4, %v1820_v62  ;;  %v1773_v10 = vpop.f32.mrf.mxu1 }
 0x2e1   : > { %v1821_v0 = vadd.f32 %v1773_v10, %v6211_v12  ;;  %v2675_v10 = vld [vmem:[#allocation2 + $0xb1] sm:$0xff] }
 0x2e3   : > { %4888 = vmatmul.msk.f32.gmra.mxu1 %vm384_vm2, %v2672_v55 }
 0x2e4   : > { %4924 = vmatmul.msk.f32.gmra.mxu2 %vm384_vm2, %v2950_v17 }
 0x2e7   : > { %v2051_v36 = vpop.f32.mrf.mxu2 }
 0x2e8   : > { %v6529_v26 = vadd.f32 %v2051_v36, %v1821_v0  ;;  %v1776_v42 = vpop.f32.mrf.mxu1  ;;  %v2676_v36 = vld [vmem:[#allocation2 + $0xc1] sm:$0xff] }
 0x2e9   : > { %v1822_v39 = vadd.f32 %v1776_v42, %v6223_v57  ;;  %v2954_v42 = vld [vmem:[#allocation2 + $0xc2] sm:$0xff] }
 0x2eb   : > { %4889 = vmatmul.msk.f32.gmra.mxu1 %vm384_vm2, %v2673_v2 }
 0x2ec   : > { %4925 = vmatmul.msk.f32.gmra.mxu2 %vm384_vm2, %v2951_v49 }
 0x2ef   : > { %v2054_v14 = vpop.f32.mrf.mxu2 }
 0x2f0   : > { %v6537_v34 = vadd.f32 %v2054_v14, %v1822_v39  ;;  %v1779_v12 = vpop.f32.mrf.mxu1  ;;  %v2677_v39 = vld [vmem:[#allocation2 + $0xc9] sm:$0xff] }
 0x2f1   : > { %v1823_v37 = vadd.f32 %v1779_v12, %v6233_v19  ;;  %v4953_v19 = vld [vmem:[%s7430_s5 + $0x68] sm:$0xff] }
 0x2f2   : > { %3634 = vmatpush.msra.mxu3 %v4953_v19  ;;  %v2955_v14 = vld [vmem:[#allocation2 + $0xca] sm:$0xff] }
 0x2f3   : > { %4890 = vmatmul.msk.f32.gmra.mxu1 %vm384_vm2, %v2674_v63  ;;  %v3580_v12 = vld [vmem:[%s7430_s5 + $0x28] sm:$0xff] }
 0x2f4   : > { %4926 = vmatmul.msk.f32.gmra.mxu2 %vm384_vm2, %v2952_v61  ;;  %3699 = vmatpush.msrb.mxu0 %v3580_v12  ;;  %v2681_v12 = vld [vmem:[#allocation2 + $0xf9] sm:$0xff] }
 0x2f7   : > { %v2057_v52 = vpop.f32.mrf.mxu2 }
 0x2f8   : > { %v6542_v62 = vadd.f32 %v2057_v52, %v1823_v37  ;;  %v1782_v4 = vpop.f32.mrf.mxu1  ;;  %v2678_v52 = vld [vmem:[#allocation2 + $0xd9] sm:$0xff] }
 0x2f9   : > { %v1824_v57 = vadd.f32 %v1782_v4, %v6248_v5  ;;  %v2956_v4 = vld [vmem:[#allocation2 + $0xda] sm:$0xff] }
 0x2fb   : > { %4891 = vmatmul.msk.f32.gmra.mxu1 %vm384_vm2, %v2675_v10 }
 0x2fc   : > { %4927 = vmatmul.msk.f32.gmra.mxu2 %vm384_vm2, %v2953_v48 }
 0x2ff   : > { %v2060_v55 = vpop.f32.mrf.mxu2 }
 0x300   : > { %v6547_v17 = vadd.f32 %v2060_v55, %v1824_v57  ;;  %v1785_v0 = vpop.f32.mrf.mxu1 }
 0x301   : > { %v1825_v29 = vadd.f32 %v1785_v0, %v6263_v58  ;;  %v2679_v0 = vld [vmem:[#allocation2 + $0xe1] sm:$0xff] }
 0x303   : > { %4892 = vmatmul.msk.f32.gmra.mxu1 %vm384_vm2, %v2676_v36  ;;  %v2957_v36 = vld [vmem:[#allocation2 + $0xe2] sm:$0xff] }
 0x304   : > { %4928 = vmatmul.msk.f32.gmra.mxu2 %vm384_vm2, %v2954_v42 }
 0x307   : > { %v2063_v2 = vpop.f32.mrf.mxu2 }
 0x308   : > { %v6555_v49 = vadd.f32 %v2063_v2, %v1825_v29  ;;  %v1788_v5 = vpop.f32.mrf.mxu1  ;;  %v2680_v2 = vld [vmem:[#allocation2 + $0xf1] sm:$0xff] }
 0x309   : > { %v1826_v63 = vadd.f32 %v1788_v5, %v6275_v20  ;;  %v2958_v5 = vld [vmem:[#allocation2 + $0xf2] sm:$0xff] }
 0x30b   : > { %4893 = vmatmul.msk.f32.gmra.mxu1 %vm384_vm2, %v2677_v39 }
 0x30c   : > { %4929 = vmatmul.msk.f32.gmra.mxu2 %vm384_vm2, %v2955_v14  ;;  %v7589_v14 = vmov 0.0  }
 0x30d   : > { %444 = vst.msk [vmem:[#allocation3 + $0x10] sm:$0xff] %vm440_vm4, %v7589_v14 }
 0x30e   : > { %445 = vst.msk [vmem:[#allocation3 + $0x18] sm:$0x3] %vm442_vm5, %v7589_v14 }
 0x30f   : > { %v2066_v61 = vpop.f32.mrf.mxu2  ;;  %441 = vst.msk [vmem:[#allocation3] sm:$0xff] %vm440_vm4, %v7589_v14 }
 0x310   : > { %v6563_v37 = vadd.f32 %v2066_v61, %v1826_v63  ;;  %v1791_v58 = vpop.f32.mrf.mxu1  ;;  %v4952_v63 = vld [vmem:[%s7430_s5 + $0x60] sm:$0xff]  ;;  %443 = vst.msk [vmem:[#allocation3 + $0x8] sm:$0x3] %vm442_vm5, %v7589_v14 }
 0x311   : > { %v1827_v10 = vadd.f32 %v1791_v58, %v6287_v35  ;;  %v3579_v61 = vld [vmem:[%s7430_s5 + $0x20] sm:$0xff]  ;;  %446 = vst.msk [vmem:[#allocation3 + $0x20] sm:$0xff] %vm440_vm4, %v7589_v14  ;;  %3635 = vmatpush.msra.mxu3 %v4952_v63  ;;  %v4951_v58 = vld [vmem:[%s7430_s5 + $0x58] sm:$0xff]  ;;  %v2634_v63 = vadd.f32 %v6255_v38, %v6340_v33 }
 0x312   : > { %3700 = vmatpush.msrb.mxu0 %v3579_v61  ;;  %447 = vst.msk [vmem:[#allocation3 + $0x28] sm:$0x3] %vm442_vm5, %v7589_v14 }
 0x313   : > { %4894 = vmatmul.msk.f32.gmra.mxu1 %vm384_vm2, %v2678_v52  ;;  %v3578_v52 = vld [vmem:[%s7430_s5 + $0x18] sm:$0xff]  ;;  %448 = vst.msk [vmem:[#allocation3 + $0x30] sm:$0xff] %vm440_vm4, %v7589_v14  ;;  %3636 = vmatpush.msra.mxu3 %v4951_v58 }
 0x314   : > { %4930 = vmatmul.msk.f32.gmra.mxu2 %vm384_vm2, %v2956_v4  ;;  %v6605_v4 = vpop.f32.mrf.mxu3  ;;  %3701 = vmatpush.msrb.mxu0 %v3578_v52  ;;  %449 = vst.msk [vmem:[#allocation3 + $0x38] sm:$0x3] %vm442_vm5, %v7589_v14  ;;  %v6648_v52 = vpop.f32.mrf.mxu0 }
 0x315   : > { %450 = vst.msk [vmem:[#allocation3 + $0x40] sm:$0xff] %vm440_vm4, %v7589_v14 }
 0x316   : > { %451 = vst.msk [vmem:[#allocation3 + $0x48] sm:$0x3] %vm442_vm5, %v7589_v14  ;;  %v3567_v58 = vld [vmem:[#allocation3] sm:$0xff] }
 0x317   : > { %v2069_v48 = vpop.f32.mrf.mxu2  ;;  %452 = vst.msk [vmem:[#allocation3 + $0x50] sm:$0xff] %vm440_vm4, %v7589_v14  ;;  %v3583_v61 = vld [vmem:[#allocation3 + $0x1] sm:$0xff] }
 0x318   : > { %v6568_v57 = vadd.f32 %v2069_v48, %v1827_v10  ;;  %v1794_v55 = vpop.f32.mrf.mxu1  ;;  %v4950_v48 = vld [vmem:[%s7430_s5 + $0x50] sm:$0xff]  ;;  %453 = vst.msk [vmem:[#allocation3 + $0x58] sm:$0x3] %vm442_vm5, %v7589_v14 }
 0x319   : > { %v1828_v20 = vadd.f32 %v1794_v55, %v6301_v56  ;;  %v2959_v56 = vld [vmem:[#allocation2 + $0xfa] sm:$0xff]  ;;  %v3577_v55 = vld [vmem:[%s7430_s5 + $0x10] sm:$0xff]  ;;  %3637 = vmatpush.msra.mxu3 %v4950_v48  ;;  %454 = vst.msk [vmem:[#allocation3 + $0x60] sm:$0xff] %vm440_vm4, %v7589_v14  ;;  %v2633_v48 = vadd.f32 %v6235_v21, %v6329_v3 }
 0x31a   : > { %3702 = vmatpush.msrb.mxu0 %v3577_v55  ;;  %455 = vst.msk [vmem:[#allocation3 + $0x68] sm:$0x3] %vm442_vm5, %v7589_v14 }
 0x31b   : > { %4895 = vmatmul.msk.f32.gmra.mxu1 %vm384_vm2, %v2679_v0  ;;  %v2632_v0 = vadd.f32 %v6221_v59, %v6318_v45  ;;  %v2960_v59 = vld [vmem:[#allocation2 + $0x10a] sm:$0xff]  ;;  %v4948_v45 = vld [vmem:[%s7430_s5 + $0x40] sm:$0xff]  ;;  %456 = vst.msk [vmem:[#allocation3 + $0x70] sm:$0xff] %vm440_vm4, %v7589_v14 }
 0x31c   : > { %4931 = vmatmul.msk.f32.gmra.mxu2 %vm384_vm2, %v2957_v36  ;;  %457 = vst.msk [vmem:[#allocation3 + $0x78] sm:$0x3] %vm442_vm5, %v7589_v14 }
 0x31d   : > { %458 = vst.msk [vmem:[#allocation3 + $0x80] sm:$0xff] %vm440_vm4, %v7589_v14 }
 0x31e   : > { %459 = vst.msk [vmem:[#allocation3 + $0x88] sm:$0x3] %vm442_vm5, %v7589_v14 }
 0x31f   : > { %v2072_v42 = vpop.f32.mrf.mxu2  ;;  %460 = vst.msk [vmem:[#allocation3 + $0x90] sm:$0xff] %vm440_vm4, %v7589_v14 }
 0x320   : > { %v6573_v19 = vadd.f32 %v2072_v42, %v1828_v20  ;;  %v2814_v29 = vpop.f32.mrf.mxu1  ;;  %v4949_v20 = vld [vmem:[%s7430_s5 + $0x48] sm:$0xff]  ;;  %461 = vst.msk [vmem:[#allocation3 + $0x98] sm:$0x3] %vm442_vm5, %v7589_v14 }
 0x321   : > { %v3576_v42 = vld [vmem:[%s7430_s5 + $0x8] sm:$0xff]  ;;  %3638 = vmatpush.msra.mxu3 %v4949_v20 }
 0x322   : > { %3703 = vmatpush.msrb.mxu0 %v3576_v42 }
 0x323   : > { %4896 = vmatmul.msk.f32.gmra.mxu1 %vm384_vm2, %v2680_v2  ;;  %v2910_v2 = vadd.f32 %v2814_v29, %v2632_v0  ;;  %v6640_v29 = vld [vmem:[%s7429_s4] ss:$0 sm:$0xff]  ;;  %3639 = vmatpush.msra.mxu3 %v4948_v45  ;;  %v6663_v0 = vpop.f32.mrf.mxu3  ;;  %v2635_v45 = vadd.f32 %v6273_v51, %v6354_v47 }
 0x324   : > { %4932 = vmatmul.msk.f32.gmra.mxu2 %vm384_vm2, %v2958_v5  ;;  %v2682_v5 = vld [vmem:[#allocation2 + $0x109] sm:$0xff]  ;;  %4956 = vmatmul.msk.f32.vlgmr.msra.gmra.mxu3 %vm440_vm4, %v3583_v61 }
 0x327   : > { %v3092_v35 = vpop.f32.mrf.mxu2 }
 0x328   : > { %v6577_v39 = vpop.f32.mrf.mxu1 }
 0x329   : > { %v2911_v20 = vadd.f32 %v6577_v39, %v2633_v48  ;;  %v2962_v48 = vld [vmem:[#allocation2 + $0x122] sm:$0xff] }
 0x32b   : > { %4897 = vmatmul.msk.f32.gmra.mxu1 %vm384_vm2, %v2681_v12  ;;  %v3575_v12 = vld [vmem:[%s7430_s5] sm:$0xff]  ;;  %v6683_v47 = vpop.f32.mrf.mxu3 }
 0x32c   : > { %4933 = vmatmul.msk.f32.gmra.mxu2 %vm384_vm2, %v2959_v56  ;;  %v3188_v56 = vadd.f32 %v3092_v35, %v2910_v2  ;;  %3704 = vmatpush.msrb.mxu0 %v3575_v12  ;;  %v2683_v2 = vld [vmem:[#allocation2 + $0x111] sm:$0xff] }
 0x32d   : > { %4964 = vmatmul.msk.f32.vlgmr.msrb.gmra.mxu0 %vm440_vm4, %v3567_v58 }
 0x32e   : > { %v3224_v33 = vadd.f32 %v6640_v29, %v3188_v56  ;;  %v6679_v56 = vpop.f32.mrf.mxu0 }
 0x32f   : > { %v3095_v10 = vpop.f32.mrf.mxu2 }
 0x330   : > { %v2820_v36 = vpop.f32.mrf.mxu1  ;;  %v3256_v21 = vmax.f32 %v3224_v33, 0.0  ;;  %v3189_v3 = vadd.f32 %v3095_v10, %v2911_v20  ;;  %v2684_v33 = vld [vmem:[#allocation2 + $0x121] sm:$0xff] }
 0x331   : > { %v2912_v35 = vadd.f32 %v2820_v36, %v2634_v63 }
 0x332   : > { %v3225_v61 = vadd.f32 %v6640_v29, %v3189_v3 }
 0x333   : > { %4898 = vmatmul.msk.f32.gmra.mxu1 %vm384_vm2, %v2682_v5  ;;  %v2961_v5 = vld [vmem:[#allocation2 + $0x112] sm:$0xff] }
 0x334   : > { %4934 = vmatmul.msk.f32.gmra.mxu2 %vm384_vm2, %v2960_v59 }
 0x336   : > { %v6688_v3 = vpop.f32.mrf.mxu0 }
 0x337   : > { %v3098_v38 = vpop.f32.mrf.mxu2 }
 0x338   : > { %v3190_v55 = vadd.f32 %v3098_v38, %v2912_v35  ;;  %v2823_v36 = vpop.f32.mrf.mxu1 }
 0x339   : > { %v2913_v12 = vadd.f32 %v2823_v36, %v2635_v45 }
 0x33a   : > { %v3226_v42 = vadd.f32 %v6640_v29, %v3190_v55  ;;  %v3257_v55 = vmax.f32 %v3225_v61, 0.0  ;;  %v2963_v61 = vld [vmem:[#allocation2 + $0x12a] sm:$0xff] }
 0x33b   : > { %4899 = vmatmul.msk.f32.gmra.mxu1 %vm384_vm2, %v2683_v2 }
 0x33c   : > { %v3258_v59 = vmax.f32 %v3226_v42, 0.0  ;;  %4935 = vmatmul.msk.f32.gmra.mxu2 %vm384_vm2, %v2961_v5 }
 0x33e   : > { %v3288_v39 = vmax.f32 %v3256_v21, %v3258_v59 }
 0x33f   : > { %v3101_v63 = vpop.f32.mrf.mxu2 }
 0x340   : > { %v3312_v58 = vrot.slane %v3288_v39, 1  ;;  %v3191_v10 = vadd.f32 %v3101_v63, %v2913_v12  ;;  %v2826_v35 = vpop.f32.mrf.mxu1  ;;  %v2685_v63 = vld [vmem:[#allocation2 + $0x129] sm:$0xff] }
 0x342   : > { %v3328_v38 = vmax.f32 %v3288_v39, %v3312_v58  ;;  %v3227_v51 = vadd.f32 %v6640_v29, %v3191_v10 }
 0x343   : > { %4900 = vmatmul.msk.f32.gmra.mxu1 %vm384_vm2, %v2684_v33 }
 0x344   : > { %v3376_v20 = vrot.slane %v3328_v38, 1  ;;  %v3259_v14 = vmax.f32 %v3227_v51, 0.0  ;;  %4936 = vmatmul.msk.f32.gmra.mxu2 %vm384_vm2, %v2962_v48  ;;  %v3392_v36 = vrot.slane %v3328_v38, 2  ;;  %v3408_v12 = vrot.slane %v3328_v38, 3  ;;  %v6693_v51 = vpop.f32.mrf.mxu3 }
 0x346   : > { %v3289_v42 = vmax.f32 %v3257_v55, %v3259_v14  ;;  %v3497_v2 = vsel %vm3496_vm6, %v3328_v38, %v3376_v20 }
 0x347   : > { %v3104_v5 = vpop.f32.mrf.mxu2  ;;  %v3506_v45 = vsel %vm3505_vm7, %v3497_v2, %v3392_v36 }
 0x348   : > { %v3344_v21 = vrot.slane %v3289_v42, 1  ;;  %v2829_v59 = vpop.f32.mrf.mxu1  ;;  %v3515_v33 = vsel %vm3514_vm8, %v3506_v45, %v3408_v12  ;;  %v6703_v12 = vpop.f32.mrf.mxu0 }
 0x34a   : > { %v3360_v39 = vmax.f32 %v3289_v42, %v3344_v21  ;;  %v2636_v42 = vadd.f32 %v6285_v27, %v6367_v9 }
 0x34b   : > { %4901 = vmatmul.msk.f32.gmra.mxu1 %vm384_vm2, %v2685_v63  ;;  %v2686_v63 = vld [vmem:[#allocation2 + $0x139] sm:$0xff] }
 0x34c   : > { %v3432_v58 = vrot.slane %v3360_v39, 4  ;;  %v3448_v10 = vrot.slane %v3360_v39, 5  ;;  %4937 = vmatmul.msk.f32.gmra.mxu2 %vm384_vm2, %v2963_v61  ;;  %v3464_v48 = vrot.slane %v3360_v39, 6  ;;  %v3480_v20 = vrot.slane %v3360_v39, 7  ;;  %v2964_v61 = vld [vmem:[#allocation2 + $0x13a] sm:$0xff]  ;;  %v6709_v27 = vpop.f32.mrf.mxu3 }
 0x34d   : > { %v2914_v45 = vadd.f32 %v2826_v35, %v2636_v42  ;;  %v2638_v39 = vadd.f32 %v6425_v23, %v6385_v41  ;;  %v2637_v35 = vadd.f32 %v6305_v8, %v6376_v25  ;;  %v2687_v23 = vld [vmem:[#allocation2 + $0x141] sm:$0xff]  ;;  %v2639_v8 = vadd.f32 %v6441_v54, %v6396_v53  ;;  %v2688_v53 = vld [vmem:[#allocation2 + $0x151] sm:$0xff] }
 0x34e   : > { %v3523_v55 = vsel %vm600_vm0, %v3515_v33, %v3432_v58  ;;  %v2966_v54 = vld [vmem:[#allocation2 + $0x152] sm:$0xff] }
 0x34f   : > { %v3532_v38 = vsel %vm3531_vm9, %v3523_v55, %v3448_v10  ;;  %v3107_v14 = vpop.f32.mrf.mxu2  ;;  %v3192_v58 = vadd.f32 %v3104_v5, %v2914_v45 }
 0x350   : > { %v3541_v36 = vsel %vm3540_vm10, %v3532_v38, %v3464_v48  ;;  %v2832_v21 = vpop.f32.mrf.mxu1  ;;  %v2915_v38 = vadd.f32 %v2829_v59, %v2637_v35  ;;  %v6724_v25 = vpop.f32.mrf.mxu0 }
 0x351   : > { %v3550_v2 = vsel %vm3549_vm11, %v3541_v36, %v3480_v20  ;;  %v2916_v10 = vadd.f32 %v2832_v21, %v2638_v39  ;;  %v3228_v33 = vadd.f32 %v6640_v29, %v3192_v58  ;;  %v2965_v36 = vld [vmem:[#allocation2 + $0x142] sm:$0xff] }
 0x352   : > { %3559 = vst.msk [vmem:[#allocation3 + $0x11] sm:$0xff] %vm440_vm4, %v3550_v2  ;;  %v3193_v2 = vadd.f32 %v3107_v14, %v2915_v38 }
 0x353   : > { %4902 = vmatmul.msk.f32.gmra.mxu1 %vm384_vm2, %v2686_v63  ;;  %v3260_v42 = vmax.f32 %v3228_v33, 0.0 }
 0x354   : > { %4938 = vmatmul.msk.f32.gmra.mxu2 %vm384_vm2, %v2964_v61  ;;  %v3229_v61 = vadd.f32 %v6640_v29, %v3193_v2 }
 0x356   : > { %v3261_v35 = vmax.f32 %v3229_v61, 0.0  ;;  %v2967_v61 = vld [vmem:[#allocation2 + $0x15a] sm:$0xff] }
 0x357   : > { %v3110_v9 = vpop.f32.mrf.mxu2 }
 0x358   : > { %v3194_v48 = vadd.f32 %v3110_v9, %v2916_v10  ;;  %v2835_v55 = vpop.f32.mrf.mxu1  ;;  %v6727_v10 = vpop.f32.mrf.mxu3 }
 0x359   : > { %v3584_v20 = vld [vmem:[#allocation3 + $0x11] sm:$0xff]  ;;  %v2917_v45 = vadd.f32 %v2835_v55, %v2639_v8 }
 0x35a   : > { %v6714_v5 = vld [vmem:[#allocation3 + $0x10] sm:$0xff]  ;;  %v3230_v41 = vadd.f32 %v6640_v29, %v3194_v48  ;;  %4957 = vmatmul.msk.f32.gmra.mxu3 %vm440_vm4, %v3584_v20 }
 0x35b   : > { %4965 = vmatmul.msk.f32.gmra.mxu0 %vm440_vm4, %v6714_v5  ;;  %4903 = vmatmul.msk.f32.gmra.mxu1 %vm384_vm2, %v2687_v23 }
 0x35c   : > { %v3262_v21 = vmax.f32 %v3230_v41, 0.0  ;;  %4939 = vmatmul.msk.f32.gmra.mxu2 %vm384_vm2, %v2965_v36  ;;  %v6732_v41 = vpop.f32.mrf.mxu0 }
 0x35e   : > { %v3290_v59 = vmax.f32 %v3260_v42, %v3262_v21 }
 0x35f   : > { %v3113_v63 = vpop.f32.mrf.mxu2 }
 0x360   : > { %v3313_v58 = vrot.slane %v3290_v59, 1  ;;  %v3195_v39 = vadd.f32 %v3113_v63, %v2917_v45  ;;  %v2838_v14 = vpop.f32.mrf.mxu1  ;;  %v2689_v63 = vld [vmem:[#allocation2 + $0x159] sm:$0xff] }
 0x362   : > { %v3329_v9 = vmax.f32 %v3290_v59, %v3313_v58  ;;  %v3231_v33 = vadd.f32 %v6640_v29, %v3195_v39  ;;  %v6736_v59 = vpop.f32.mrf.mxu3  ;;  %v2361_v58 = vadd.f32 %v6605_v4, %v6394_v11 }
 0x363   : > { %4904 = vmatmul.msk.f32.gmra.mxu1 %vm384_vm2, %v2688_v53 }
 0x364   : > { %v3377_v48 = vrot.slane %v3329_v9, 1  ;;  %v3263_v20 = vmax.f32 %v3231_v33, 0.0  ;;  %4940 = vmatmul.msk.f32.gmra.mxu2 %vm384_vm2, %v2966_v54  ;;  %v3393_v55 = vrot.slane %v3329_v9, 2  ;;  %v3409_v45 = vrot.slane %v3329_v9, 3 }
 0x365   : > { %v2640_v4 = vadd.f32 %v6648_v52, %v2361_v58  ;;  %v5075_v52 = vld [vmem:[%s7430_s5 + $0x238] sm:$0xff] }
 0x366   : > { %v3291_v38 = vmax.f32 %v3261_v35, %v3263_v20  ;;  %v3498_v23 = vsel %vm3496_vm6, %v3329_v9, %v3377_v48  ;;  %4320 = vmatpush.msrb.mxu1 %v5075_v52  ;;  %v5070_v52 = vld [vmem:[%s7430_s5 + $0x210] sm:$0xff] }
 0x367   : > { %v3116_v36 = vpop.f32.mrf.mxu2  ;;  %v3507_v21 = vsel %vm3505_vm7, %v3498_v23, %v3393_v55  ;;  %v2363_v55 = vadd.f32 %v6683_v47, %v6414_v60 }
 0x368   : > { %v3345_v42 = vrot.slane %v3291_v38, 1  ;;  %v2841_v2 = vpop.f32.mrf.mxu1  ;;  %v3516_v53 = vsel %vm3514_vm8, %v3507_v21, %v3409_v45  ;;  %v2918_v21 = vadd.f32 %v2838_v14, %v2640_v4  ;;  %v2690_v45 = vld [vmem:[#allocation2 + $0x169] sm:$0xff] }
 0x369   : > { %v2642_v60 = vadd.f32 %v6688_v3, %v2363_v55 }
 0x36a   : > { %v3361_v8 = vmax.f32 %v3291_v38, %v3345_v42  ;;  %v6749_v38 = vpop.f32.mrf.mxu0  ;;  %v6761_v47 = vpop.f32.mrf.mxu3 }
 0x36b   : > { %4905 = vmatmul.msk.f32.gmra.mxu1 %vm384_vm2, %v2689_v63  ;;  %v2362_v63 = vadd.f32 %v6663_v0, %v6405_v30 }
 0x36c   : > { %v3433_v39 = vrot.slane %v3361_v8, 4  ;;  %v3449_v33 = vrot.slane %v3361_v8, 5  ;;  %4941 = vmatmul.msk.f32.gmra.mxu2 %vm384_vm2, %v2967_v61  ;;  %v3465_v54 = vrot.slane %v3361_v8, 6  ;;  %v3481_v48 = vrot.slane %v3361_v8, 7  ;;  %v2968_v8 = vld [vmem:[#allocation2 + $0x16a] sm:$0xff] }
 0x36d   : > { %v3196_v61 = vadd.f32 %v3116_v36, %v2918_v21  ;;  %v2641_v0 = vadd.f32 %v6679_v56, %v2362_v63  ;;  %v2691_v56 = vld [vmem:[#allocation2 + $0x171] sm:$0xff] }
 0x36e   : > { %v3524_v35 = vsel %vm600_vm0, %v3516_v53, %v3433_v39  ;;  %v2364_v39 = vadd.f32 %v6693_v51, %v6423_v46  ;;  %v2969_v51 = vld [vmem:[#allocation2 + $0x172] sm:$0xff] }
 0x36f   : > { %v3533_v20 = vsel %vm3531_vm9, %v3524_v35, %v3449_v33  ;;  %v3119_v9 = vpop.f32.mrf.mxu2  ;;  %v3232_v30 = vadd.f32 %v6640_v29, %v3196_v61  ;;  %v2919_v35 = vadd.f32 %v2841_v2, %v2641_v0 }
 0x370   : > { %v3542_v11 = vsel %vm3540_vm10, %v3533_v20, %v3465_v54  ;;  %v2844_v42 = vpop.f32.mrf.mxu1  ;;  %v5074_v54 = vld [vmem:[%s7430_s5 + $0x230] sm:$0xff]  ;;  %v5073_v20 = vld [vmem:[%s7430_s5 + $0x228] sm:$0xff]  ;;  %v2643_v4 = vadd.f32 %v6703_v12, %v2364_v39 }
 0x371   : > { %v3551_v23 = vsel %vm3549_vm11, %v3542_v11, %v3481_v48  ;;  %v2920_v14 = vadd.f32 %v2844_v42, %v2642_v60  ;;  %4321 = vmatpush.msrb.mxu1 %v5074_v54  ;;  %v3264_v55 = vmax.f32 %v3232_v30, 0.0  ;;  %v3197_v11 = vadd.f32 %v3119_v9, %v2919_v35  ;;  %v5071_v9 = vld [vmem:[%s7430_s5 + $0x218] sm:$0xff]  ;;  %v5069_v39 = vld [vmem:[%s7430_s5 + $0x208] sm:$0xff]  ;;  %v5068_v54 = vld [vmem:[%s7430_s5 + $0x200] sm:$0xff] }
 0x372   : > { %3560 = vst.msk [vmem:[#allocation3 + $0x21] sm:$0xff] %vm440_vm4, %v3551_v23  ;;  %v6779_v46 = vpop.f32.mrf.mxu0  ;;  %v5072_v23 = vld [vmem:[%s7430_s5 + $0x220] sm:$0xff] }
 0x373   : > { %4906 = vmatmul.msk.f32.gmra.mxu1 %vm384_vm2, %v2690_v45  ;;  %v6790_v45 = vpop.f32.mrf.mxu3  ;;  %v3233_v12 = vadd.f32 %v6640_v29, %v3197_v11 }
 0x374   : > { %4942 = vmatmul.msk.f32.gmra.mxu2 %vm384_vm2, %v2968_v8  ;;  %4322 = vmatpush.msrb.mxu1 %v5073_v20 }
 0x375   : > { %v3265_v30 = vmax.f32 %v3233_v12, 0.0 }
 0x376   : > { %4323 = vmatpush.msrb.mxu1 %v5072_v23 }
 0x377   : > { %v3122_v58 = vpop.f32.mrf.mxu2 }
 0x378   : > { %v3198_v3 = vadd.f32 %v3122_v58, %v2920_v14  ;;  %v2847_v36 = vpop.f32.mrf.mxu1  ;;  %4324 = vmatpush.msrb.mxu1 %v5071_v9 }
 0x379   : > { %v6767_v33 = vld [vmem:[#allocation3 + $0x21] sm:$0xff]  ;;  %v2921_v21 = vadd.f32 %v2847_v36, %v2643_v4  ;;  %v2365_v4 = vadd.f32 %v6709_v27, %v6435_v31  ;;  %v2367_v31 = vadd.f32 %v6736_v59, %v6458_v32 }
 0x37a   : > { %v6769_v53 = vld [vmem:[#allocation3 + $0x20] sm:$0xff]  ;;  %v3234_v48 = vadd.f32 %v6640_v29, %v3198_v3  ;;  %4958 = vmatmul.msk.f32.gmra.mxu3 %vm440_vm4, %v6767_v33  ;;  %4325 = vmatpush.msrb.mxu1 %v5070_v52  ;;  %v6807_v36 = vpop.f32.mrf.mxu0 }
 0x37b   : > { %4966 = vmatmul.msk.f32.gmra.mxu0 %vm440_vm4, %v6769_v53  ;;  %4907 = vmatmul.msk.f32.gmra.mxu1 %vm384_vm2, %v2691_v56  ;;  %v2646_v32 = vadd.f32 %v6749_v38, %v2367_v31 }
 0x37c   : > { %v3266_v2 = vmax.f32 %v3234_v48, 0.0  ;;  %4943 = vmatmul.msk.f32.gmra.mxu2 %vm384_vm2, %v2969_v51  ;;  %4326 = vmatpush.msrb.mxu1 %v5069_v39  ;;  %v2972_v39 = vld [vmem:[#allocation2 + $0x19a] sm:$0xff] }
 0x37e   : > { %v3292_v42 = vmax.f32 %v3264_v55, %v3266_v2  ;;  %4327 = vmatpush.msrb.mxu1 %v5068_v54  ;;  %v6813_v55 = vpop.f32.mrf.mxu3 }
 0x37f   : > { %v3125_v8 = vpop.f32.mrf.mxu2 }
 0x380   : > { %v3314_v63 = vrot.slane %v3292_v42, 1  ;;  %v3199_v61 = vadd.f32 %v3125_v8, %v2921_v21  ;;  %v2850_v60 = vpop.f32.mrf.mxu1 }
 0x382   : > { %v3330_v14 = vmax.f32 %v3292_v42, %v3314_v63  ;;  %v3235_v58 = vadd.f32 %v6640_v29, %v3199_v61  ;;  %v6824_v12 = vpop.f32.mrf.mxu0 }
 0x383   : > { %4908 = vmatmul.msk.f32.gmra.mxu1 %vm384_vm2, %v6449_v43 }
 0x384   : > { %v3378_v0 = vrot.slane %v3330_v14, 1  ;;  %v3267_v3 = vmax.f32 %v3235_v58, 0.0  ;;  %4944 = vmatmul.msk.f32.gmra.mxu2 %vm384_vm2, %v6466_v50  ;;  %v3394_v35 = vrot.slane %v3330_v14, 2  ;;  %v3410_v2 = vrot.slane %v3330_v14, 3  ;;  %v2694_v58 = vld [vmem:[#allocation2 + $0x199] sm:$0xff] }
 0x386   : > { %v3293_v48 = vmax.f32 %v3265_v30, %v3267_v3  ;;  %v3499_v56 = vsel %vm3496_vm6, %v3330_v14, %v3378_v0  ;;  %v6833_v0 = vpop.f32.mrf.mxu3  ;;  %v2366_v3 = vadd.f32 %v6727_v10, %v6447_v15 }
 0x387   : > { %v3128_v51 = vpop.f32.mrf.mxu2  ;;  %v3508_v11 = vsel %vm3505_vm7, %v3499_v56, %v3394_v35  ;;  %v2368_v35 = vadd.f32 %v6761_v47, %v6471_v16 }
 0x388   : > { %v3346_v20 = vrot.slane %v3293_v48, 1  ;;  %v2853_v43 = vpop.f32.mrf.mxu1  ;;  %v3517_v21 = vsel %vm3514_vm8, %v3508_v11, %v3410_v2 }
 0x38a   : > { %v3362_v50 = vmax.f32 %v3293_v48, %v3346_v20  ;;  %v2695_v20 = vld [vmem:[#allocation2 + $0x1a1] sm:$0xff]  ;;  %v6844_v11 = vpop.f32.mrf.mxu0 }
 0x38b   : > { %4909 = vmatmul.msk.f32.gmra.mxu1 %vm384_vm2, %v6460_v13  ;;  %v2644_v13 = vadd.f32 %v6724_v25, %v2365_v4  ;;  %v2647_v4 = vadd.f32 %v6779_v46, %v2368_v35 }
 0x38c   : > { %v3434_v23 = vrot.slane %v3362_v50, 4  ;;  %v3450_v42 = vrot.slane %v3362_v50, 5  ;;  %4945 = vmatmul.msk.f32.gmra.mxu2 %vm384_vm2, %v6473_v22  ;;  %v3466_v8 = vrot.slane %v3362_v50, 6  ;;  %v3482_v63 = vrot.slane %v3362_v50, 7 }
 0x38d   : > { %v2922_v30 = vadd.f32 %v2850_v60, %v2644_v13  ;;  %v2645_v60 = vadd.f32 %v6732_v41, %v2366_v3  ;;  %v6860_v13 = vld [vmem:[#allocation3 + $0x22] sm:$0xff] }
 0x38e   : > { %v3525_v9 = vsel %vm600_vm0, %v3517_v21, %v3434_v23  ;;  %v2314_v23 = vpop.f32.mrf.mxu3 }
 0x38f   : > { %v3534_v61 = vsel %vm3531_vm9, %v3525_v9, %v3450_v42  ;;  %v3131_v52 = vpop.f32.mrf.mxu2  ;;  %v3200_v54 = vadd.f32 %v3128_v51, %v2922_v30  ;;  %v2973_v51 = vld [vmem:[#allocation2 + $0x1a2] sm:$0xff]  ;;  %v2923_v50 = vadd.f32 %v2853_v43, %v2645_v60 }
 0x390   : > { %v3543_v27 = vsel %vm3540_vm10, %v3534_v61, %v3466_v8  ;;  %v2856_v14 = vpop.f32.mrf.mxu1 }
 0x391   : > { %v3552_v22 = vsel %vm3549_vm11, %v3543_v27, %v3482_v63  ;;  %v2924_v25 = vadd.f32 %v2856_v14, %v2646_v32  ;;  %v3236_v48 = vadd.f32 %v6640_v29, %v3200_v54  ;;  %v3201_v41 = vadd.f32 %v3131_v52, %v2923_v50 }
 0x392   : > { %3561 = vst.msk [vmem:[#allocation3 + $0x31] sm:$0xff] %vm440_vm4, %v3552_v22  ;;  %v2593_v52 = vpop.f32.mrf.mxu0 }
 0x393   : > { %4910 = vmatmul.msk.f32.gmra.mxu1 %vm384_vm2, %v2694_v58  ;;  %v3268_v16 = vmax.f32 %v3236_v48, 0.0  ;;  %v3237_v8 = vadd.f32 %v6640_v29, %v3201_v41 }
 0x394   : > { %4946 = vmatmul.msk.f32.gmra.mxu2 %vm384_vm2, %v2972_v39 }
 0x395   : > { %v3269_v46 = vmax.f32 %v3237_v8, 0.0 }
 0x396   : > { %v6864_v30 = vpop.f32.mrf.mxu3 }
 0x397   : > { %v3134_v59 = vpop.f32.mrf.mxu2 }
 0x398   : > { %v3202_v56 = vadd.f32 %v3134_v59, %v2924_v25  ;;  %v2859_v15 = vpop.f32.mrf.mxu1 }
 0x399   : > { %v6846_v10 = vld [vmem:[#allocation3 + $0x31] sm:$0xff]  ;;  %v2925_v43 = vadd.f32 %v2859_v15, %v2647_v4 }
 0x39a   : > { %v6848_v38 = vld [vmem:[#allocation3 + $0x30] sm:$0xff]  ;;  %v3238_v2 = vadd.f32 %v6640_v29, %v3202_v56  ;;  %4959 = vmatmul.msk.f32.gmra.mxu3 %vm440_vm4, %v6846_v10  ;;  %v2369_v56 = vadd.f32 %v6790_v45, %v6480_v24 }
 0x39b   : > { %4967 = vmatmul.msk.f32.gmra.mxu0 %vm440_vm4, %v6848_v38  ;;  %4911 = vmatmul.msk.f32.gmra.mxu1 %vm384_vm2, %v2695_v20  ;;  %v6868_v60 = vld [vmem:[#allocation3 + $0x32] sm:$0xff] }
 0x39c   : > { %v3270_v47 = vmax.f32 %v3238_v2, 0.0  ;;  %4947 = vmatmul.msk.f32.gmra.mxu2 %vm384_vm2, %v2973_v51  ;;  %v6874_v51 = vpop.f32.mrf.mxu0  ;;  %v2648_v45 = vadd.f32 %v6807_v36, %v2369_v56  ;;  %v2372_v36 = vadd.f32 %v2314_v23, %v6495_v7 }
 0x39e   : > { %v3294_v42 = vmax.f32 %v3268_v16, %v3270_v47 }
 0x39f   : > { %v3137_v21 = vpop.f32.mrf.mxu2 }
 0x3a0   : > { %v3315_v9 = vrot.slane %v3294_v42, 1  ;;  %v3203_v63 = vadd.f32 %v3137_v21, %v2925_v43  ;;  %v2862_v61 = vpop.f32.mrf.mxu1  ;;  %v6883_v43 = vpop.f32.mrf.mxu3 }
 0x3a2   : > { %v3331_v31 = vmax.f32 %v3294_v42, %v3315_v9  ;;  %v3239_v27 = vadd.f32 %v6640_v29, %v3203_v63  ;;  %v2371_v42 = vadd.f32 %v6833_v0, %v6490_v44  ;;  %v2926_v9 = vadd.f32 %v2862_v61, %v2648_v45 }
 0x3a3   : > { %5076 = vmatmul.msk.f32.vlgmr.msrb.gmra.mxu1 %vm440_vm4, %v6860_v13  ;;  %v2370_v63 = vadd.f32 %v6813_v55, %v6485_v18 }
 0x3a4   : > { %v3379_v22 = vrot.slane %v3331_v31, 1  ;;  %v3271_v14 = vmax.f32 %v3239_v27, 0.0  ;;  %v3395_v58 = vrot.slane %v3331_v31, 2  ;;  %v3411_v48 = vrot.slane %v3331_v31, 3  ;;  %v6890_v44 = vpop.f32.mrf.mxu0 }
 0x3a5   : > { %v2650_v27 = vadd.f32 %v6844_v11, %v2371_v42 }
 0x3a6   : > { %v3295_v39 = vmax.f32 %v3269_v46, %v3271_v14  ;;  %v3500_v3 = vsel %vm3496_vm6, %v3331_v31, %v3379_v22  ;;  %v2649_v14 = vadd.f32 %v6824_v12, %v2370_v63 }
 0x3a7   : > { %v3140_v54 = vpop.f32.mrf.mxu2  ;;  %v3509_v59 = vsel %vm3505_vm7, %v3500_v3, %v3395_v58 }
 0x3a8   : > { %v3347_v32 = vrot.slane %v3295_v39, 1  ;;  %v2865_v25 = vpop.f32.mrf.mxu1  ;;  %v3518_v50 = vsel %vm3514_vm8, %v3509_v59, %v3411_v48  ;;  %v3204_v31 = vadd.f32 %v3140_v54, %v2926_v9  ;;  %v2323_v7 = vpop.f32.mrf.mxu3 }
 0x3a9   : > { %v2927_v55 = vadd.f32 %v2865_v25, %v2649_v14 }
 0x3aa   : > { %v3363_v35 = vmax.f32 %v3295_v39, %v3347_v32  ;;  %v3240_v22 = vadd.f32 %v6640_v29, %v3204_v31  ;;  %v2651_v32 = vadd.f32 %v2593_v52, %v2372_v36 }
 0x3ab   : > { %5077 = vmatmul.msk.f32.gmra.mxu1 %vm440_vm4, %v6868_v60 }
 0x3ac   : > { %v3435_v20 = vrot.slane %v3363_v35, 4  ;;  %v3451_v15 = vrot.slane %v3363_v35, 5  ;;  %v3467_v2 = vrot.slane %v3363_v35, 6  ;;  %v3483_v41 = vrot.slane %v3363_v35, 7 }
 0x3ad   : > { %v3272_v12 = vmax.f32 %v3240_v22, 0.0 }
 0x3ae   : > { %v3526_v16 = vsel %vm600_vm0, %v3518_v50, %v3435_v20 }
 0x3af   : > { %v3535_v47 = vsel %vm3531_vm9, %v3526_v16, %v3451_v15  ;;  %v3143_v4 = vpop.f32.mrf.mxu2  ;;  %v2602_v15 = vpop.f32.mrf.mxu0 }
 0x3b0   : > { %v3544_v24 = vsel %vm3540_vm10, %v3535_v47, %v3467_v2  ;;  %v2868_v8 = vpop.f32.mrf.mxu1  ;;  %v3205_v23 = vadd.f32 %v3143_v4, %v2927_v55 }
 0x3b1   : > { %v3553_v21 = vsel %vm3549_vm11, %v3544_v24, %v3483_v41  ;;  %v2928_v46 = vadd.f32 %v2868_v8, %v2650_v27  ;;  %v2326_v24 = vpop.f32.mrf.mxu3 }
 0x3b2   : > { %3562 = vst.msk [vmem:[#allocation3 + $0x41] sm:$0xff] %vm440_vm4, %v3553_v21  ;;  %v3241_v25 = vadd.f32 %v6640_v29, %v3205_v23 }
 0x3b4   : > { %v3273_v41 = vmax.f32 %v3241_v25, 0.0  ;;  %v4978_v25 = vld [vmem:[%s7430_s5 + $0xb0] sm:$0xff] }
 0x3b7   : > { %v3146_v0 = vpop.f32.mrf.mxu2  ;;  %v2605_v27 = vpop.f32.mrf.mxu0 }
 0x3b8   : > { %v3206_v58 = vadd.f32 %v3146_v0, %v2928_v46  ;;  %v2871_v39 = vpop.f32.mrf.mxu1  ;;  %v2373_v0 = vadd.f32 %v6864_v30, %v6503_v28 }
 0x3b9   : > { %v6895_v3 = vld [vmem:[#allocation3 + $0x41] sm:$0xff]  ;;  %v2929_v35 = vadd.f32 %v2871_v39, %v2651_v32  ;;  %v6916_v55 = vpop.f32.mrf.mxu3 }
 0x3ba   : > { %v6897_v61 = vld [vmem:[#allocation3 + $0x40] sm:$0xff]  ;;  %v3242_v11 = vadd.f32 %v6640_v29, %v3206_v58  ;;  %4960 = vmatmul.msk.f32.gmra.mxu3 %vm440_vm4, %v6895_v3 }
 0x3bb   : > { %v6899_v18 = vld [vmem:[#allocation3 + $0x42] sm:$0xff]  ;;  %4968 = vmatmul.msk.f32.gmra.mxu0 %vm440_vm4, %v6897_v61 }
 0x3bc   : > { %5078 = vmatmul.msk.f32.gmra.mxu1 %vm440_vm4, %v6899_v18  ;;  %v3274_v54 = vmax.f32 %v3242_v11, 0.0 }
 0x3be   : > { %v3296_v59 = vmax.f32 %v3272_v12, %v3274_v54  ;;  %v2375_v54 = vadd.f32 %v2323_v7, %v6516_v40  ;;  %v4995_v40 = vld [vmem:[%s7430_s5 + $0xf8] sm:$0xff] }
 0x3bf   : > { %v3149_v48 = vpop.f32.mrf.mxu2  ;;  %3869 = vmatpush.msra.mxu0 %v4995_v40  ;;  %v4993_v40 = vld [vmem:[%s7430_s5 + $0xe8] sm:$0xff] }
 0x3c0   : > { %v3316_v56 = vrot.slane %v3296_v59, 1  ;;  %v3207_v20 = vadd.f32 %v3149_v48, %v2929_v35  ;;  %v2874_v50 = vpop.f32.mrf.mxu1  ;;  %v4979_v48 = vld [vmem:[%s7430_s5 + $0xb8] sm:$0xff] }
 0x3c1   : > { %3779 = vmatpush.msrb.mxu3 %v4979_v48 }
 0x3c2   : > { %v3332_v2 = vmax.f32 %v3296_v59, %v3316_v56  ;;  %v3243_v16 = vadd.f32 %v6640_v29, %v3207_v20  ;;  %v2652_v59 = vadd.f32 %v6874_v51, %v2373_v0  ;;  %v2374_v51 = vadd.f32 %v6883_v43, %v6511_v1  ;;  %v4977_v20 = vld [vmem:[%s7430_s5 + $0xa8] sm:$0xff] }
 0x3c3   : > { %v2654_v56 = vadd.f32 %v2602_v15, %v2375_v54  ;;  %3780 = vmatpush.msrb.mxu3 %v4978_v25  ;;  %v4976_v25 = vld [vmem:[%s7430_s5 + $0xa0] sm:$0xff] }
 0x3c4   : > { %v3380_v47 = vrot.slane %v3332_v2, 1  ;;  %v3275_v42 = vmax.f32 %v3243_v16, 0.0  ;;  %v3396_v45 = vrot.slane %v3332_v2, 2  ;;  %v3412_v46 = vrot.slane %v3332_v2, 3 }
 0x3c5   : > { %v2930_v35 = vadd.f32 %v2874_v50, %v2652_v59  ;;  %v4994_v50 = vld [vmem:[%s7430_s5 + $0xf0] sm:$0xff]  ;;  %3781 = vmatpush.msrb.mxu3 %v4977_v20  ;;  %v2653_v43 = vadd.f32 %v6890_v44, %v2374_v51 }
 0x3c6   : > { %v3297_v4 = vmax.f32 %v3273_v41, %v3275_v42  ;;  %v3501_v52 = vsel %vm3496_vm6, %v3332_v2, %v3380_v47  ;;  %v6941_v2 = vpop.f32.mrf.mxu0  ;;  %3870 = vmatpush.msra.mxu0 %v4994_v50  ;;  %v2376_v47 = vadd.f32 %v2326_v24, %v6521_v6  ;;  %v6946_v42 = vpop.f32.mrf.mxu3 }
 0x3c7   : > { %v3152_v21 = vpop.f32.mrf.mxu2  ;;  %v3510_v63 = vsel %vm3505_vm7, %v3501_v52, %v3396_v45  ;;  %3782 = vmatpush.msrb.mxu3 %v4976_v25 }
 0x3c8   : > { %v3348_v8 = vrot.slane %v3297_v4, 1  ;;  %v2877_v9 = vpop.f32.mrf.mxu1  ;;  %v3519_v14 = vsel %vm3514_vm8, %v3510_v63, %v3412_v46  ;;  %v3208_v7 = vadd.f32 %v3152_v21, %v2930_v35  ;;  %3871 = vmatpush.msra.mxu0 %v4993_v40 }
 0x3ca   : > { %v3364_v31 = vmax.f32 %v3297_v4, %v3348_v8  ;;  %v3244_v1 = vadd.f32 %v6640_v29, %v3208_v7  ;;  %v2931_v8 = vadd.f32 %v2877_v9, %v2653_v43 }
 0x3cc   : > { %v3436_v36 = vrot.slane %v3364_v31, 4  ;;  %v3452_v22 = vrot.slane %v3364_v31, 5  ;;  %v3468_v58 = vrot.slane %v3364_v31, 6  ;;  %v3484_v11 = vrot.slane %v3364_v31, 7 }
 0x3cd   : > { %v3276_v6 = vmax.f32 %v3244_v1, 0.0  ;;  %v2655_v31 = vadd.f32 %v2605_v27, %v2376_v47 }
 0x3ce   : > { %v3527_v39 = vsel %vm600_vm0, %v3519_v14, %v3436_v36  ;;  %v6961_v36 = vpop.f32.mrf.mxu0  ;;  %v2335_v54 = vpop.f32.mrf.mxu3 }
 0x3cf   : > { %v3536_v12 = vsel %vm3531_vm9, %v3527_v39, %v3452_v22  ;;  %v3155_v23 = vpop.f32.mrf.mxu2 }
 0x3d0   : > { %v3545_v32 = vsel %vm3540_vm10, %v3536_v12, %v3468_v58  ;;  %v2880_v30 = vpop.f32.mrf.mxu1  ;;  %v3209_v44 = vadd.f32 %v3155_v23, %v2931_v8 }
 0x3d1   : > { %v3554_v28 = vsel %vm3549_vm11, %v3545_v32, %v3484_v11  ;;  %v2932_v16 = vadd.f32 %v2880_v30, %v2654_v56 }
 0x3d2   : > { %3563 = vst.msk [vmem:[#allocation3 + $0x51] sm:$0xff] %vm440_vm4, %v3554_v28  ;;  %v3245_v22 = vadd.f32 %v6640_v29, %v3209_v44  ;;  %v2379_v44 = vadd.f32 %v2335_v54, %v6542_v62  ;;  %v4974_v62 = vld [vmem:[%s7430_s5 + $0x90] sm:$0xff] }
 0x3d4   : > { %v3277_v32 = vmax.f32 %v3245_v22, 0.0 }
 0x3d6   : > { %v2614_v51 = vpop.f32.mrf.mxu0  ;;  %v2338_v1 = vpop.f32.mrf.mxu3 }
 0x3d7   : > { %v3158_v41 = vpop.f32.mrf.mxu2 }
 0x3d8   : > { %v3210_v15 = vadd.f32 %v3158_v41, %v2932_v16  ;;  %v2883_v45 = vpop.f32.mrf.mxu1  ;;  %v2377_v16 = vadd.f32 %v6916_v55, %v6529_v26 }
 0x3d9   : > { %v6948_v4 = vld [vmem:[#allocation3 + $0x51] sm:$0xff]  ;;  %v2933_v0 = vadd.f32 %v2883_v45, %v2655_v31 }
 0x3da   : > { %v6950_v52 = vld [vmem:[#allocation3 + $0x50] sm:$0xff]  ;;  %v3246_v63 = vadd.f32 %v6640_v29, %v3210_v15  ;;  %4961 = vmatmul.msk.f32.gmra.mxu3 %vm440_vm4, %v6948_v4  ;;  %v2656_v31 = vadd.f32 %v6941_v2, %v2377_v16  ;;  %v4991_v2 = vld [vmem:[%s7430_s5 + $0xd8] sm:$0xff] }
 0x3db   : > { %v6952_v21 = vld [vmem:[#allocation3 + $0x52] sm:$0xff]  ;;  %4969 = vmatmul.msk.f32.gmra.mxu0 %vm440_vm4, %v6950_v52 }
 0x3dc   : > { %5079 = vmatmul.msk.f32.gmra.mxu1 %vm440_vm4, %v6952_v21  ;;  %v3278_v24 = vmax.f32 %v3246_v63, 0.0 }
 0x3de   : > { %v3298_v46 = vmax.f32 %v3276_v6, %v3278_v24  ;;  %v2617_v22 = vpop.f32.mrf.mxu0 }
 0x3df   : > { %v3161_v9 = vpop.f32.mrf.mxu2 }
 0x3e0   : > { %v3317_v14 = vrot.slane %v3298_v46, 1  ;;  %v3211_v58 = vadd.f32 %v3161_v9, %v2933_v0  ;;  %v2886_v39 = vpop.f32.mrf.mxu1  ;;  %v4975_v0 = vld [vmem:[%s7430_s5 + $0x98] sm:$0xff]  ;;  %v4992_v9 = vld [vmem:[%s7430_s5 + $0xe0] sm:$0xff] }
 0x3e1   : > { %3783 = vmatpush.msrb.mxu3 %v4975_v0  ;;  %3872 = vmatpush.msra.mxu0 %v4992_v9 }
 0x3e2   : > { %v3333_v11 = vmax.f32 %v3298_v46, %v3317_v14  ;;  %v3247_v12 = vadd.f32 %v6640_v29, %v3211_v58  ;;  %v2934_v46 = vadd.f32 %v2886_v39, %v2656_v31  ;;  %v2378_v14 = vadd.f32 %v6946_v42, %v6537_v34 }
 0x3e3   : > { %v2658_v39 = vadd.f32 %v2614_v51, %v2379_v44  ;;  %3784 = vmatpush.msrb.mxu3 %v4974_v62  ;;  %3873 = vmatpush.msra.mxu0 %v4991_v2  ;;  %v4988_v44 = vld [vmem:[%s7430_s5 + $0xc0] sm:$0xff] }
 0x3e4   : > { %v3381_v59 = vrot.slane %v3333_v11, 1  ;;  %v3279_v28 = vmax.f32 %v3247_v12, 0.0  ;;  %v3397_v23 = vrot.slane %v3333_v11, 2  ;;  %v3413_v50 = vrot.slane %v3333_v11, 3  ;;  %v4990_v12 = vld [vmem:[%s7430_s5 + $0xd0] sm:$0xff] }
 0x3e5   : > { %3874 = vmatpush.msra.mxu0 %v4990_v12  ;;  %v2657_v42 = vadd.f32 %v6961_v36, %v2378_v14 }
 0x3e6   : > { %v3299_v30 = vmax.f32 %v3277_v32, %v3279_v28  ;;  %v3502_v27 = vsel %vm3496_vm6, %v3333_v11, %v3381_v59  ;;  %v4973_v11 = vld [vmem:[%s7430_s5 + $0x88] sm:$0xff]  ;;  %v2341_v32 = vpop.f32.mrf.mxu3  ;;  %v2380_v28 = vadd.f32 %v2338_v1, %v6547_v17 }
 0x3e7   : > { %v3164_v35 = vpop.f32.mrf.mxu2  ;;  %v3511_v56 = vsel %vm3505_vm7, %v3502_v27, %v3397_v23  ;;  %3785 = vmatpush.msrb.mxu3 %v4973_v11  ;;  %v2381_v12 = vadd.f32 %v2341_v32, %v6555_v49 }
 0x3e8   : > { %v3349_v48 = vrot.slane %v3299_v30, 1  ;;  %v2889_v7 = vpop.f32.mrf.mxu1  ;;  %v3520_v43 = vsel %vm3514_vm8, %v3511_v56, %v3413_v50  ;;  %v3212_v58 = vadd.f32 %v3164_v35, %v2934_v46  ;;  %v2659_v56 = vadd.f32 %v2617_v22, %v2380_v28 }
 0x3e9   : > { %v2935_v25 = vadd.f32 %v2889_v7, %v2657_v42 }
 0x3ea   : > { %v3365_v20 = vmax.f32 %v3299_v30, %v3349_v48  ;;  %v3248_v34 = vadd.f32 %v6640_v29, %v3212_v58 }
 0x3ec   : > { %v3437_v41 = vrot.slane %v3365_v20, 4  ;;  %v3453_v47 = vrot.slane %v3365_v20, 5  ;;  %v3469_v15 = vrot.slane %v3365_v20, 6  ;;  %v3485_v8 = vrot.slane %v3365_v20, 7  ;;  %v2620_v20 = vpop.f32.mrf.mxu0 }
 0x3ed   : > { %v3280_v17 = vmax.f32 %v3248_v34, 0.0 }
 0x3ee   : > { %v3528_v45 = vsel %vm600_vm0, %v3520_v43, %v3437_v41  ;;  %v2344_v43 = vpop.f32.mrf.mxu3 }
 0x3ef   : > { %v3537_v63 = vsel %vm3531_vm9, %v3528_v45, %v3453_v47  ;;  %v3167_v6 = vpop.f32.mrf.mxu2  ;;  %v4989_v45 = vld [vmem:[%s7430_s5 + $0xc8] sm:$0xff] }
 0x3f0   : > { %v3546_v24 = vsel %vm3540_vm10, %v3537_v63, %v3469_v15  ;;  %v2892_v55 = vpop.f32.mrf.mxu1  ;;  %v3213_v36 = vadd.f32 %v3167_v6, %v2935_v25  ;;  %3875 = vmatpush.msra.mxu0 %v4989_v45  ;;  %v4972_v6 = vld [vmem:[%s7430_s5 + $0x80] sm:$0xff] }
 0x3f1   : > { %v3555_v26 = vsel %vm3549_vm11, %v3546_v24, %v3485_v8  ;;  %v2936_v54 = vadd.f32 %v2892_v55, %v2658_v39  ;;  %3786 = vmatpush.msrb.mxu3 %v4972_v6 }
 0x3f2   : > { %3564 = vst.msk [vmem:[#allocation3 + $0x61] sm:$0xff] %vm440_vm4, %v3555_v26  ;;  %3876 = vmatpush.msra.mxu0 %v4988_v44 }
 0x3f4   : > { %v2623_v0 = vpop.f32.mrf.mxu0 }
 0x3f6   : > { %v2347_v39 = vpop.f32.mrf.mxu3 }
 0x3f7   : > { %v3170_v59 = vpop.f32.mrf.mxu2 }
 0x3f8   : > { %v3214_v23 = vadd.f32 %v3170_v59, %v2936_v54  ;;  %v2895_v30 = vpop.f32.mrf.mxu1 }
 0x3f9   : > { %v7006_v27 = vld [vmem:[#allocation3 + $0x61] sm:$0xff]  ;;  %v2937_v16 = vadd.f32 %v2895_v30, %v2659_v56 }
 0x3fa   : > { %v7008_v35 = vld [vmem:[#allocation3 + $0x60] sm:$0xff]  ;;  %v3250_v40 = vadd.f32 %v6640_v29, %v3214_v23  ;;  %4962 = vmatmul.msk.f32.gmra.mxu3 %vm440_vm4, %v7006_v27  ;;  %v7022_v29 = vld [vmem:[%s7429_s4] ss:$0 sm:$0xff] }
 0x3fb   : > { %v7010_v48 = vld [vmem:[#allocation3 + $0x62] sm:$0xff]  ;;  %4970 = vmatmul.msk.f32.gmra.mxu0 %vm440_vm4, %v7008_v35  ;;  %v3249_v7 = vadd.f32 %v7022_v29, %v3213_v36 }
 0x3fc   : > { %5080 = vmatmul.msk.f32.gmra.mxu1 %vm440_vm4, %v7010_v48  ;;  %v3282_v51 = vmax.f32 %v3250_v40, 0.0  ;;  %v2626_v23 = vpop.f32.mrf.mxu0 }
 0x3fd   : > { %v3281_v24 = vmax.f32 %v3249_v7, 0.0 }
 0x3fe   : > { %v3300_v50 = vmax.f32 %v3280_v17, %v3282_v51  ;;  %v2383_v17 = vadd.f32 %v2347_v39, %v6568_v57  ;;  %v2660_v51 = vadd.f32 %v2620_v20, %v2381_v12  ;;  %v5027_v57 = vld [vmem:[%s7430_s5 + $0x178] sm:$0xff]  ;;  %v5026_v20 = vld [vmem:[%s7430_s5 + $0x170] sm:$0xff] }
 0x3ff   : > { %v3173_v41 = vpop.f32.mrf.mxu2  ;;  %4049 = vmatpush.msrb.mxu0 %v5027_v57  ;;  %v3730_v12 = vld [vmem:[#allocation3 + $0x2] sm:$0xff] }
 0x400   : > { %v3318_v47 = vrot.slane %v3300_v50, 1  ;;  %v3215_v1 = vadd.f32 %v3173_v41, %v2937_v16  ;;  %v2898_v15 = vpop.f32.mrf.mxu1  ;;  %v5010_v16 = vld [vmem:[%s7430_s5 + $0x130] sm:$0xff]  ;;  %v2382_v41 = vadd.f32 %v2344_v43, %v6563_v37  ;;  %v2662_v7 = vadd.f32 %v2626_v23, %v2383_v17  ;;  %v5007_v23 = vld [vmem:[%s7430_s5 + $0x118] sm:$0xff] }
 0x401   : > { %v2938_v32 = vadd.f32 %v2898_v15, %v2660_v51  ;;  %v2350_v15 = vpop.f32.mrf.mxu3  ;;  %4050 = vmatpush.msrb.mxu0 %v5026_v20 }
 0x402   : > { %v3334_v8 = vmax.f32 %v3300_v50, %v3318_v47  ;;  %v3251_v63 = vadd.f32 %v7022_v29, %v3215_v1  ;;  %v5011_v50 = vld [vmem:[%s7430_s5 + $0x138] sm:$0xff]  ;;  %v5009_v1 = vld [vmem:[%s7430_s5 + $0x128] sm:$0xff]  ;;  %v2661_v44 = vadd.f32 %v2623_v0, %v2382_v41 }
 0x403   : > { %3959 = vmatpush.msra.mxu3 %v5011_v50  ;;  %v5025_v0 = vld [vmem:[%s7430_s5 + $0x168] sm:$0xff]  ;;  %v5006_v50 = vld [vmem:[%s7430_s5 + $0x110] sm:$0xff] }
 0x404   : > { %v3382_v31 = vrot.slane %v3334_v8, 1  ;;  %v3283_v26 = vmax.f32 %v3251_v63, 0.0  ;;  %v3398_v55 = vrot.slane %v3334_v8, 2  ;;  %v3414_v11 = vrot.slane %v3334_v8, 3  ;;  %4051 = vmatpush.msrb.mxu0 %v5025_v0  ;;  %v5059_v0 = vld [vmem:[%s7430_s5 + $0x1f8] sm:$0xff] }
 0x405   : > { %3960 = vmatpush.msra.mxu3 %v5010_v16  ;;  %v2384_v63 = vadd.f32 %v2350_v15, %v6573_v19  ;;  %v5008_v19 = vld [vmem:[%s7430_s5 + $0x120] sm:$0xff]  ;;  %v5023_v16 = vld [vmem:[%s7430_s5 + $0x158] sm:$0xff] }
 0x406   : > { %v3301_v46 = vmax.f32 %v3281_v24, %v3283_v26  ;;  %v3503_v9 = vsel %vm3496_vm6, %v3334_v8, %v3382_v31  ;;  %v2629_v31 = vpop.f32.mrf.mxu0 }
 0x407   : > { %v3176_v62 = vpop.f32.mrf.mxu2  ;;  %v3512_v14 = vsel %vm3505_vm7, %v3503_v9, %v3398_v55  ;;  %3961 = vmatpush.msra.mxu3 %v5009_v1 }
 0x408   : > { %v3350_v22 = vrot.slane %v3301_v46, 1  ;;  %v2901_v2 = vpop.f32.mrf.mxu1  ;;  %v3521_v28 = vsel %vm3514_vm8, %v3512_v14, %v3414_v11  ;;  %v3216_v47 = vadd.f32 %v3176_v62, %v2938_v32  ;;  %v2663_v62 = vadd.f32 %v2629_v31, %v2384_v63  ;;  %v5005_v63 = vld [vmem:[%s7430_s5 + $0x108] sm:$0xff] }
 0x409   : > { %v2939_v55 = vadd.f32 %v2901_v2, %v2661_v44  ;;  %3962 = vmatpush.msra.mxu3 %v5008_v19  ;;  %v5021_v31 = vld [vmem:[%s7430_s5 + $0x148] sm:$0xff]  ;;  %v5042_v19 = vld [vmem:[%s7430_s5 + $0x1b0] sm:$0xff] }
 0x40a   : > { %v3366_v58 = vmax.f32 %v3301_v46, %v3350_v22  ;;  %v3252_v6 = vadd.f32 %v7022_v29, %v3216_v47 }
 0x40b   : > { %3963 = vmatpush.msra.mxu3 %v5007_v23  ;;  %v4463_v23 = vld [vmem:[%s7432_s7 + $0x70] sm:$0xff] }
 0x40c   : > { %v3438_v54 = vrot.slane %v3366_v58, 4  ;;  %v3454_v59 = vrot.slane %v3366_v58, 5  ;;  %v3470_v34 = vrot.slane %v3366_v58, 6  ;;  %v3486_v30 = vrot.slane %v3366_v58, 7 }
 0x40d   : > { %v3284_v22 = vmax.f32 %v3252_v6, 0.0  ;;  %3964 = vmatpush.msra.mxu3 %v5006_v50  ;;  %v5022_v6 = vld [vmem:[%s7430_s5 + $0x150] sm:$0xff] }
 0x40e   : > { %v3529_v42 = vsel %vm600_vm0, %v3521_v28, %v3438_v54 }
 0x40f   : > { %v3538_v25 = vsel %vm3531_vm9, %v3529_v42, %v3454_v59  ;;  %v3179_v40 = vpop.f32.mrf.mxu2  ;;  %3965 = vmatpush.msra.mxu3 %v5005_v63 }
 0x410   : > { %v3547_v36 = vsel %vm3540_vm10, %v3538_v25, %v3470_v34  ;;  %v2904_v49 = vpop.f32.mrf.mxu1  ;;  %v3217_v2 = vadd.f32 %v3179_v40, %v2939_v55  ;;  %v5020_v55 = vld [vmem:[%s7430_s5 + $0x140] sm:$0xff] }
 0x411   : > { %v3556_v56 = vsel %vm3549_vm11, %v3547_v36, %v3486_v30  ;;  %v2940_v45 = vadd.f32 %v2904_v49, %v2662_v7  ;;  %v5024_v30 = vld [vmem:[%s7430_s5 + $0x160] sm:$0xff] }
 0x412   : > { %3565 = vst.msk [vmem:[#allocation3 + $0x71] sm:$0xff] %vm440_vm4, %v3556_v56  ;;  %v3253_v54 = vadd.f32 %v7022_v29, %v3217_v2  ;;  %4052 = vmatpush.msrb.mxu0 %v5024_v30  ;;  %v7094_v49 = vld [vmem:[#allocation3 + $0x12] sm:$0xff] }
 0x413   : > { %v5040_v2 = vld [vmem:[%s7430_s5 + $0x1a0] sm:$0xff] }
 0x414   : > { %v3285_v25 = vmax.f32 %v3253_v54, 0.0  ;;  %4053 = vmatpush.msrb.mxu0 %v5023_v16  ;;  %v5056_v54 = vld [vmem:[%s7430_s5 + $0x1e0] sm:$0xff] }
 0x416   : > { %4054 = vmatpush.msrb.mxu0 %v5022_v6 }
 0x417   : > { %v3182_v8 = vpop.f32.mrf.mxu2 }
 0x418   : > { %v3218_v24 = vadd.f32 %v3182_v8, %v2940_v45  ;;  %v2907_v9 = vpop.f32.mrf.mxu1  ;;  %4055 = vmatpush.msrb.mxu0 %v5021_v31 }
 0x419   : > { %v7063_v37 = vld [vmem:[#allocation3 + $0x71] sm:$0xff]  ;;  %v2941_v39 = vadd.f32 %v2907_v9, %v2663_v62  ;;  %v5058_v62 = vld [vmem:[%s7430_s5 + $0x1f0] sm:$0xff] }
 0x41a   : > { %v7065_v43 = vld [vmem:[#allocation3 + $0x70] sm:$0xff]  ;;  %v3254_v46 = vadd.f32 %v7022_v29, %v3218_v24  ;;  %4963 = vmatmul.msk.f32.gmra.mxu3 %vm440_vm4, %v7063_v37  ;;  %4056 = vmatpush.msrb.mxu0 %v5020_v55  ;;  %v5041_v9 = vld [vmem:[%s7430_s5 + $0x1a8] sm:$0xff] }
 0x41b   : > { %v7067_v26 = vld [vmem:[#allocation3 + $0x72] sm:$0xff]  ;;  %4971 = vmatmul.msk.f32.gmra.mxu0 %vm440_vm4, %v7065_v43 }
 0x41c   : > { %5081 = vmatmul.msk.f32.gmra.mxu1 %vm440_vm4, %v7067_v26  ;;  %v3286_v14 = vmax.f32 %v3254_v46, 0.0  ;;  %v5004_v24 = vld [vmem:[%s7430_s5 + $0x100] sm:$0xff]  ;;  %v5043_v46 = vld [vmem:[%s7430_s5 + $0x1b8] sm:$0xff] }
 0x41d   : > { %3966 = vmatpush.msra.mxu3 %v5004_v24 }
 0x41e   : > { %v3302_v58 = vmax.f32 %v3284_v22, %v3286_v14  ;;  %v5057_v14 = vld [vmem:[%s7430_s5 + $0x1e8] sm:$0xff] }
 0x41f   : > { %v3185_v11 = vpop.f32.mrf.mxu2 }
 0x420   : > { %v3319_v59 = vrot.slane %v3302_v58, 1  ;;  %v3219_v28 = vadd.f32 %v3185_v11, %v2941_v39  ;;  %v7182_v39 = vpop.f32.mrf.mxu0  ;;  %v3910_v11 = vld [vmem:[#allocation3 + $0x11] sm:$0xff] }
 0x422   : > { %v3335_v34 = vmax.f32 %v3302_v58, %v3319_v59  ;;  %v3255_v42 = vadd.f32 %v7022_v29, %v3219_v28  ;;  %4980 = vmatmul.msk.f32.vlgmr.msrb.gmra.mxu3 %vm440_vm4, %v3730_v12  ;;  %v4464_v58 = vld [vmem:[%s7432_s7 + $0x78] sm:$0xff]  ;;  %v7193_v59 = vpop.f32.mrf.mxu3 }
 0x423   : > { %4996 = vmatmul.msk.f32.vlgmr.msra.gmra.mxu0 %vm440_vm4, %v6714_v5  ;;  %4140 = vmatpush.msrb.mxu3 %v5043_v46  ;;  %v5039_v12 = vld [vmem:[%s7430_s5 + $0x198] sm:$0xff] }
 0x424   : > { %v3383_v40 = vrot.slane %v3335_v34, 1  ;;  %v3287_v17 = vmax.f32 %v3255_v42, 0.0  ;;  %v3399_v36 = vrot.slane %v3335_v34, 2  ;;  %v3415_v57 = vrot.slane %v3335_v34, 3  ;;  %4230 = vmatpush.msra.mxu0 %v5059_v0  ;;  %4466 = vmatpush.msra.mxu2 %v4464_v58  ;;  %v5055_v42 = vld [vmem:[%s7430_s5 + $0x1d8] sm:$0xff] }
 0x425   : > { %4141 = vmatpush.msrb.mxu3 %v5042_v19  ;;  %v4458_v19 = vld [vmem:[%s7432_s7 + $0x48] sm:$0xff] }
 0x426   : > { %v3303_v29 = vmax.f32 %v3285_v25, %v3287_v17  ;;  %v3504_v51 = vsel %vm3496_vm6, %v3335_v34, %v3383_v40  ;;  %4231 = vmatpush.msra.mxu0 %v5058_v62  ;;  %v5038_v34 = vld [vmem:[%s7430_s5 + $0x190] sm:$0xff]  ;;  %4467 = vmatpush.msra.mxu2 %v4463_v23  ;;  %v4278_v62 = vld [vmem:[#allocation3 + $0x92] sm:$0xff] }
 0x427   : > { %v3513_v5 = vsel %vm3505_vm7, %v3504_v51, %v3399_v36  ;;  %4142 = vmatpush.msrb.mxu3 %v5041_v9  ;;  %v5054_v25 = vld [vmem:[%s7430_s5 + $0x1d0] sm:$0xff]  ;;  %v5053_v36 = vld [vmem:[%s7430_s5 + $0x1c8] sm:$0xff] }
 0x428   : > { %v3351_v56 = vrot.slane %v3303_v29, 1  ;;  %v3522_v7 = vsel %vm3514_vm8, %v3513_v5, %v3415_v57  ;;  %4232 = vmatpush.msra.mxu0 %v5057_v14  ;;  %v7195_v28 = vpop.f32.mrf.mxu0 }
 0x429   : > { %4143 = vmatpush.msrb.mxu3 %v5040_v2 }
 0x42a   : > { %v3367_v32 = vmax.f32 %v3303_v29, %v3351_v56  ;;  %4981 = vmatmul.msk.f32.gmra.mxu3 %vm440_vm4, %v7094_v49  ;;  %4233 = vmatpush.msra.mxu0 %v5056_v54  ;;  %v3644_v30 = vpop.f32.mrf.mxu3  ;;  %v4462_v29 = vld [vmem:[%s7432_s7 + $0x68] sm:$0xff] }
 0x42b   : > { %4997 = vmatmul.msk.f32.gmra.mxu0 %vm440_vm4, %v6769_v53  ;;  %4144 = vmatpush.msrb.mxu3 %v5039_v12 }
 0x42c   : > { %v3439_v20 = vrot.slane %v3367_v32, 4  ;;  %v3455_v41 = vrot.slane %v3367_v32, 5  ;;  %v3471_v47 = vrot.slane %v3367_v32, 6  ;;  %v3487_v15 = vrot.slane %v3367_v32, 7  ;;  %4234 = vmatpush.msra.mxu0 %v5055_v42  ;;  %4468 = vmatpush.msra.mxu2 %v4462_v29  ;;  %v4461_v32 = vld [vmem:[%s7432_s7 + $0x60] sm:$0xff] }
 0x42d   : > { %4145 = vmatpush.msrb.mxu3 %v5038_v34 }
 0x42e   : > { %v3530_v1 = vsel %vm600_vm0, %v3522_v7, %v3439_v20  ;;  %4235 = vmatpush.msra.mxu0 %v5054_v25  ;;  %4469 = vmatpush.msra.mxu2 %v4461_v32 }
 0x42f   : > { %v3539_v53 = vsel %vm3531_vm9, %v3530_v1, %v3455_v41  ;;  %v4091_v1 = vld [vmem:[#allocation3 + $0x20] sm:$0xff] }
 0x430   : > { %v3548_v45 = vsel %vm3540_vm10, %v3539_v53, %v3471_v47  ;;  %4236 = vmatpush.msra.mxu0 %v5053_v36 }
 0x431   : > { %v3557_v8 = vsel %vm3549_vm11, %v3548_v45, %v3487_v15  ;;  %v4459_v45 = vld [vmem:[%s7432_s7 + $0x50] sm:$0xff] }
 0x432   : > { %3566 = vst.msk [vmem:[#allocation3 + $0x81] sm:$0xff] %vm440_vm4, %v3557_v8  ;;  %4982 = vmatmul.msk.f32.gmra.mxu3 %vm440_vm4, %v6860_v13  ;;  %v3647_v40 = vpop.f32.mrf.mxu3  ;;  %v3710_v8 = vadd.f32 %v7195_v28, %v3644_v30 }
 0x433   : > { %4998 = vmatmul.msk.f32.gmra.mxu0 %vm440_vm4, %v6848_v38 }
 0x439   : > { %v7123_v44 = vld [vmem:[#allocation3 + $0x82] sm:$0xff] }
 0x43a   : > { %4983 = vmatmul.msk.f32.gmra.mxu3 %vm440_vm4, %v6868_v60  ;;  %5082 = vmatmul.msk.f32.gmra.mxu1 %vm440_vm4, %v7123_v44  ;;  %v7167_v22 = vld [vmem:[#allocation3 + $0x80] sm:$0xff]  ;;  %v3650_v51 = vpop.f32.mrf.mxu3 }
 0x43b   : > { %4999 = vmatmul.msk.f32.gmra.mxu0 %vm440_vm4, %v6897_v61  ;;  %v3917_v20 = vld [vmem:[#allocation3 + $0x81] sm:$0xff] }
 0x442   : > { %4984 = vmatmul.msk.f32.gmra.mxu3 %vm440_vm4, %v6899_v18  ;;  %5083 = vmatmul.msk.f32.gmra.mxu1 %vm440_vm4, %v4278_v62 }
 0x443   : > { %5000 = vmatmul.msk.f32.gmra.mxu0 %vm440_vm4, %v6950_v52 }
 0x44a   : > { %4985 = vmatmul.msk.f32.gmra.mxu3 %vm440_vm4, %v6952_v21 }
 0x44b   : > { %5001 = vmatmul.msk.f32.gmra.mxu0 %vm440_vm4, %v7008_v35 }
 0x452   : > { %4986 = vmatmul.msk.f32.gmra.mxu3 %vm440_vm4, %v7010_v48 }
 0x453   : > { %5002 = vmatmul.msk.f32.gmra.mxu0 %vm440_vm4, %v7065_v43 }
 0x45a   : > { %4987 = vmatmul.msk.f32.gmra.mxu3 %vm440_vm4, %v7067_v26 }
 0x45b   : > { %5003 = vmatmul.msk.f32.gmra.mxu0 %vm440_vm4, %v7167_v22 }
 0x462   : > { %5012 = vmatmul.msk.f32.vlgmr.msra.gmra.mxu3 %vm440_vm4, %v3910_v11  ;;  %v4457_v11 = vld [vmem:[%s7432_s7 + $0x40] sm:$0xff] }
 0x463   : > { %5028 = vmatmul.msk.f32.vlgmr.msrb.gmra.mxu0 %vm440_vm4, %v7094_v49  ;;  %v3653_v49 = vpop.f32.mrf.mxu3 }
 0x46a   : > { %5013 = vmatmul.msk.f32.gmra.mxu3 %vm440_vm4, %v6767_v33  ;;  %v3712_v33 = vpop.f32.mrf.mxu0 }
 0x46b   : > { %5029 = vmatmul.msk.f32.gmra.mxu0 %vm440_vm4, %v6860_v13  ;;  %v5037_v13 = vld [vmem:[%s7430_s5 + $0x188] sm:$0xff]  ;;  %v3656_v50 = vpop.f32.mrf.mxu3 }
 0x46c   : > { %4146 = vmatpush.msrb.mxu3 %v5037_v13  ;;  %v4188_v13 = vld [vmem:[#allocation3 + $0x91] sm:$0xff] }
 0x472   : > { %5014 = vmatmul.msk.f32.gmra.mxu3 %vm440_vm4, %v6846_v10  ;;  %v3715_v17 = vpop.f32.mrf.mxu0 }
 0x473   : > { %5030 = vmatmul.msk.f32.gmra.mxu0 %vm440_vm4, %v6868_v60  ;;  %v5036_v60 = vld [vmem:[%s7430_s5 + $0x180] sm:$0xff] }
 0x474   : > { %4147 = vmatpush.msrb.mxu3 %v5036_v60 }
 0x47a   : > { %5015 = vmatmul.msk.f32.gmra.mxu3 %vm440_vm4, %v6895_v3  ;;  %v3718_v56 = vpop.f32.mrf.mxu0 }
 0x47b   : > { %5031 = vmatmul.msk.f32.gmra.mxu0 %vm440_vm4, %v6899_v18  ;;  %v5052_v18 = vld [vmem:[%s7430_s5 + $0x1c0] sm:$0xff] }
 0x47c   : > { %4237 = vmatpush.msra.mxu0 %v5052_v18 }
 0x482   : > { %5016 = vmatmul.msk.f32.gmra.mxu3 %vm440_vm4, %v6948_v4  ;;  %v7240_v5 = vpop.f32.mrf.mxu0 }
 0x483   : > { %5032 = vmatmul.msk.f32.gmra.mxu0 %vm440_vm4, %v6952_v21  ;;  %v3659_v21 = vpop.f32.mrf.mxu3 }
 0x48a   : > { %5017 = vmatmul.msk.f32.gmra.mxu3 %vm440_vm4, %v7006_v27  ;;  %v7249_v16 = vpop.f32.mrf.mxu0 }
 0x48b   : > { %5033 = vmatmul.msk.f32.gmra.mxu0 %vm440_vm4, %v7010_v48  ;;  %v4460_v48 = vld [vmem:[%s7432_s7 + $0x58] sm:$0xff]  ;;  %v3725_v42 = vadd.f32 %v7249_v16, %v3659_v21 }
 0x48c   : > { %4470 = vmatpush.msra.mxu2 %v4460_v48  ;;  %v4454_v48 = vld [vmem:[%s7432_s7 + $0x28] sm:$0xff] }
 0x48e   : > { %4471 = vmatpush.msra.mxu2 %v4459_v45 }
 0x490   : > { %4472 = vmatpush.msra.mxu2 %v4458_v19 }
 0x492   : > { %5018 = vmatmul.msk.f32.gmra.mxu3 %vm440_vm4, %v7063_v37  ;;  %4473 = vmatpush.msra.mxu2 %v4457_v11 }
 0x493   : > { %5034 = vmatmul.msk.f32.gmra.mxu0 %vm440_vm4, %v7067_v26  ;;  %v4181_v26 = vld [vmem:[#allocation3 + $0x21] sm:$0xff] }
 0x498   : > { %v3727_v57 = vpop.f32.mrf.mxu0 }
 0x49a   : > { %5019 = vmatmul.msk.f32.gmra.mxu3 %vm440_vm4, %v3917_v20 }
 0x49b   : > { %5035 = vmatmul.msk.f32.gmra.mxu0 %vm440_vm4, %v7123_v44 }
 0x49d   : > { %v3662_v41 = vpop.f32.mrf.mxu3 }
 0x49e   : > { %v7261_v7 = vadd.f32 %v3727_v57, %v3662_v41 }
 0x4a0   : > { %v7263_v47 = vpop.f32.mrf.mxu0 }
 0x4a2   : > { %5044 = vmatmul.msk.f32.vlgmr.msrb.gmra.mxu3 %vm440_vm4, %v4091_v1 }
 0x4a3   : > { %5060 = vmatmul.msk.f32.vlgmr.msra.gmra.mxu0 %vm440_vm4, %v4181_v26 }
 0x4a5   : > { %v3788_v15 = vpop.f32.mrf.mxu3 }
 0x4a8   : > { %v3881_v53 = vpop.f32.mrf.mxu0 }
 0x4aa   : > { %5045 = vmatmul.msk.f32.gmra.mxu3 %vm440_vm4, %v6848_v38  ;;  %v3713_v38 = vadd.f32 %v3712_v33, %v3647_v40  ;;  %v3707_v40 = vadd.f32 %v7182_v39, %v7193_v59 }
 0x4ab   : > { %5061 = vmatmul.msk.f32.gmra.mxu0 %vm440_vm4, %v6846_v10 }
 0x4ac   : > { %v3812_v36 = vadd.f32 %v3788_v15, %v3707_v40 }
 0x4ad   : > { %v3791_v63 = vpop.f32.mrf.mxu3 }
 0x4ae   : > { %v3813_v6 = vadd.f32 %v3791_v63, %v3710_v8 }
 0x4b0   : > { %v3884_v44 = vpop.f32.mrf.mxu0  ;;  %v3903_v24 = vadd.f32 %v3881_v53, %v3813_v6 }
 0x4b2   : > { %5046 = vmatmul.msk.f32.gmra.mxu3 %vm440_vm4, %v6897_v61  ;;  %v3716_v61 = vadd.f32 %v3715_v17, %v3650_v51  ;;  %v3902_v51 = vadd.f32 %v7263_v47, %v3812_v36 }
 0x4b3   : > { %5062 = vmatmul.msk.f32.gmra.mxu0 %vm440_vm4, %v6895_v3 }
 0x4b5   : > { %v3794_v31 = vpop.f32.mrf.mxu3 }
 0x4b6   : > { %v3814_v10 = vadd.f32 %v3794_v31, %v3713_v38 }
 0x4b8   : > { %v3887_v55 = vpop.f32.mrf.mxu0  ;;  %v3904_v46 = vadd.f32 %v3884_v44, %v3814_v10  ;;  %v4453_v44 = vld [vmem:[%s7432_s7 + $0x20] sm:$0xff] }
 0x4ba   : > { %5047 = vmatmul.msk.f32.gmra.mxu3 %vm440_vm4, %v6950_v52 }
 0x4bb   : > { %5063 = vmatmul.msk.f32.gmra.mxu0 %vm440_vm4, %v6948_v4  ;;  %v3719_v4 = vadd.f32 %v3718_v56, %v3653_v49 }
 0x4bd   : > { %v3797_v0 = vpop.f32.mrf.mxu3 }
 0x4be   : > { %v3815_v9 = vadd.f32 %v3797_v0, %v3716_v61  ;;  %v4452_v0 = vld [vmem:[%s7432_s7 + $0x18] sm:$0xff] }
 0x4c0   : > { %v3890_v3 = vpop.f32.mrf.mxu0  ;;  %v3905_v2 = vadd.f32 %v3887_v55, %v3815_v9  ;;  %v4329_v9 = vpop.f32.mrf.mxu1 }
 0x4c2   : > { %5048 = vmatmul.msk.f32.gmra.mxu3 %vm440_vm4, %v7008_v35  ;;  %v3722_v35 = vadd.f32 %v7240_v5, %v3656_v50  ;;  %v4455_v5 = vld [vmem:[%s7432_s7 + $0x30] sm:$0xff] }
 0x4c3   : > { %5064 = vmatmul.msk.f32.gmra.mxu0 %vm440_vm4, %v7006_v27 }
 0x4c5   : > { %v3800_v52 = vpop.f32.mrf.mxu3 }
 0x4c6   : > { %v3816_v14 = vadd.f32 %v3800_v52, %v3719_v4 }
 0x4c8   : > { %v3893_v58 = vpop.f32.mrf.mxu0  ;;  %v3906_v12 = vadd.f32 %v3890_v3, %v3816_v14 }
 0x4ca   : > { %5049 = vmatmul.msk.f32.gmra.mxu3 %vm440_vm4, %v7065_v43  ;;  %v4098_v43 = vld [vmem:[#allocation3 + $0x90] sm:$0xff] }
 0x4cb   : > { %5065 = vmatmul.msk.f32.gmra.mxu0 %vm440_vm4, %v7063_v37  ;;  %v4456_v37 = vld [vmem:[%s7432_s7 + $0x38] sm:$0xff] }
 0x4cc   : > { %4474 = vmatpush.msra.mxu2 %v4456_v37 }
 0x4cd   : > { %v3803_v54 = vpop.f32.mrf.mxu3 }
 0x4ce   : > { %v3817_v27 = vadd.f32 %v3803_v54, %v3722_v35  ;;  %4475 = vmatpush.msra.mxu2 %v4455_v5 }
 0x4d0   : > { %v3896_v28 = vpop.f32.mrf.mxu0  ;;  %v3907_v34 = vadd.f32 %v3893_v58, %v3817_v27  ;;  %4476 = vmatpush.msra.mxu2 %v4454_v48  ;;  %v7335_v58 = vld [vmem:[%s7431_s6] ss:$0 sm:$0xff] }
 0x4d2   : > { %5050 = vmatmul.msk.f32.gmra.mxu3 %vm440_vm4, %v7167_v22  ;;  %4477 = vmatpush.msra.mxu2 %v4453_v44 }
 0x4d3   : > { %5066 = vmatmul.msk.f32.gmra.mxu0 %vm440_vm4, %v3917_v20 }
 0x4d4   : > { %4478 = vmatpush.msra.mxu2 %v4452_v0 }
 0x4d5   : > { %v3806_v23 = vpop.f32.mrf.mxu3 }
 0x4d6   : > { %v3818_v30 = vadd.f32 %v3806_v23, %v3725_v42 }
 0x4d8   : > { %v3899_v33 = vpop.f32.mrf.mxu0  ;;  %v3908_v25 = vadd.f32 %v3896_v28, %v3818_v30 }
 0x4da   : > { %5051 = vmatmul.msk.f32.gmra.mxu3 %vm440_vm4, %v4098_v43 }
 0x4db   : > { %5067 = vmatmul.msk.f32.gmra.mxu0 %vm440_vm4, %v4188_v13 }
 0x4dd   : > { %v3809_v22 = vpop.f32.mrf.mxu3 }
 0x4de   : > { %v3819_v17 = vadd.f32 %v3809_v22, %v7261_v7 }
 0x4e0   : > { %v4058_v60 = vpop.f32.mrf.mxu0  ;;  %v7311_v29 = vadd.f32 %v3899_v33, %v3819_v17 }
 0x4e5   : > { %v3968_v56 = vpop.f32.mrf.mxu3 }
 0x4e6   : > { %v3992_v18 = vadd.f32 %v3968_v56, %v3902_v51  ;;  %v4450_v56 = vld [vmem:[%s7432_s7 + $0x8] sm:$0xff] }
 0x4e8   : > { %v4061_v49 = vpop.f32.mrf.mxu0  ;;  %v4082_v32 = vadd.f32 %v4058_v60, %v3992_v18 }
 0x4ed   : > { %v3971_v50 = vpop.f32.mrf.mxu3 }
 0x4ee   : > { %v3993_v16 = vadd.f32 %v3971_v50, %v3903_v24 }
 0x4f0   : > { %v4064_v39 = vpop.f32.mrf.mxu0  ;;  %v4083_v59 = vadd.f32 %v4061_v49, %v3993_v16 }
 0x4f5   : > { %v3974_v21 = vpop.f32.mrf.mxu3 }
 0x4f6   : > { %v3994_v57 = vadd.f32 %v3974_v21, %v3904_v46 }
 0x4f8   : > { %v4067_v20 = vpop.f32.mrf.mxu0  ;;  %v4084_v41 = vadd.f32 %v4064_v39, %v3994_v57 }
 0x4fd   : > { %v3977_v7 = vpop.f32.mrf.mxu3 }
 0x4fe   : > { %v3995_v47 = vadd.f32 %v3977_v7, %v3905_v2 }
 0x500   : > { %v4070_v1 = vpop.f32.mrf.mxu0  ;;  %v4085_v26 = vadd.f32 %v4067_v20, %v3995_v47 }
 0x505   : > { %v3980_v15 = vpop.f32.mrf.mxu3 }
 0x506   : > { %v3996_v53 = vadd.f32 %v3980_v15, %v3906_v12  ;;  %v4332_v12 = vpop.f32.mrf.mxu1 }
 0x508   : > { %v4073_v45 = vpop.f32.mrf.mxu0  ;;  %v4086_v8 = vadd.f32 %v4070_v1, %v3996_v53 }
 0x50d   : > { %v3983_v63 = vpop.f32.mrf.mxu3 }
 0x50e   : > { %v3997_v6 = vadd.f32 %v3983_v63, %v3907_v34  ;;  %v4451_v34 = vld [vmem:[%s7432_s7 + $0x10] sm:$0xff]  ;;  %v4335_v43 = vpop.f32.mrf.mxu1 }
 0x50f   : > { %4479 = vmatpush.msra.mxu2 %v4451_v34 }
 0x510   : > { %v4076_v24 = vpop.f32.mrf.mxu0  ;;  %v4087_v38 = vadd.f32 %v4073_v45, %v3997_v6 }
 0x511   : > { %4480 = vmatpush.msra.mxu2 %v4450_v56  ;;  %v4491_v56 = vld [vmem:[%s7434_s9 + $0x20] sm:$0xff] }
 0x515   : > { %v3986_v31 = vpop.f32.mrf.mxu3 }
 0x516   : > { %v3998_v10 = vadd.f32 %v3986_v31, %v3908_v25  ;;  %v4338_v17 = vpop.f32.mrf.mxu1 }
 0x518   : > { %v7323_v55 = vpop.f32.mrf.mxu0  ;;  %v7325_v46 = vadd.f32 %v4076_v24, %v3998_v10 }
 0x51d   : > { %v7327_v19 = vpop.f32.mrf.mxu3 }
 0x51e   : > { %v4341_v21 = vpop.f32.mrf.mxu1 }
 0x520   : > { %v4239_v61 = vpop.f32.mrf.mxu0 }
 0x525   : > { %v4149_v3 = vpop.f32.mrf.mxu3 }
 0x526   : > { %v4173_v62 = vadd.f32 %v4149_v3, %v4082_v32  ;;  %v4344_v44 = vpop.f32.mrf.mxu1 }
 0x528   : > { %v4242_v2 = vpop.f32.mrf.mxu0  ;;  %v4263_v4 = vadd.f32 %v4239_v61, %v4173_v62  ;;  %v4449_v62 = vld [vmem:[%s7432_s7] sm:$0xff] }
 0x529   : > { %4481 = vmatpush.msra.mxu2 %v4449_v62  ;;  %v4495_v62 = vld [vmem:[%s7435_s10] sm:$0x1] }
 0x52a   : > { %v4353_v14 = vadd.f32 %v4329_v9, %v4263_v4 }
 0x52c   : > { %v4365_v27 = vadd.f32 %v7335_v58, %v4353_v14 }
 0x52d   : > { %v4152_v52 = vpop.f32.mrf.mxu3 }
 0x52e   : > { %v4174_v11 = vadd.f32 %v4152_v52, %v4083_v59  ;;  %v4373_v30 = vmax.f32 %v4365_v27, 0.0 }
 0x530   : > { %v4245_v35 = vpop.f32.mrf.mxu0  ;;  %v4264_v54 = vadd.f32 %v4242_v2, %v4174_v11 }
 0x532   : > { %v4354_v28 = vadd.f32 %v4332_v12, %v4264_v54 }
 0x534   : > { %v4366_v42 = vadd.f32 %v7335_v58, %v4354_v28  ;;  %v4347_v28 = vpop.f32.mrf.mxu1 }
 0x535   : > { %v4155_v23 = vpop.f32.mrf.mxu3 }
 0x536   : > { %v4374_v33 = vmax.f32 %v4366_v42, 0.0  ;;  %v4175_v13 = vadd.f32 %v4155_v23, %v4084_v41  ;;  %v3999_v23 = vadd.f32 %v7327_v19, %v7311_v29  ;;  %v4492_v29 = vld [vmem:[%s7434_s9 + $0x28] sm:$0xff] }
 0x538   : > { %v4248_v37 = vpop.f32.mrf.mxu0  ;;  %v4381_v25 = vmax.f32 %v4373_v30, %v4374_v33  ;;  %v4265_v22 = vadd.f32 %v4245_v35, %v4175_v13 }
 0x53a   : > { %v4389_v60 = vrot.slane %v4381_v25, 1  ;;  %v4355_v36 = vadd.f32 %v4335_v43, %v4265_v22  ;;  %v4089_v22 = vadd.f32 %v7323_v55, %v3999_v23  ;;  %v4490_v55 = vld [vmem:[%s7434_s9 + $0x18] sm:$0xff] }
 0x53c   : > { %v4397_v5 = vmax.f32 %v4381_v25, %v4389_v60  ;;  %v4367_v32 = vadd.f32 %v7335_v58, %v4355_v36 }
 0x53d   : > { %v4158_v40 = vpop.f32.mrf.mxu3 }
 0x53e   : > { %v4176_v51 = vadd.f32 %v4158_v40, %v4085_v26  ;;  %v4405_v57 = vrot.slane %v4397_v5, 2  ;;  %v4375_v20 = vmax.f32 %v4367_v32, 0.0  ;;  %v4417_v15 = vrot.slane %v4397_v5, 4 }
 0x53f   : > { %v4429_v61 = vrot.slane %v4397_v5, 6 }
 0x540   : > { %v4266_v18 = vadd.f32 %v4248_v37, %v4176_v51  ;;  %v4251_v49 = vpop.f32.mrf.mxu0  ;;  %v4413_v47 = vadd.f32 %v4405_v57, %v4397_v5  ;;  %v4494_v37 = vld [vmem:[%s7434_s9 + $0x38] sm:$0xff]  ;;  %v4350_v51 = vpop.f32.mrf.mxu1 }
 0x541   : > { %4507 = vmatpush.msra.mxu3 %v4494_v37 }
 0x542   : > { %v4356_v50 = vadd.f32 %v4338_v17, %v4266_v18  ;;  %v4425_v24 = vadd.f32 %v4417_v15, %v4413_v47 }
 0x544   : > { %v4368_v16 = vadd.f32 %v7335_v58, %v4356_v50  ;;  %v4437_v52 = vadd.f32 %v4429_v61, %v4425_v24 }
 0x545   : > { %v4161_v39 = vpop.f32.mrf.mxu3 }
 0x546   : > { %v4177_v59 = vadd.f32 %v4161_v39, %v4086_v8  ;;  %v4376_v48 = vmax.f32 %v4368_v16, 0.0  ;;  %v4441_v34 = vsel %vm3496_vm6, %v4437_v52, 0.0 }
 0x548   : > { %v4382_v41 = vmax.f32 %v4375_v20, %v4376_v48  ;;  %v4267_v7 = vadd.f32 %v4251_v49, %v4177_v59  ;;  %v4254_v26 = vpop.f32.mrf.mxu0  ;;  %v4489_v59 = vld [vmem:[%s7434_s9 + $0x10] sm:$0xff]  ;;  %v4488_v20 = vld [vmem:[%s7434_s9 + $0x8] sm:$0xff] }
 0x54a   : > { %v4390_v1 = vrot.slane %v4382_v41, 1  ;;  %v4357_v63 = vadd.f32 %v4341_v21, %v4267_v7 }
 0x54c   : > { %v4398_v53 = vmax.f32 %v4382_v41, %v4390_v1  ;;  %v4369_v9 = vadd.f32 %v7335_v58, %v4357_v63  ;;  %v4487_v1 = vld [vmem:[%s7434_s9] sm:$0xff] }
 0x54d   : > { %v4164_v45 = vpop.f32.mrf.mxu3 }
 0x54e   : > { %v4178_v6 = vadd.f32 %v4164_v45, %v4087_v38  ;;  %v4406_v31 = vrot.slane %v4398_v53, 2  ;;  %v4418_v0 = vrot.slane %v4398_v53, 4  ;;  %v4430_v4 = vrot.slane %v4398_v53, 6 }
 0x54f   : > { %v4377_v35 = vmax.f32 %v4369_v9, 0.0 }
 0x550   : > { %v4268_v10 = vadd.f32 %v4254_v26, %v4178_v6  ;;  %v4414_v8 = vadd.f32 %v4406_v31, %v4398_v53  ;;  %v4257_v14 = vpop.f32.mrf.mxu0 }
 0x552   : > { %v4358_v3 = vadd.f32 %v4344_v44, %v4268_v10  ;;  %v4426_v2 = vadd.f32 %v4418_v0, %v4414_v8  ;;  %v4465_v8 = vld [vmem:[%s7433_s8] sm:$0x1] }
 0x554   : > { %v4370_v38 = vadd.f32 %v7335_v58, %v4358_v3  ;;  %v4438_v12 = vadd.f32 %v4430_v4, %v4426_v2 }
 0x555   : > { %v4167_v11 = vpop.f32.mrf.mxu3 }
 0x556   : > { %v4378_v54 = vmax.f32 %v4370_v38, 0.0  ;;  %v4179_v27 = vadd.f32 %v4167_v11, %v7325_v46  ;;  %v4442_v42 = vsel %vm3496_vm6, %v4438_v12, 0.0  ;;  %v4493_v46 = vld [vmem:[%s7434_s9 + $0x30] sm:$0xff] }
 0x557   : > { %v4443_v33 = vadd.f32 %v4442_v42, %v4441_v34  ;;  %4508 = vmatpush.msra.mxu3 %v4493_v46 }
 0x558   : > { %v4383_v30 = vmax.f32 %v4377_v35, %v4378_v54  ;;  %v4269_v13 = vadd.f32 %v4257_v14, %v4179_v27  ;;  %v4260_v17 = vpop.f32.mrf.mxu0 }
 0x559   : > { %4509 = vmatpush.msra.mxu3 %v4492_v29 }
 0x55a   : > { %v4391_v43 = vrot.slane %v4383_v30, 1  ;;  %v4359_v60 = vadd.f32 %v4347_v28, %v4269_v13 }
 0x55b   : > { %4510 = vmatpush.msra.mxu3 %v4491_v56 }
 0x55c   : > { %v4399_v25 = vmax.f32 %v4383_v30, %v4391_v43  ;;  %v4371_v50 = vadd.f32 %v7335_v58, %v4359_v60 }
 0x55d   : > { %v4170_v40 = vpop.f32.mrf.mxu3  ;;  %4511 = vmatpush.msra.mxu3 %v4490_v55 }
 0x55e   : > { %v4407_v19 = vrot.slane %v4399_v25, 2  ;;  %v4180_v36 = vadd.f32 %v4170_v40, %v4089_v22  ;;  %v4419_v49 = vrot.slane %v4399_v25, 4  ;;  %v4431_v32 = vrot.slane %v4399_v25, 6 }
 0x55f   : > { %v4379_v48 = vmax.f32 %v4371_v50, 0.0  ;;  %4512 = vmatpush.msra.mxu3 %v4489_v59 }
 0x560   : > { %v4415_v18 = vadd.f32 %v4407_v19, %v4399_v25  ;;  %v4270_v5 = vadd.f32 %v4260_v17, %v4180_v36 }
 0x561   : > { %4513 = vmatpush.msra.mxu3 %v4488_v20 }
 0x562   : > { %v4360_v16 = vadd.f32 %v4350_v51, %v4270_v5  ;;  %v4427_v39 = vadd.f32 %v4419_v49, %v4415_v18 }
 0x563   : > { %4514 = vmatpush.msra.mxu3 %v4487_v1 }
 0x564   : > { %v4372_v21 = vadd.f32 %v7335_v58, %v4360_v16  ;;  %v4439_v57 = vadd.f32 %v4431_v32, %v4427_v39 }
 0x566   : > { %v4380_v41 = vmax.f32 %v4372_v21, 0.0  ;;  %v4444_v7 = vsel %vm3496_vm6, %v4439_v57, 0.0 }
 0x567   : > { %v4445_v47 = vadd.f32 %v4444_v7, %v4443_v33 }
 0x568   : > { %v4384_v26 = vmax.f32 %v4379_v48, %v4380_v41 }
 0x56a   : > { %v4392_v15 = vrot.slane %v4384_v26, 1 }
 0x56c   : > { %v4400_v58 = vmax.f32 %v4384_v26, %v4392_v15 }
 0x56e   : > { %v4408_v53 = vrot.slane %v4400_v58, 2  ;;  %v4420_v63 = vrot.slane %v4400_v58, 4  ;;  %v4432_v44 = vrot.slane %v4400_v58, 6 }
 0x570   : > { %v4416_v45 = vadd.f32 %v4408_v53, %v4400_v58 }
 0x572   : > { %v4428_v6 = vadd.f32 %v4420_v63, %v4416_v45 }
 0x574   : > { %v4440_v24 = vadd.f32 %v4432_v44, %v4428_v6 }
 0x576   : > { %v4446_v31 = vsel %vm3496_vm6, %v4440_v24, 0.0 }
 0x577   : > { %v4447_v10 = vadd.f32 %v4446_v31, %v4445_v47 }
 0x579   : > { %v4448_v61 = vmul.f32 0.0625, %v4447_v10 }
 0x57b   : > { %4482 = vmatmul.f32.vlgmr.msra.gmra.mxu2 %v4448_v61 }
 0x5fe   : > { %v4483_v0 = vpop.f32.mrf.mxu2 }
 0x5ff   : > { %v4484_v9 = vadd.f32 %v4483_v0, %v4465_v8 }
 0x601   : > { %v4486_v3 = vmax.f32 %v4484_v9, 0.0 }
 0x603   : > { %5084 = vmatmul.msk.f32.vlgmr.msra.gmra.mxu3 %vm440_vm4, %v4486_v3 }
 0x686   : > { %v4516_v2 = vpop.f32.mrf.mxu3 }
 0x687   : > { %v4517_v4 = vadd.f32 %v4516_v2, %v4495_v62 }
 0x689   : > { %4520 = vst.msk [vmem:[%s378_s24] sm:$0x1] %vm4519_vm12, %v4517_v4 }
 0x68a   : > { %5168 = shalt.err (!%p5165_p3)
}
 0x68b   : > { %5097 = dma.vmem_to_hbm [thread:$0]  (%p5304_p5), %s4533_s25, 16, %s4535_s0, %s4522_s29  }
 0x68c PF: > { %p5103_p4 = scmp.ge.s32.totalorder %s5203_s20, 2  ;;  %s4546_s13 = sand.u32 1, %s5191_s17  }
 0x68d   : > { %s4547_s22 = scalar_lea.sflag [#allocation5], %s4546_s13 }
 0x68e   : > { %p5100_p7 = pnand %p5103_p4, %p5308_p6 }
 0x690   : > { %p5101_p8 = pneg %p5100_p7 }
 0x692   : > { %5186 = dma.done.wait (%p5101_p8), %s4547_s22, 16  }
 0x693   : > { %5188 = vsyncadd (%p5101_p8), %s4547_s22, 4294967280  ;;  %p21_p9 = scmp.ge.s32.totalorder %s5291_s23, 4   ;;  %s7590_s17 = smov %s5195_s18 }
 0x694   : > { %s7591_s18 = smov %s5199_s19  ;;  %s7592_s19 = smov %s5302_s26 }
 0x695   : > { %s7593_s20 = smov %s5291_s23  ;;  %23 = sbr.rel (!%p21_p9) target bundleno = 6 (0x6), region = 119 }
 0x69a   :  { %4552 = vsyncpa [#allocation5], 1 }
 0x69b   :  { %4554 = vsyncpa [#allocation5 + $0x1], 1 }

</bundles_post_ra>
